<compile_context>
chip_gen: v6e
topology: v6e:2x2x1
jax: 0.10.0
libtpu: 0.0.40
codegen_flags: <defaults>
</compile_context>

<pallas_src>
import numpy as np

import jax
import jax.numpy as jnp
from jax.experimental import pallas as pl
from jax.experimental.pallas import tpu as pltpu


# ----------------------------- static geometry ------------------------------
H1, W1 = 32, 32                    # conv1 spatial size
WP1 = W1 + 2                       # padded row width (34)
P1 = (H1 + 2) * (W1 + 2)           # 1156 padded flat size
T1 = (H1 - 1) * WP1 + W1           # 1086 conv1 valid flat positions
TV1 = T1 - 1 - WP1                 # 1051 pooled (dilated) flat positions

H2, W2 = 16, 16                    # conv2 spatial size
WP2 = W2 + 2                       # 18
P2 = (H2 + 2) * (W2 + 2)           # 324
T2 = (H2 - 1) * WP2 + W2           # 286
TV2 = T2 - 1 - WP2                 # 267

CIN1P = 8                          # conv1 in-channels zero-padded 3 -> 8 (aligned stacking)
C1, C2 = 16, 32                    # conv out channels
HO2, WO2 = H2 // 2, W2 // 2        # 8 x 8 final spatial
FEAT = C2 * HO2 * WO2              # 2048

# pooling/compaction index invariants (review correctness concern): the last
# valid pooled position must be the last row of the selection matrices.
assert TV1 == (H1 - 2) * WP1 + (W1 - 1)
assert 2 * (H1 // 2 - 1) * WP1 + 2 * (W1 // 2 - 1) == TV1 - 1
assert TV2 == (H2 - 2) * WP2 + (W2 - 1)
assert 2 * (HO2 - 1) * WP2 + 2 * (WO2 - 1) == TV2 - 1


# ------------- kernel A: conv1+ReLU+pool -> conv2+ReLU+pool (per image) -----
def _cnn_features_kernel(x_ref, w1_ref, b1_ref, s1_ref, w2_ref, b2_ref, s2_ref,
                         o_ref, rhs1_ref, a1_ref, rhs2_ref):
    # ---- stage 1: conv1 (8pad->16) + bias + ReLU + 2x2 pool + re-pad -------
    # stacked RHS: rows [k*8, k*8+8) = tap k (dy,dx) of the padded image.
    for dy in range(3):
        for dx in range(3):
            k = dy * 3 + dx
            rhs1_ref[pl.ds(k * CIN1P, CIN1P), :] = x_ref[:, pl.ds(dy * WP1 + dx, T1)]
    acc = jnp.dot(w1_ref[...], rhs1_ref[...], preferred_element_type=jnp.float32)
    acc = jnp.maximum(acc + b1_ref[...], 0.0)
    h = jnp.maximum(acc[:, 0:T1 - 1], acc[:, 1:T1])          # horizontal pool tap
    v = jnp.maximum(h[:, 0:TV1], h[:, WP1:WP1 + TV1])        # vertical pool tap
    # stride-2 compaction + zero re-pad to the 18x18 flat layout (one MXU op);
    # junk (wrapped) columns of v are finite and hit all-zero rows of s1.
    a1_ref[...] = jnp.dot(v, s1_ref[...], preferred_element_type=jnp.float32)

    # ---- stage 2: conv2 (16->32) + bias + ReLU + 2x2 pool + compaction -----
    for dy in range(3):
        for dx in range(3):
            k = dy * 3 + dx
            rhs2_ref[pl.ds(k * C1, C1), :] = a1_ref[:, pl.ds(dy * WP2 + dx, T2)]
    acc2 = jnp.dot(w2_ref[...], rhs2_ref[...], preferred_element_type=jnp.float32)
    acc2 = jnp.maximum(acc2 + b2_ref[...], 0.0)
    h2 = jnp.maximum(acc2[:, 0:T2 - 1], acc2[:, 1:T2])
    v2 = jnp.maximum(h2[:, 0:TV2], h2[:, WP2:WP2 + TV2])
    o_ref[...] = jnp.dot(v2, s2_ref[...],
                         preferred_element_type=jnp.float32).astype(o_ref.dtype)


def cnn_features(x_flat, q):
    """x_flat: (B, 8, 1156) channel-padded, spatially-padded, flattened image.
    Returns (B, 32, 64) pooled conv2 features in (c, yo*8+xo) = torch view order."""
    B = x_flat.shape[0]
    return pl.pallas_call(
        _cnn_features_kernel,
        out_shape=jax.ShapeDtypeStruct((B, C2, HO2 * WO2), jnp.float32),
        grid=(B,),
        in_specs=[
            pl.BlockSpec((None, CIN1P, P1), lambda b: (b, 0, 0)),
            pl.BlockSpec((C1, 9 * CIN1P), lambda b: (0, 0)),
            pl.BlockSpec((C1, 1), lambda b: (0, 0)),
            pl.BlockSpec((TV1, P2), lambda b: (0, 0)),
            pl.BlockSpec((C2, 9 * C1), lambda b: (0, 0)),
            pl.BlockSpec((C2, 1), lambda b: (0, 0)),
            pl.BlockSpec((TV2, HO2 * WO2), lambda b: (0, 0)),
        ],
        out_specs=pl.BlockSpec((None, C2, HO2 * WO2), lambda b: (b, 0, 0)),
        scratch_shapes=[
            pltpu.VMEM((9 * CIN1P, T1), jnp.float32),   # stacked conv1 RHS
            pltpu.VMEM((C1, P2), jnp.float32),          # padded stage-2 input
            pltpu.VMEM((9 * C1, T2), jnp.float32),      # stacked conv2 RHS
        ],
        compiler_params=pltpu.CompilerParams(
            dimension_semantics=("parallel",)),          # v7x: one image per TC
    )(x_flat, q["c1_w"], q["c1_b"], q["s1"], q["c2_w"], q["c2_b"], q["s2"])


# -------------------- kernel B: fc1 + ReLU + fc2 (whole batch) --------------
def _mlp_kernel(x_ref, w1_ref, b1_ref, w2_ref, b2_ref, o_ref):
    h = jnp.dot(x_ref[...], w1_ref[...], preferred_element_type=jnp.float32)
    h = jnp.maximum(h + b1_ref[...], 0.0)
    o = jnp.dot(h, w2_ref[...], preferred_element_type=jnp.float32) + b2_ref[...]
    o_ref[...] = o.astype(o_ref.dtype)


def mlp_head(x, w1t, b1, w2t, b2):
    B = x.shape[0]
    N = w2t.shape[1]
    specs = [pl.BlockSpec(memory_space=pltpu.MemorySpace.VMEM) for _ in range(5)]
    return pl.pallas_call(
        _mlp_kernel,
        out_shape=jax.ShapeDtypeStruct((B, N), jnp.float32),
        in_specs=specs,
        out_specs=pl.BlockSpec(memory_space=pltpu.MemorySpace.VMEM),
    )(x, w1t, b1, w2t, b2)


# ---------------------------- one-time packing -------------------------------
def _pack_conv(w, cin_pad):
    """OIHW -> (Cout, 9*cin_pad); column (dy*3+dx)*cin_pad + ci."""
    cout, cin = w.shape[0], w.shape[1]
    wt = jnp.transpose(w, (0, 2, 3, 1))                          # (cout, dy, dx, ci)
    wt = jnp.pad(wt, ((0, 0), (0, 0), (0, 0), (0, cin_pad - cin)))
    return wt.reshape(cout, 9 * cin_pad)


def _pool_select(H, W, pad_out):
    """0/1 matrix mapping dilated pooled positions t=2yo*(W+2)+2xo to a compact
    (optionally zero-padded for the next conv) flat layout."""
    Wp = W + 2
    Tv = (H - 2) * Wp + (W - 1)
    Ho, Wo = H // 2, W // 2
    off = 1 if pad_out else 0
    Hn, Wn = Ho + 2 * off, Wo + 2 * off
    S = np.zeros((Tv, Hn * Wn), np.float32)
    for yo in range(Ho):
        for xo in range(Wo):
            S[2 * yo * Wp + 2 * xo, (yo + off) * Wn + (xo + off)] = 1.0
    return jnp.asarray(S)


def pack_params(p):
    return {
        "c1_w": _pack_conv(p["conv1_w"], CIN1P), "c1_b": p["conv1_b"].reshape(-1, 1),
        "c2_w": _pack_conv(p["conv2_w"], C1),    "c2_b": p["conv2_b"].reshape(-1, 1),
        "s1": _pool_select(H1, W1, pad_out=True),    # (1051, 324)
        "s2": _pool_select(H2, W2, pad_out=False),   # (267, 64)
        "fc1_wt": p["fc1_w"].T, "fc1_b": p["fc1_b"].reshape(1, -1),
        "fc2_wt": p["fc2_w"].T, "fc2_b": p["fc2_b"].reshape(1, -1),
    }


# ------------------------------ forward pass --------------------------------
def simple_cnn_forward(x_nchw, q):
    B = x_nchw.shape[0]
    # one pad HLO: zero-pad channels 3->8 and spatial 32->34, then flatten.
    x1 = jnp.pad(x_nchw, ((0, 0), (0, CIN1P - 3), (1, 1), (1, 1))).reshape(B, CIN1P, P1)
    feats = cnn_features(x1, q)                  # (B, 32, 64), one fused kernel
    flat = feats.reshape(B, FEAT)                # free reshape; matches torch .view order
    return mlp_head(flat, q["fc1_wt"], q["fc1_b"], q["fc2_wt"], q["fc2_b"])


# ----------------------- deterministic parameter init ----------------------
def init_params(key):
    def uniform(k, shape, fan_in):
        bound = 1.0 / (fan_in ** 0.5)
        return jax.random.uniform(k, shape, jnp.float32, -bound, bound)

    ks = jax.random.split(key, 8)
    return {
        "conv1_w": uniform(ks[0], (16, 3, 3, 3), 3 * 9),
        "conv1_b": uniform(ks[1], (16,), 3 * 9),
        "conv2_w": uniform(ks[2], (32, 16, 3, 3), 16 * 9),
        "conv2_b": uniform(ks[3], (32,), 16 * 9),
        "fc1_w": uniform(ks[4], (128, FEAT), FEAT),
        "fc1_b": uniform(ks[5], (128,), FEAT),
        "fc2_w": uniform(ks[6], (10, 128), 128),
        "fc2_b": uniform(ks[7], (10,), 128),
    }


# --------------------------- pure-JAX reference -----------------------------
def reference_forward(x_nchw, p):
    hp = jax.lax.Precision.HIGHEST

    def conv(x, w, b):
        dn = jax.lax.conv_dimension_numbers(x.shape, w.shape,
                                            ("NCHW", "OIHW", "NCHW"))
        y = jax.lax.conv_general_dilated(x, w, (1, 1), ((1, 1), (1, 1)),
                                         dimension_numbers=dn, precision=hp)
        return jax.nn.relu(y + b[None, :, None, None])

    def pool(x):
        return jax.lax.reduce_window(x, -jnp.inf, jax.lax.max,
                                     (1, 1, 2, 2), (1, 1, 2, 2), "VALID")

    x = pool(conv(x_nchw, p["conv1_w"], p["conv1_b"]))
    x = pool(conv(x, p["conv2_w"], p["conv2_b"]))
    x = x.reshape(x.shape[0], -1)
    x = jax.nn.relu(jnp.dot(x, p["fc1_w"].T, precision=hp) + p["fc1_b"])
    return jnp.dot(x, p["fc2_w"].T, precision=hp) + p["fc2_b"]


# ---------------------------------- main ------------------------------------
if __name__ == "__main__":
    key = jax.random.PRNGKey(0)
    k_x, k_p = jax.random.split(key)
    x = jax.random.normal(k_x, (2, 3, 32, 32), jnp.float32)   # NCHW, like torch
    params = init_params(k_p)
    packed = pack_params(params)          # one-time weight / selection packing

    fwd = jax.jit(simple_cnn_forward)
    out = jax.block_until_ready(fwd(x, packed))
    assert out.shape == (2, 10) and out.dtype == jnp.float32

    ref = jax.block_until_ready(reference_forward(x, params))
    # all-f32 path: 20x tighter than before; 1e-3 keeps margin for MXU f32
    # multi-pass rounding while still catching any layout/indexing regression.
    assert jnp.allclose(out, ref, rtol=1e-3, atol=1e-3), "mismatch vs reference"

    print("KERNEL_OK")
</pallas_src>

<mosaic_0001>
module attributes {stable_mosaic.version = 11 : i64} {
  func.func @_mlp_kernel(%arg0: memref<2x2048xf32, #tpu.memory_space<vmem>>, %arg1: memref<2048x128xf32, #tpu.memory_space<vmem>>, %arg2: memref<1x128xf32, #tpu.memory_space<vmem>>, %arg3: memref<128x10xf32, #tpu.memory_space<vmem>>, %arg4: memref<1x10xf32, #tpu.memory_space<vmem>>, %arg5: memref<2x10xf32, #tpu.memory_space<vmem>>) attributes {dimension_semantics = [], scalar_prefetch = 0 : i64, scratch_operands = 0 : i64, tpu.core_type = #tpu.core_type<tc>} {
    %c0 = arith.constant 0 : index
    %c0_0 = arith.constant 0 : index
    %0 = vector.load %arg0[%c0, %c0_0] : memref<2x2048xf32, #tpu.memory_space<vmem>>, vector<2x2048xf32>
    %c0_1 = arith.constant 0 : index
    %c0_2 = arith.constant 0 : index
    %1 = vector.load %arg1[%c0_1, %c0_2] : memref<2048x128xf32, #tpu.memory_space<vmem>>, vector<2048x128xf32>
    %cst = arith.constant dense<0.000000e+00> : vector<2x128xf32>
    %2 = tpu.matmul %0, %1, %cst {dimension_numbers = #tpu.dot_dimension_numbers<[1], [0], [0], [1], [0, 0, 1, 1], [], []>} : vector<2x2048xf32>, vector<2048x128xf32>, vector<2x128xf32> -> vector<2x128xf32>
    %c0_3 = arith.constant 0 : index
    %c0_4 = arith.constant 0 : index
    %3 = vector.load %arg2[%c0_3, %c0_4] : memref<1x128xf32, #tpu.memory_space<vmem>>, vector<1x128xf32>
    %4 = vector.broadcast %3 : vector<1x128xf32> to vector<2x128xf32>
    %5 = arith.addf %2, %4 : vector<2x128xf32>
    %cst_5 = arith.constant 0.000000e+00 : f32
    %6 = vector.broadcast %cst_5 : f32 to vector<2x128xf32>
    %7 = arith.maximumf %5, %6 : vector<2x128xf32>
    %c0_6 = arith.constant 0 : index
    %c0_7 = arith.constant 0 : index
    %8 = vector.load %arg3[%c0_6, %c0_7] : memref<128x10xf32, #tpu.memory_space<vmem>>, vector<128x10xf32>
    %cst_8 = arith.constant dense<0.000000e+00> : vector<2x10xf32>
    %9 = tpu.matmul %7, %8, %cst_8 {dimension_numbers = #tpu.dot_dimension_numbers<[1], [0], [0], [1], [0, 0, 1, 1], [], []>} : vector<2x128xf32>, vector<128x10xf32>, vector<2x10xf32> -> vector<2x10xf32>
    %c0_9 = arith.constant 0 : index
    %c0_10 = arith.constant 0 : index
    %10 = vector.load %arg4[%c0_9, %c0_10] : memref<1x10xf32, #tpu.memory_space<vmem>>, vector<1x10xf32>
    %11 = vector.broadcast %10 : vector<1x10xf32> to vector<2x10xf32>
    %12 = arith.addf %9, %11 : vector<2x10xf32>
    %c0_11 = arith.constant 0 : index
    %c0_12 = arith.constant 0 : index
    %13 = vector.load %arg5[%c0_11, %c0_12] : memref<2x10xf32, #tpu.memory_space<vmem>>, vector<2x10xf32>
    tpu.vector_store %arg5[%c0_11, %c0_12], %12 {strides = array<i32>} : memref<2x10xf32, #tpu.memory_space<vmem>>, vector<2x10xf32>,
    return
  }
}

module attributes {stable_mosaic.version = 11 : i64} {
  func.func @_cnn_features_kernel(%arg0: i32, %arg1: memref<1x8x1156xf32, #tpu.memory_space<vmem>>, %arg2: memref<16x72xf32, #tpu.memory_space<vmem>>, %arg3: memref<16x1xf32, #tpu.memory_space<vmem>>, %arg4: memref<1051x324xf32, #tpu.memory_space<vmem>>, %arg5: memref<32x144xf32, #tpu.memory_space<vmem>>, %arg6: memref<32x1xf32, #tpu.memory_space<vmem>>, %arg7: memref<267x64xf32, #tpu.memory_space<vmem>>, %arg8: memref<1x32x64xf32, #tpu.memory_space<vmem>>, %arg9: memref<72x1086xf32, #tpu.memory_space<vmem>>, %arg10: memref<16x324xf32, #tpu.memory_space<vmem>>, %arg11: memref<144x286xf32, #tpu.memory_space<vmem>>) attributes {dimension_semantics = [#tpu.dimension_semantics<parallel>], iteration_bounds = array<i64: 2>, scalar_prefetch = 0 : i64, scratch_operands = 3 : i64, tpu.core_type = #tpu.core_type<tc>, window_params = [{transform_indices = @transform_0, window_bounds = array<i64: 1, 8, 1156>}, {pipeline_mode = #tpu.pipeline_mode<synchronous>, transform_indices = @transform_1, window_bounds = array<i64: 16, 72>}, {pipeline_mode = #tpu.pipeline_mode<synchronous>, transform_indices = @transform_2, window_bounds = array<i64: 16, 1>}, {pipeline_mode = #tpu.pipeline_mode<synchronous>, transform_indices = @transform_3, window_bounds = array<i64: 1051, 324>}, {pipeline_mode = #tpu.pipeline_mode<synchronous>, transform_indices = @transform_4, window_bounds = array<i64: 32, 144>}, {pipeline_mode = #tpu.pipeline_mode<synchronous>, transform_indices = @transform_5, window_bounds = array<i64: 32, 1>}, {pipeline_mode = #tpu.pipeline_mode<synchronous>, transform_indices = @transform_6, window_bounds = array<i64: 267, 64>}, {transform_indices = @transform_7, window_bounds = array<i64: 1, 32, 64>}]} {
    %c0 = arith.constant 0 : index
    %c0_0 = arith.constant 0 : index
    %c0_1 = arith.constant 0 : index
    %0 = vector.load %arg1[%c0, %c0_0, %c0_1] : memref<1x8x1156xf32, #tpu.memory_space<vmem>>, vector<1x8x1086xf32>
    %1 = vector.shape_cast %0 : vector<1x8x1086xf32> to vector<8x1086xf32>
    %c0_2 = arith.constant 0 : index
    %c0_3 = arith.constant 0 : index
    %2 = vector.load %arg9[%c0_2, %c0_3] : memref<72x1086xf32, #tpu.memory_space<vmem>>, vector<8x1086xf32>
    tpu.vector_store %arg9[%c0_2, %c0_3], %1 {strides = array<i32>} : memref<72x1086xf32, #tpu.memory_space<vmem>>, vector<8x1086xf32>,
    %c0_4 = arith.constant 0 : index
    %c0_5 = arith.constant 0 : index
    %c1 = arith.constant 1 : index
    %3 = vector.load %arg1[%c0_4, %c0_5, %c1] : memref<1x8x1156xf32, #tpu.memory_space<vmem>>, vector<1x8x1086xf32>
    %4 = vector.shape_cast %3 : vector<1x8x1086xf32> to vector<8x1086xf32>
    %c8 = arith.constant 8 : index
    %c0_6 = arith.constant 0 : index
    %5 = vector.load %arg9[%c8, %c0_6] : memref<72x1086xf32, #tpu.memory_space<vmem>>, vector<8x1086xf32>
    tpu.vector_store %arg9[%c8, %c0_6], %4 {strides = array<i32>} : memref<72x1086xf32, #tpu.memory_space<vmem>>, vector<8x1086xf32>,
    %c0_7 = arith.constant 0 : index
    %c0_8 = arith.constant 0 : index
    %c2 = arith.constant 2 : index
    %6 = vector.load %arg1[%c0_7, %c0_8, %c2] : memref<1x8x1156xf32, #tpu.memory_space<vmem>>, vector<1x8x1086xf32>
    %7 = vector.shape_cast %6 : vector<1x8x1086xf32> to vector<8x1086xf32>
    %c16 = arith.constant 16 : index
    %c0_9 = arith.constant 0 : index
    %8 = vector.load %arg9[%c16, %c0_9] : memref<72x1086xf32, #tpu.memory_space<vmem>>, vector<8x1086xf32>
    tpu.vector_store %arg9[%c16, %c0_9], %7 {strides = array<i32>} : memref<72x1086xf32, #tpu.memory_space<vmem>>, vector<8x1086xf32>,
    %c0_10 = arith.constant 0 : index
    %c0_11 = arith.constant 0 : index
    %c34 = arith.constant 34 : index
    %9 = vector.load %arg1[%c0_10, %c0_11, %c34] : memref<1x8x1156xf32, #tpu.memory_space<vmem>>, vector<1x8x1086xf32>
    %10 = vector.shape_cast %9 : vector<1x8x1086xf32> to vector<8x1086xf32>
    %c24 = arith.constant 24 : index
    %c0_12 = arith.constant 0 : index
    %11 = vector.load %arg9[%c24, %c0_12] : memref<72x1086xf32, #tpu.memory_space<vmem>>, vector<8x1086xf32>
    tpu.vector_store %arg9[%c24, %c0_12], %10 {strides = array<i32>} : memref<72x1086xf32, #tpu.memory_space<vmem>>, vector<8x1086xf32>,
    %c0_13 = arith.constant 0 : index
    %c0_14 = arith.constant 0 : index
    %c35 = arith.constant 35 : index
    %12 = vector.load %arg1[%c0_13, %c0_14, %c35] : memref<1x8x1156xf32, #tpu.memory_space<vmem>>, vector<1x8x1086xf32>
    %13 = vector.shape_cast %12 : vector<1x8x1086xf32> to vector<8x1086xf32>
    %c32 = arith.constant 32 : index
    %c0_15 = arith.constant 0 : index
    %14 = vector.load %arg9[%c32, %c0_15] : memref<72x1086xf32, #tpu.memory_space<vmem>>, vector<8x1086xf32>
    tpu.vector_store %arg9[%c32, %c0_15], %13 {strides = array<i32>} : memref<72x1086xf32, #tpu.memory_space<vmem>>, vector<8x1086xf32>,
    %c0_16 = arith.constant 0 : index
    %c0_17 = arith.constant 0 : index
    %c36 = arith.constant 36 : index
    %15 = vector.load %arg1[%c0_16, %c0_17, %c36] : memref<1x8x1156xf32, #tpu.memory_space<vmem>>, vector<1x8x1086xf32>
    %16 = vector.shape_cast %15 : vector<1x8x1086xf32> to vector<8x1086xf32>
    %c40 = arith.constant 40 : index
    %c0_18 = arith.constant 0 : index
    %17 = vector.load %arg9[%c40, %c0_18] : memref<72x1086xf32, #tpu.memory_space<vmem>>, vector<8x1086xf32>
    tpu.vector_store %arg9[%c40, %c0_18], %16 {strides = array<i32>} : memref<72x1086xf32, #tpu.memory_space<vmem>>, vector<8x1086xf32>,
    %c0_19 = arith.constant 0 : index
    %c0_20 = arith.constant 0 : index
    %c68 = arith.constant 68 : index
    %18 = vector.load %arg1[%c0_19, %c0_20, %c68] : memref<1x8x1156xf32, #tpu.memory_space<vmem>>, vector<1x8x1086xf32>
    %19 = vector.shape_cast %18 : vector<1x8x1086xf32> to vector<8x1086xf32>
    %c48 = arith.constant 48 : index
    %c0_21 = arith.constant 0 : index
    %20 = vector.load %arg9[%c48, %c0_21] : memref<72x1086xf32, #tpu.memory_space<vmem>>, vector<8x1086xf32>
    tpu.vector_store %arg9[%c48, %c0_21], %19 {strides = array<i32>} : memref<72x1086xf32, #tpu.memory_space<vmem>>, vector<8x1086xf32>,
    %c0_22 = arith.constant 0 : index
    %c0_23 = arith.constant 0 : index
    %c69 = arith.constant 69 : index
    %21 = vector.load %arg1[%c0_22, %c0_23, %c69] : memref<1x8x1156xf32, #tpu.memory_space<vmem>>, vector<1x8x1086xf32>
    %22 = vector.shape_cast %21 : vector<1x8x1086xf32> to vector<8x1086xf32>
    %c56 = arith.constant 56 : index
    %c0_24 = arith.constant 0 : index
    %23 = vector.load %arg9[%c56, %c0_24] : memref<72x1086xf32, #tpu.memory_space<vmem>>, vector<8x1086xf32>
    tpu.vector_store %arg9[%c56, %c0_24], %22 {strides = array<i32>} : memref<72x1086xf32, #tpu.memory_space<vmem>>, vector<8x1086xf32>,
    %c0_25 = arith.constant 0 : index
    %c0_26 = arith.constant 0 : index
    %c70 = arith.constant 70 : index
    %24 = vector.load %arg1[%c0_25, %c0_26, %c70] : memref<1x8x1156xf32, #tpu.memory_space<vmem>>, vector<1x8x1086xf32>
    %25 = vector.shape_cast %24 : vector<1x8x1086xf32> to vector<8x1086xf32>
    %c64 = arith.constant 64 : index
    %c0_27 = arith.constant 0 : index
    %26 = vector.load %arg9[%c64, %c0_27] : memref<72x1086xf32, #tpu.memory_space<vmem>>, vector<8x1086xf32>
    tpu.vector_store %arg9[%c64, %c0_27], %25 {strides = array<i32>} : memref<72x1086xf32, #tpu.memory_space<vmem>>, vector<8x1086xf32>,
    %c0_28 = arith.constant 0 : index
    %c0_29 = arith.constant 0 : index
    %27 = vector.load %arg2[%c0_28, %c0_29] : memref<16x72xf32, #tpu.memory_space<vmem>>, vector<16x72xf32>
    %c0_30 = arith.constant 0 : index
    %c0_31 = arith.constant 0 : index
    %28 = vector.load %arg9[%c0_30, %c0_31] : memref<72x1086xf32, #tpu.memory_space<vmem>>, vector<72x1086xf32>
    %cst = arith.constant dense<0.000000e+00> : vector<16x1086xf32>
    %29 = tpu.matmul %27, %28, %cst {dimension_numbers = #tpu.dot_dimension_numbers<[1], [0], [0], [1], [0, 0, 1, 1], [], []>} : vector<16x72xf32>, vector<72x1086xf32>, vector<16x1086xf32> -> vector<16x1086xf32>
    %c0_32 = arith.constant 0 : index
    %c0_33 = arith.constant 0 : index
    %30 = vector.load %arg3[%c0_32, %c0_33] : memref<16x1xf32, #tpu.memory_space<vmem>>, vector<16x1xf32>
    %31 = vector.broadcast %30 : vector<16x1xf32> to vector<16x1086xf32>
    %32 = arith.addf %29, %31 : vector<16x1086xf32>
    %cst_34 = arith.constant 0.000000e+00 : f32
    %33 = vector.broadcast %cst_34 : f32 to vector<16x1086xf32>
    %34 = arith.maximumf %32, %33 : vector<16x1086xf32>
    %35 = vector.extract_strided_slice %34 {offsets = [0, 0], sizes = [16, 1085], strides = [1, 1]} : vector<16x1086xf32> to vector<16x1085xf32>
    %36 = vector.extract_strided_slice %34 {offsets = [0, 1], sizes = [16, 1085], strides = [1, 1]} : vector<16x1086xf32> to vector<16x1085xf32>
    %37 = arith.maximumf %35, %36 : vector<16x1085xf32>
    %38 = vector.extract_strided_slice %37 {offsets = [0, 0], sizes = [16, 1051], strides = [1, 1]} : vector<16x1085xf32> to vector<16x1051xf32>
    %39 = vector.extract_strided_slice %37 {offsets = [0, 34], sizes = [16, 1051], strides = [1, 1]} : vector<16x1085xf32> to vector<16x1051xf32>
    %40 = arith.maximumf %38, %39 : vector<16x1051xf32>
    %c0_35 = arith.constant 0 : index
    %c0_36 = arith.constant 0 : index
    %41 = vector.load %arg4[%c0_35, %c0_36] : memref<1051x324xf32, #tpu.memory_space<vmem>>, vector<1051x324xf32>
    %cst_37 = arith.constant dense<0.000000e+00> : vector<16x324xf32>
    %42 = tpu.matmul %40, %41, %cst_37 {dimension_numbers = #tpu.dot_dimension_numbers<[1], [0], [0], [1], [0, 0, 1, 1], [], []>} : vector<16x1051xf32>, vector<1051x324xf32>, vector<16x324xf32> -> vector<16x324xf32>
    %c0_38 = arith.constant 0 : index
    %c0_39 = arith.constant 0 : index
    %43 = vector.load %arg10[%c0_38, %c0_39] : memref<16x324xf32, #tpu.memory_space<vmem>>, vector<16x324xf32>
    tpu.vector_store %arg10[%c0_38, %c0_39], %42 {strides = array<i32>} : memref<16x324xf32, #tpu.memory_space<vmem>>, vector<16x324xf32>,
    %c0_40 = arith.constant 0 : index
    %c0_41 = arith.constant 0 : index
    %44 = vector.load %arg10[%c0_40, %c0_41] : memref<16x324xf32, #tpu.memory_space<vmem>>, vector<16x286xf32>
    %c0_42 = arith.constant 0 : index
    %c0_43 = arith.constant 0 : index
    %45 = vector.load %arg11[%c0_42, %c0_43] : memref<144x286xf32, #tpu.memory_space<vmem>>, vector<16x286xf32>
    tpu.vector_store %arg11[%c0_42, %c0_43], %44 {strides = array<i32>} : memref<144x286xf32, #tpu.memory_space<vmem>>, vector<16x286xf32>,
    %c0_44 = arith.constant 0 : index
    %c1_45 = arith.constant 1 : index
    %46 = vector.load %arg10[%c0_44, %c1_45] : memref<16x324xf32, #tpu.memory_space<vmem>>, vector<16x286xf32>
    %c16_46 = arith.constant 16 : index
    %c0_47 = arith.constant 0 : index
    %47 = vector.load %arg11[%c16_46, %c0_47] : memref<144x286xf32, #tpu.memory_space<vmem>>, vector<16x286xf32>
    tpu.vector_store %arg11[%c16_46, %c0_47], %46 {strides = array<i32>} : memref<144x286xf32, #tpu.memory_space<vmem>>, vector<16x286xf32>,
    %c0_48 = arith.constant 0 : index
    %c2_49 = arith.constant 2 : index
    %48 = vector.load %arg10[%c0_48, %c2_49] : memref<16x324xf32, #tpu.memory_space<vmem>>, vector<16x286xf32>
    %c32_50 = arith.constant 32 : index
    %c0_51 = arith.constant 0 : index
    %49 = vector.load %arg11[%c32_50, %c0_51] : memref<144x286xf32, #tpu.memory_space<vmem>>, vector<16x286xf32>
    tpu.vector_store %arg11[%c32_50, %c0_51], %48 {strides = array<i32>} : memref<144x286xf32, #tpu.memory_space<vmem>>, vector<16x286xf32>,
    %c0_52 = arith.constant 0 : index
    %c18 = arith.constant 18 : index
    %50 = vector.load %arg10[%c0_52, %c18] : memref<16x324xf32, #tpu.memory_space<vmem>>, vector<16x286xf32>
    %c48_53 = arith.constant 48 : index
    %c0_54 = arith.constant 0 : index
    %51 = vector.load %arg11[%c48_53, %c0_54] : memref<144x286xf32, #tpu.memory_space<vmem>>, vector<16x286xf32>
    tpu.vector_store %arg11[%c48_53, %c0_54], %50 {strides = array<i32>} : memref<144x286xf32, #tpu.memory_space<vmem>>, vector<16x286xf32>,
    %c0_55 = arith.constant 0 : index
    %c19 = arith.constant 19 : index
    %52 = vector.load %arg10[%c0_55, %c19] : memref<16x324xf32, #tpu.memory_space<vmem>>, vector<16x286xf32>
    %c64_56 = arith.constant 64 : index
    %c0_57 = arith.constant 0 : index
    %53 = vector.load %arg11[%c64_56, %c0_57] : memref<144x286xf32, #tpu.memory_space<vmem>>, vector<16x286xf32>
    tpu.vector_store %arg11[%c64_56, %c0_57], %52 {strides = array<i32>} : memref<144x286xf32, #tpu.memory_space<vmem>>, vector<16x286xf32>,
    %c0_58 = arith.constant 0 : index
    %c20 = arith.constant 20 : index
    %54 = vector.load %arg10[%c0_58, %c20] : memref<16x324xf32, #tpu.memory_space<vmem>>, vector<16x286xf32>
    %c80 = arith.constant 80 : index
    %c0_59 = arith.constant 0 : index
    %55 = vector.load %arg11[%c80, %c0_59] : memref<144x286xf32, #tpu.memory_space<vmem>>, vector<16x286xf32>
    tpu.vector_store %arg11[%c80, %c0_59], %54 {strides = array<i32>} : memref<144x286xf32, #tpu.memory_space<vmem>>, vector<16x286xf32>,
    %c0_60 = arith.constant 0 : index
    %c36_61 = arith.constant 36 : index
    %56 = vector.load %arg10[%c0_60, %c36_61] : memref<16x324xf32, #tpu.memory_space<vmem>>, vector<16x286xf32>
    %c96 = arith.constant 96 : index
    %c0_62 = arith.constant 0 : index
    %57 = vector.load %arg11[%c96, %c0_62] : memref<144x286xf32, #tpu.memory_space<vmem>>, vector<16x286xf32>
    tpu.vector_store %arg11[%c96, %c0_62], %56 {strides = array<i32>} : memref<144x286xf32, #tpu.memory_space<vmem>>, vector<16x286xf32>,
    %c0_63 = arith.constant 0 : index
    %c37 = arith.constant 37 : index
    %58 = vector.load %arg10[%c0_63, %c37] : memref<16x324xf32, #tpu.memory_space<vmem>>, vector<16x286xf32>
    %c112 = arith.constant 112 : index
    %c0_64 = arith.constant 0 : index
    %59 = vector.load %arg11[%c112, %c0_64] : memref<144x286xf32, #tpu.memory_space<vmem>>, vector<16x286xf32>
    tpu.vector_store %arg11[%c112, %c0_64], %58 {strides = array<i32>} : memref<144x286xf32, #tpu.memory_space<vmem>>, vector<16x286xf32>,
    %c0_65 = arith.constant 0 : index
    %c38 = arith.constant 38 : index
    %60 = vector.load %arg10[%c0_65, %c38] : memref<16x324xf32, #tpu.memory_space<vmem>>, vector<16x286xf32>
    %c128 = arith.constant 128 : index
    %c0_66 = arith.constant 0 : index
    %61 = vector.load %arg11[%c128, %c0_66] : memref<144x286xf32, #tpu.memory_space<vmem>>, vector<16x286xf32>
    tpu.vector_store %arg11[%c128, %c0_66], %60 {strides = array<i32>} : memref<144x286xf32, #tpu.memory_space<vmem>>, vector<16x286xf32>,
    %c0_67 = arith.constant 0 : index
    %c0_68 = arith.constant 0 : index
    %62 = vector.load %arg5[%c0_67, %c0_68] : memref<32x144xf32, #tpu.memory_space<vmem>>, vector<32x144xf32>
    %c0_69 = arith.constant 0 : index
    %c0_70 = arith.constant 0 : index
    %63 = vector.load %arg11[%c0_69, %c0_70] : memref<144x286xf32, #tpu.memory_space<vmem>>, vector<144x286xf32>
    %cst_71 = arith.constant dense<0.000000e+00> : vector<32x286xf32>
    %64 = tpu.matmul %62, %63, %cst_71 {dimension_numbers = #tpu.dot_dimension_numbers<[1], [0], [0], [1], [0, 0, 1, 1], [], []>} : vector<32x144xf32>, vector<144x286xf32>, vector<32x286xf32> -> vector<32x286xf32>
    %c0_72 = arith.constant 0 : index
    %c0_73 = arith.constant 0 : index
    %65 = vector.load %arg6[%c0_72, %c0_73] : memref<32x1xf32, #tpu.memory_space<vmem>>, vector<32x1xf32>
    %66 = vector.broadcast %65 : vector<32x1xf32> to vector<32x286xf32>
    %67 = arith.addf %64, %66 : vector<32x286xf32>
    %cst_74 = arith.constant 0.000000e+00 : f32
    %68 = vector.broadcast %cst_74 : f32 to vector<32x286xf32>
    %69 = arith.maximumf %67, %68 : vector<32x286xf32>
    %70 = vector.extract_strided_slice %69 {offsets = [0, 0], sizes = [32, 285], strides = [1, 1]} : vector<32x286xf32> to vector<32x285xf32>
    %71 = vector.extract_strided_slice %69 {offsets = [0, 1], sizes = [32, 285], strides = [1, 1]} : vector<32x286xf32> to vector<32x285xf32>
    %72 = arith.maximumf %70, %71 : vector<32x285xf32>
    %73 = vector.extract_strided_slice %72 {offsets = [0, 0], sizes = [32, 267], strides = [1, 1]} : vector<32x285xf32> to vector<32x267xf32>
    %74 = vector.extract_strided_slice %72 {offsets = [0, 18], sizes = [32, 267], strides = [1, 1]} : vector<32x285xf32> to vector<32x267xf32>
    %75 = arith.maximumf %73, %74 : vector<32x267xf32>
    %c0_75 = arith.constant 0 : index
    %c0_76 = arith.constant 0 : index
    %76 = vector.load %arg7[%c0_75, %c0_76] : memref<267x64xf32, #tpu.memory_space<vmem>>, vector<267x64xf32>
    %cst_77 = arith.constant dense<0.000000e+00> : vector<32x64xf32>
    %77 = tpu.matmul %75, %76, %cst_77 {dimension_numbers = #tpu.dot_dimension_numbers<[1], [0], [0], [1], [0, 0, 1, 1], [], []>} : vector<32x267xf32>, vector<267x64xf32>, vector<32x64xf32> -> vector<32x64xf32>
    %c0_78 = arith.constant 0 : index
    %c0_79 = arith.constant 0 : index
    %c0_80 = arith.constant 0 : index
    %78 = vector.load %arg8[%c0_78, %c0_79, %c0_80] : memref<1x32x64xf32, #tpu.memory_space<vmem>>, vector<1x32x64xf32>
    %79 = vector.shape_cast %78 : vector<1x32x64xf32> to vector<32x64xf32>
    %80 = vector.shape_cast %77 : vector<32x64xf32> to vector<1x32x64xf32>
    tpu.vector_store %arg8[%c0_78, %c0_79, %c0_80], %80 {strides = array<i32>} : memref<1x32x64xf32, #tpu.memory_space<vmem>>, vector<1x32x64xf32>,
    return
  }
  func.func @transform_0(%arg0: i32) -> (i32, i32, i32) {
    %c0_i32 = arith.constant 0 : i32
    %c0_i32_0 = arith.constant 0 : i32
    %c0_i32_1 = arith.constant 0 : i32
    return %arg0, %c0_i32, %c0_i32_0 : i32, i32, i32
  }
  func.func @transform_1(%arg0: i32) -> (i32, i32) {
    %c0_i32 = arith.constant 0 : i32
    %c0_i32_0 = arith.constant 0 : i32
    %c0_i32_1 = arith.constant 0 : i32
    return %c0_i32, %c0_i32_0 : i32, i32
  }
  func.func @transform_2(%arg0: i32) -> (i32, i32) {
    %c0_i32 = arith.constant 0 : i32
    %c0_i32_0 = arith.constant 0 : i32
    %c0_i32_1 = arith.constant 0 : i32
    return %c0_i32, %c0_i32_0 : i32, i32
  }
  func.func @transform_3(%arg0: i32) -> (i32, i32) {
    %c0_i32 = arith.constant 0 : i32
    %c0_i32_0 = arith.constant 0 : i32
    %c0_i32_1 = arith.constant 0 : i32
    return %c0_i32, %c0_i32_0 : i32, i32
  }
  func.func @transform_4(%arg0: i32) -> (i32, i32) {
    %c0_i32 = arith.constant 0 : i32
    %c0_i32_0 = arith.constant 0 : i32
    %c0_i32_1 = arith.constant 0 : i32
    return %c0_i32, %c0_i32_0 : i32, i32
  }
  func.func @transform_5(%arg0: i32) -> (i32, i32) {
    %c0_i32 = arith.constant 0 : i32
    %c0_i32_0 = arith.constant 0 : i32
    %c0_i32_1 = arith.constant 0 : i32
    return %c0_i32, %c0_i32_0 : i32, i32
  }
  func.func @transform_6(%arg0: i32) -> (i32, i32) {
    %c0_i32 = arith.constant 0 : i32
    %c0_i32_0 = arith.constant 0 : i32
    %c0_i32_1 = arith.constant 0 : i32
    return %c0_i32, %c0_i32_0 : i32, i32
  }
  func.func @transform_7(%arg0: i32) -> (i32, i32, i32) {
    %c0_i32 = arith.constant 0 : i32
    %c0_i32_0 = arith.constant 0 : i32
    %c0_i32_1 = arith.constant 0 : i32
    return %arg0, %c0_i32, %c0_i32_0 : i32, i32, i32
  }
}

</mosaic_0001>

<bundles_post_ra>
// kernel: simple_cnn_forward.3
= control target key start
LH: loop header
LB: loop body
LE: loop exit
PB: predicated region body
PF: predicated region fallthrough
CT: control target
= control target key end

     0   :  { %v1410_v30 = vmov 1983009808   ;;  %v296_v32 = vlaneseq  ;;  %s2291_s0 = inlined_call_operand.vmem [shape: f32[2,2048], index: 0, kind: input, shape index: {}]   ;;  %s2292_s1 = inlined_call_operand.vmem [shape: f32[2048,128], index: 1, kind: input, shape index: {}]   ;;  %s2293_s2 = inlined_call_operand.vmem [shape: f32[1,128], index: 2, kind: input, shape index: {}]   ;;  %s2294_s3 = inlined_call_operand.vmem [shape: f32[128,10], index: 3, kind: input, shape index: {}]   ;;  %s2295_s4 = inlined_call_operand.vmem [shape: f32[1,10], index: 4, kind: input, shape index: {}]   ;;  %s2296_s5 = inlined_call_operand.hbm [shape: f32[2,10], index: 5, kind: output, shape index: {}]  }
   0x1   :  { %v56_v0 = vld [vmem:[%s2292_s1 + $0xf8] sm:$0xff]  ;;  %v55_v4 = vld [vmem:[%s2292_s1 + $0xf0] sm:$0xff]  ;;  %v54_v8 = vld [vmem:[%s2292_s1 + $0xe8] sm:$0xff]  ;;  %v294_v31 = vunpack.c.l.s4 %v1410_v30 }
   0x2   :  { %v88_v1 = vld [vmem:[%s2292_s1 + $0x1f8] sm:$0xff]  ;;  %1048 = vmatprep.subr.mxu0 %v56_v0  ;;  %v87_v5 = vld [vmem:[%s2292_s1 + $0x1f0] sm:$0xff]  ;;  %v86_v9 = vld [vmem:[%s2292_s1 + $0x1e8] sm:$0xff]  ;;  %v297_v42 = vshrl.u32 %v296_v32, 7 }
   0x3   :  { %v40_v2 = vld [vmem:[%s2292_s1 + $0x78] sm:$0xff]  ;;  %1083 = vmatprep.subr.mxu1 %v88_v1  ;;  %v39_v6 = vld [vmem:[%s2292_s1 + $0x70] sm:$0xff]  ;;  %v38_v10 = vld [vmem:[%s2292_s1 + $0x68] sm:$0xff]  ;;  %v295_v41 = vunpack.c.0.s8 %v294_v31 }
   0x4   :  { %v72_v3 = vld [vmem:[%s2292_s1 + $0x178] sm:$0xff]  ;;  %1049 = vmatpush3.msra.mxu0 %v40_v2  ;;  %v71_v7 = vld [vmem:[%s2292_s1 + $0x170] sm:$0xff]  ;;  %v70_v11 = vld [vmem:[%s2292_s1 + $0x168] sm:$0xff] }
   0x5   :  { %1084 = vmatpush3.msra.mxu1 %v72_v3  ;;  %1050 = vmatprep.subr.mxu0 %v55_v4  ;;  %v53_v12 = vld [vmem:[%s2292_s1 + $0xe0] sm:$0xff]  ;;  %v52_v16 = vld [vmem:[%s2292_s1 + $0xd8] sm:$0xff]  ;;  %v51_v20 = vld [vmem:[%s2292_s1 + $0xd0] sm:$0xff]  ;;  %v1582_v51 = vsub.s32 %v295_v41, %v297_v42 }
   0x6   :  { %1085 = vmatprep.subr.mxu1 %v87_v5  ;;  %1051 = vmatpush3.msra.mxu0 %v39_v6  ;;  %v85_v13 = vld [vmem:[%s2292_s1 + $0x1e0] sm:$0xff]  ;;  %v84_v17 = vld [vmem:[%s2292_s1 + $0x1d8] sm:$0xff]  ;;  %v83_v21 = vld [vmem:[%s2292_s1 + $0x1d0] sm:$0xff] }
   0x7   :  { %1086 = vmatpush3.msra.mxu1 %v71_v7  ;;  %1052 = vmatprep.subr.mxu0 %v54_v8  ;;  %v37_v14 = vld [vmem:[%s2292_s1 + $0x60] sm:$0xff]  ;;  %v36_v18 = vld [vmem:[%s2292_s1 + $0x58] sm:$0xff]  ;;  %v35_v22 = vld [vmem:[%s2292_s1 + $0x50] sm:$0xff] }
   0x8   :  { %1087 = vmatprep.subr.mxu1 %v86_v9  ;;  %v69_v15 = vld [vmem:[%s2292_s1 + $0x160] sm:$0xff]  ;;  %1053 = vmatpush3.msra.mxu0 %v38_v10  ;;  %v68_v19 = vld [vmem:[%s2292_s1 + $0x158] sm:$0xff]  ;;  %v67_v23 = vld [vmem:[%s2292_s1 + $0x150] sm:$0xff] }
   0x9   :  { %1088 = vmatpush3.msra.mxu1 %v70_v11  ;;  %1054 = vmatprep.subr.mxu0 %v53_v12  ;;  %v50_v24 = vld [vmem:[%s2292_s1 + $0xc8] sm:$0xff]  ;;  %v49_v28 = vld [vmem:[%s2292_s1 + $0xc0] sm:$0xff]  ;;  %v48_v35 = vld [vmem:[%s2292_s1 + $0xb8] sm:$0xff] }
   0xa   :  { %1089 = vmatprep.subr.mxu1 %v85_v13  ;;  %1055 = vmatpush3.msra.mxu0 %v37_v14  ;;  %v82_v25 = vld [vmem:[%s2292_s1 + $0x1c8] sm:$0xff]  ;;  %v81_v29 = vld [vmem:[%s2292_s1 + $0x1c0] sm:$0xff]  ;;  %v80_v36 = vld [vmem:[%s2292_s1 + $0x1b8] sm:$0xff] }
   0xb   :  { %1090 = vmatpush3.msra.mxu1 %v69_v15  ;;  %1056 = vmatprep.subr.mxu0 %v52_v16  ;;  %v34_v26 = vld [vmem:[%s2292_s1 + $0x48] sm:$0xff]  ;;  %v33_v33 = vld [vmem:[%s2292_s1 + $0x40] sm:$0xff]  ;;  %v32_v37 = vld [vmem:[%s2292_s1 + $0x38] sm:$0xff] }
   0xc   :  { %1091 = vmatprep.subr.mxu1 %v84_v17  ;;  %1057 = vmatpush3.msra.mxu0 %v36_v18  ;;  %v66_v27 = vld [vmem:[%s2292_s1 + $0x148] sm:$0xff]  ;;  %v65_v34 = vld [vmem:[%s2292_s1 + $0x140] sm:$0xff]  ;;  %v64_v38 = vld [vmem:[%s2292_s1 + $0x138] sm:$0xff] }
   0xd   :  { %1092 = vmatpush3.msra.mxu1 %v68_v19  ;;  %1058 = vmatprep.subr.mxu0 %v51_v20  ;;  %v47_v39 = vld [vmem:[%s2292_s1 + $0xb0] sm:$0xff]  ;;  %v46_v45 = vld [vmem:[%s2292_s1 + $0xa8] sm:$0xff]  ;;  %v45_v49 = vld [vmem:[%s2292_s1 + $0xa0] sm:$0xff] }
   0xe   :  { %1093 = vmatprep.subr.mxu1 %v83_v21  ;;  %1059 = vmatpush3.msra.mxu0 %v35_v22  ;;  %v79_v40 = vld [vmem:[%s2292_s1 + $0x1b0] sm:$0xff]  ;;  %v78_v46 = vld [vmem:[%s2292_s1 + $0x1a8] sm:$0xff]  ;;  %v77_v50 = vld [vmem:[%s2292_s1 + $0x1a0] sm:$0xff] }
   0xf   :  { %1094 = vmatpush3.msra.mxu1 %v67_v23  ;;  %1060 = vmatprep.subr.mxu0 %v50_v24  ;;  %v31_v43 = vld [vmem:[%s2292_s1 + $0x30] sm:$0xff]  ;;  %v30_v47 = vld [vmem:[%s2292_s1 + $0x28] sm:$0xff]  ;;  %v29_v52 = vld [vmem:[%s2292_s1 + $0x20] sm:$0xff] }
  0x10   :  { %1095 = vmatprep.subr.mxu1 %v82_v25  ;;  %1061 = vmatpush3.msra.mxu0 %v34_v26  ;;  %v63_v44 = vld [vmem:[%s2292_s1 + $0x130] sm:$0xff]  ;;  %v62_v48 = vld [vmem:[%s2292_s1 + $0x128] sm:$0xff]  ;;  %v61_v53 = vld [vmem:[%s2292_s1 + $0x120] sm:$0xff] }
  0x11   :  { %1096 = vmatpush3.msra.mxu1 %v66_v27  ;;  %1062 = vmatprep.subr.mxu0 %v49_v28  ;;  %v21_v54 = vld [vmem:[%s2291_s0] sm:$0xff]  ;;  %v44_v55 = vld [vmem:[%s2292_s1 + $0x98] sm:$0xff]  ;;  %v43_v60 = vld [vmem:[%s2292_s1 + $0x90] sm:$0xff] }
  0x12   :  { %1097 = vmatprep.subr.mxu1 %v81_v29  ;;  %1063 = vmatpush3.msra.mxu0 %v33_v33  ;;  %v76_v56 = vld [vmem:[%s2292_s1 + $0x198] sm:$0xff]  ;;  %v292_v57 = vcombine.high %v21_v54, %v21_v54  ;;  %v75_v61 = vld [vmem:[%s2292_s1 + $0x190] sm:$0xff]  ;;  %v299_v62 = vrot.slane %v21_v54, %v1582_v51  ;;  %v42_v1 = vld [vmem:[%s2292_s1 + $0x88] sm:$0xff] }
  0x13   :  { %1098 = vmatpush3.msra.mxu1 %v65_v34  ;;  %1064 = vmatprep.subr.mxu0 %v48_v35  ;;  %v28_v58 = vld [vmem:[%s2292_s1 + $0x18] sm:$0xff]  ;;  %v27_v63 = vld [vmem:[%s2292_s1 + $0x10] sm:$0xff]  ;;  %v74_v2 = vld [vmem:[%s2292_s1 + $0x188] sm:$0xff] }
  0x14   :  { %1099 = vmatprep.subr.mxu1 %v80_v36  ;;  %1065 = vmatpush3.msra.mxu0 %v32_v37  ;;  %v60_v59 = vld [vmem:[%s2292_s1 + $0x118] sm:$0xff]  ;;  %v59_v0 = vld [vmem:[%s2292_s1 + $0x110] sm:$0xff]  ;;  %v306_v3 = vrot.slane %v292_v57, %v1582_v51  ;;  %v26_v4 = vld [vmem:[%s2292_s1 + $0x8] sm:$0xff]  ;;  %v307_v8 = vcombine.high %v299_v62, %v299_v62 }
  0x15   :  { %1100 = vmatpush3.msra.mxu1 %v64_v38  ;;  %1066 = vmatprep.subr.mxu0 %v47_v39  ;;  %v58_v5 = vld [vmem:[%s2292_s1 + $0x108] sm:$0xff]  ;;  %v41_v6 = vld [vmem:[%s2292_s1 + $0x80] sm:$0xff]  ;;  %v120_v12 = vld [vmem:[%s2292_s1 + $0x2f8] sm:$0xff] }
  0x16   :  { %1101 = vmatprep.subr.mxu1 %v79_v40  ;;  %1067 = vmatpush3.msra.mxu0 %v31_v43  ;;  %v73_v7 = vld [vmem:[%s2292_s1 + $0x180] sm:$0xff]  ;;  %v308_v11 = vcombine.high %v306_v3, %v306_v3  ;;  %v152_v13 = vld [vmem:[%s2292_s1 + $0x3f8] sm:$0xff]  ;;  %v119_v16 = vld [vmem:[%s2292_s1 + $0x2f0] sm:$0xff] }
  0x17   :  { %1102 = vmatpush3.msra.mxu1 %v63_v44  ;;  %1068 = vmatprep.subr.mxu0 %v46_v45  ;;  %v25_v9 = vld [vmem:[%s2292_s1] sm:$0xff]  ;;  %v104_v14 = vld [vmem:[%s2292_s1 + $0x278] sm:$0xff]  ;;  %v151_v17 = vld [vmem:[%s2292_s1 + $0x3f0] sm:$0xff] }
  0x18   :  { %1103 = vmatprep.subr.mxu1 %v78_v46  ;;  %1069 = vmatpush3.msra.mxu0 %v30_v47  ;;  %v57_v10 = vld [vmem:[%s2292_s1 + $0x100] sm:$0xff]  ;;  %v136_v15 = vld [vmem:[%s2292_s1 + $0x378] sm:$0xff]  ;;  %v103_v18 = vld [vmem:[%s2292_s1 + $0x270] sm:$0xff] }
  0x19   :  { %1104 = vmatpush3.msra.mxu1 %v62_v48  ;;  %1070 = vmatprep.subr.mxu0 %v45_v49  ;;  %v135_v19 = vld [vmem:[%s2292_s1 + $0x370] sm:$0xff]  ;;  %v118_v20 = vld [vmem:[%s2292_s1 + $0x2e8] sm:$0xff]  ;;  %v117_v24 = vld [vmem:[%s2292_s1 + $0x2e0] sm:$0xff] }
  0x1a   :  { %1105 = vmatprep.subr.mxu1 %v77_v50  ;;  %1071 = vmatpush3.msra.mxu0 %v29_v52  ;;  %v150_v21 = vld [vmem:[%s2292_s1 + $0x3e8] sm:$0xff]  ;;  %v149_v25 = vld [vmem:[%s2292_s1 + $0x3e0] sm:$0xff]  ;;  %v116_v28 = vld [vmem:[%s2292_s1 + $0x2d8] sm:$0xff] }
  0x1b   :  { %1106 = vmatpush3.msra.mxu1 %v61_v53  ;;  %1072 = vmatprep.subr.mxu0 %v44_v55  ;;  %v102_v22 = vld [vmem:[%s2292_s1 + $0x268] sm:$0xff]  ;;  %v101_v26 = vld [vmem:[%s2292_s1 + $0x260] sm:$0xff]  ;;  %v148_v29 = vld [vmem:[%s2292_s1 + $0x3d8] sm:$0xff] }
  0x1c   :  { %1107 = vmatprep.subr.mxu1 %v76_v56  ;;  %1073 = vmatpush3.msra.mxu0 %v28_v58  ;;  %v134_v23 = vld [vmem:[%s2292_s1 + $0x368] sm:$0xff]  ;;  %v133_v27 = vld [vmem:[%s2292_s1 + $0x360] sm:$0xff]  ;;  %v100_v30 = vld [vmem:[%s2292_s1 + $0x258] sm:$0xff] }
  0x1d   :  { %1108 = vmatpush3.msra.mxu1 %v60_v59  ;;  %1074 = vmatprep.subr.mxu0 %v43_v60  ;;  %v132_v31 = vld [vmem:[%s2292_s1 + $0x358] sm:$0xff]  ;;  %v115_v32 = vld [vmem:[%s2292_s1 + $0x2d0] sm:$0xff]  ;;  %v114_v36 = vld [vmem:[%s2292_s1 + $0x2c8] sm:$0xff] }
  0x1e   :  { %1109 = vmatprep.subr.mxu1 %v75_v61  ;;  %1075 = vmatpush3.msra.mxu0 %v27_v63  ;;  %v147_v33 = vld [vmem:[%s2292_s1 + $0x3d0] sm:$0xff]  ;;  %v146_v37 = vld [vmem:[%s2292_s1 + $0x3c8] sm:$0xff]  ;;  %v113_v40 = vld [vmem:[%s2292_s1 + $0x2c0] sm:$0xff] }
  0x1f   :  { %1110 = vmatpush3.msra.mxu1 %v59_v0  ;;  %1076 = vmatprep.subr.mxu0 %v42_v1  ;;  %v99_v34 = vld [vmem:[%s2292_s1 + $0x250] sm:$0xff]  ;;  %v98_v38 = vld [vmem:[%s2292_s1 + $0x248] sm:$0xff]  ;;  %v145_v41 = vld [vmem:[%s2292_s1 + $0x3c0] sm:$0xff] }
  0x20   :  { %1111 = vmatprep.subr.mxu1 %v74_v2  ;;  %1077 = vmatpush3.msra.mxu0 %v26_v4  ;;  %v131_v35 = vld [vmem:[%s2292_s1 + $0x350] sm:$0xff]  ;;  %v130_v39 = vld [vmem:[%s2292_s1 + $0x348] sm:$0xff]  ;;  %v97_v42 = vld [vmem:[%s2292_s1 + $0x240] sm:$0xff] }
  0x21   :  { %1112 = vmatpush3.msra.mxu1 %v58_v5  ;;  %1078 = vmatprep.subr.mxu0 %v41_v6  ;;  %v129_v43 = vld [vmem:[%s2292_s1 + $0x340] sm:$0xff]  ;;  %v112_v44 = vld [vmem:[%s2292_s1 + $0x2b8] sm:$0xff]  ;;  %v111_v48 = vld [vmem:[%s2292_s1 + $0x2b0] sm:$0xff] }
  0x22   :  { %1113 = vmatprep.subr.mxu1 %v73_v7  ;;  %1079 = vmatpush3.msra.mxu0 %v25_v9  ;;  %v144_v45 = vld [vmem:[%s2292_s1 + $0x3b8] sm:$0xff]  ;;  %v143_v49 = vld [vmem:[%s2292_s1 + $0x3b0] sm:$0xff]  ;;  %v110_v53 = vld [vmem:[%s2292_s1 + $0x2a8] sm:$0xff] }
  0x23   :  { %440 = vmatprep.mubr.f32.mxu0 %v307_v8  ;;  %1114 = vmatpush3.msra.mxu1 %v57_v10  ;;  %v96_v46 = vld [vmem:[%s2292_s1 + $0x238] sm:$0xff]  ;;  %v95_v50 = vld [vmem:[%s2292_s1 + $0x230] sm:$0xff]  ;;  %v142_v54 = vld [vmem:[%s2292_s1 + $0x3a8] sm:$0xff] }
  0x24   :  { %441 = vmatmul.mubr.f32.vlgmr.msra.gmra.mxu0 %v299_v62  ;;  %510 = vmatprep.mubr.f32.mxu1 %v308_v11  ;;  %v128_v47 = vld [vmem:[%s2292_s1 + $0x338] sm:$0xff]  ;;  %v127_v52 = vld [vmem:[%s2292_s1 + $0x330] sm:$0xff]  ;;  %v94_v55 = vld [vmem:[%s2292_s1 + $0x228] sm:$0xff] }
  0x25   :  { %1118 = vmatprep.subr.mxu0 %v120_v12  ;;  %1153 = vmatprep.subr.mxu1 %v152_v13  ;;  %v126_v56 = vld [vmem:[%s2292_s1 + $0x328] sm:$0xff]  ;;  %v109_v58 = vld [vmem:[%s2292_s1 + $0x2a0] sm:$0xff]  ;;  %v108_v62 = vld [vmem:[%s2292_s1 + $0x298] sm:$0xff] }
  0x26   :  { %511 = vmatmul.mubr.f32.vlgmr.msra.gmra.mxu1 %v306_v3  ;;  %1119 = vmatpush3.msra.mxu0 %v104_v14  ;;  %v22_v57 = vld [vmem:[%s2291_s0 + $0x8] sm:$0xff]  ;;  %v141_v59 = vld [vmem:[%s2292_s1 + $0x3a0] sm:$0xff]  ;;  %v140_v63 = vld [vmem:[%s2292_s1 + $0x398] sm:$0xff] }
  0x27   :  { %1154 = vmatpush3.msra.mxu1 %v136_v15  ;;  %1120 = vmatprep.subr.mxu0 %v119_v16  ;;  %v93_v60 = vld [vmem:[%s2292_s1 + $0x220] sm:$0xff]  ;;  %v309_v0 = vcombine.high %v22_v57, %v22_v57  ;;  %v92_v1 = vld [vmem:[%s2292_s1 + $0x218] sm:$0xff]  ;;  %v107_v3 = vld [vmem:[%s2292_s1 + $0x290] sm:$0xff]  ;;  %v316_v5 = vrot.slane %v22_v57, %v1582_v51 }
  0x28   :  { %1155 = vmatprep.subr.mxu1 %v151_v17  ;;  %1121 = vmatpush3.msra.mxu0 %v103_v18  ;;  %v125_v61 = vld [vmem:[%s2292_s1 + $0x320] sm:$0xff]  ;;  %v124_v2 = vld [vmem:[%s2292_s1 + $0x318] sm:$0xff]  ;;  %v139_v4 = vld [vmem:[%s2292_s1 + $0x390] sm:$0xff] }
  0x29   :  { %1156 = vmatpush3.msra.mxu1 %v135_v19  ;;  %1122 = vmatprep.subr.mxu0 %v118_v20  ;;  %v91_v6 = vld [vmem:[%s2292_s1 + $0x210] sm:$0xff]  ;;  %v106_v8 = vld [vmem:[%s2292_s1 + $0x288] sm:$0xff]  ;;  %v323_v10 = vrot.slane %v309_v0, %v1582_v51  ;;  %v105_v13 = vld [vmem:[%s2292_s1 + $0x280] sm:$0xff]  ;;  %v324_v15 = vcombine.high %v316_v5, %v316_v5 }
  0x2a   :  { %1157 = vmatprep.subr.mxu1 %v150_v21  ;;  %1123 = vmatpush3.msra.mxu0 %v102_v22  ;;  %v123_v7 = vld [vmem:[%s2292_s1 + $0x310] sm:$0xff]  ;;  %v138_v9 = vld [vmem:[%s2292_s1 + $0x388] sm:$0xff]  ;;  %v137_v14 = vld [vmem:[%s2292_s1 + $0x380] sm:$0xff] }
  0x2b   :  { %1158 = vmatpush3.msra.mxu1 %v134_v23  ;;  %1124 = vmatprep.subr.mxu0 %v117_v24  ;;  %v90_v11 = vld [vmem:[%s2292_s1 + $0x208] sm:$0xff]  ;;  %v89_v16 = vld [vmem:[%s2292_s1 + $0x200] sm:$0xff]  ;;  %v325_v18 = vcombine.high %v323_v10, %v323_v10  ;;  %v184_v19 = vld [vmem:[%s2292_s1 + $0x4f8] sm:$0xff] }
  0x2c   :  { %1159 = vmatprep.subr.mxu1 %v149_v25  ;;  %1125 = vmatpush3.msra.mxu0 %v101_v26  ;;  %v122_v12 = vld [vmem:[%s2292_s1 + $0x308] sm:$0xff]  ;;  %v121_v17 = vld [vmem:[%s2292_s1 + $0x300] sm:$0xff]  ;;  %v216_v20 = vld [vmem:[%s2292_s1 + $0x5f8] sm:$0xff] }
  0x2d   :  { %1160 = vmatpush3.msra.mxu1 %v133_v27  ;;  %1126 = vmatprep.subr.mxu0 %v116_v28  ;;  %v168_v21 = vld [vmem:[%s2292_s1 + $0x478] sm:$0xff]  ;;  %v183_v23 = vld [vmem:[%s2292_s1 + $0x4f0] sm:$0xff]  ;;  %v182_v27 = vld [vmem:[%s2292_s1 + $0x4e8] sm:$0xff] }
  0x2e   :  { %1161 = vmatprep.subr.mxu1 %v148_v29  ;;  %1127 = vmatpush3.msra.mxu0 %v100_v30  ;;  %v200_v22 = vld [vmem:[%s2292_s1 + $0x578] sm:$0xff]  ;;  %v215_v24 = vld [vmem:[%s2292_s1 + $0x5f0] sm:$0xff]  ;;  %v214_v28 = vld [vmem:[%s2292_s1 + $0x5e8] sm:$0xff] }
  0x2f   :  { %1162 = vmatpush3.msra.mxu1 %v132_v31  ;;  %1128 = vmatprep.subr.mxu0 %v115_v32  ;;  %v167_v25 = vld [vmem:[%s2292_s1 + $0x470] sm:$0xff]  ;;  %v166_v29 = vld [vmem:[%s2292_s1 + $0x468] sm:$0xff]  ;;  %v181_v31 = vld [vmem:[%s2292_s1 + $0x4e0] sm:$0xff] }
  0x30   :  { %1163 = vmatprep.subr.mxu1 %v147_v33  ;;  %1129 = vmatpush3.msra.mxu0 %v99_v34  ;;  %v199_v26 = vld [vmem:[%s2292_s1 + $0x570] sm:$0xff]  ;;  %v198_v30 = vld [vmem:[%s2292_s1 + $0x568] sm:$0xff]  ;;  %v213_v32 = vld [vmem:[%s2292_s1 + $0x5e0] sm:$0xff] }
  0x31   :  { %1164 = vmatpush3.msra.mxu1 %v131_v35  ;;  %1130 = vmatprep.subr.mxu0 %v114_v36  ;;  %v165_v33 = vld [vmem:[%s2292_s1 + $0x460] sm:$0xff]  ;;  %v180_v35 = vld [vmem:[%s2292_s1 + $0x4d8] sm:$0xff]  ;;  %v207_v57 = vld [vmem:[%s2292_s1 + $0x5b0] sm:$0xff] }
  0x32   :  { %1165 = vmatprep.subr.mxu1 %v146_v37  ;;  %1131 = vmatpush3.msra.mxu0 %v98_v38  ;;  %v197_v34 = vld [vmem:[%s2292_s1 + $0x560] sm:$0xff]  ;;  %v212_v36 = vld [vmem:[%s2292_s1 + $0x5d8] sm:$0xff] }
  0x33   :  { %1166 = vmatpush3.msra.mxu1 %v130_v39  ;;  %1132 = vmatprep.subr.mxu0 %v113_v40  ;;  %v164_v37 = vld [vmem:[%s2292_s1 + $0x458] sm:$0xff]  ;;  %v179_v39 = vld [vmem:[%s2292_s1 + $0x4d0] sm:$0xff] }
  0x34   :  { %1167 = vmatprep.subr.mxu1 %v145_v41  ;;  %1133 = vmatpush3.msra.mxu0 %v97_v42  ;;  %v196_v38 = vld [vmem:[%s2292_s1 + $0x558] sm:$0xff]  ;;  %v211_v40 = vld [vmem:[%s2292_s1 + $0x5d0] sm:$0xff] }
  0x35   :  { %1168 = vmatpush3.msra.mxu1 %v129_v43  ;;  %1134 = vmatprep.subr.mxu0 %v112_v44  ;;  %v163_v41 = vld [vmem:[%s2292_s1 + $0x450] sm:$0xff]  ;;  %v178_v43 = vld [vmem:[%s2292_s1 + $0x4c8] sm:$0xff] }
  0x36   :  { %1169 = vmatprep.subr.mxu1 %v144_v45  ;;  %1135 = vmatpush3.msra.mxu0 %v96_v46  ;;  %v195_v42 = vld [vmem:[%s2292_s1 + $0x550] sm:$0xff]  ;;  %v210_v44 = vld [vmem:[%s2292_s1 + $0x5c8] sm:$0xff] }
  0x37   :  { %1170 = vmatpush3.msra.mxu1 %v128_v47  ;;  %1136 = vmatprep.subr.mxu0 %v111_v48  ;;  %v162_v45 = vld [vmem:[%s2292_s1 + $0x448] sm:$0xff]  ;;  %v177_v47 = vld [vmem:[%s2292_s1 + $0x4c0] sm:$0xff] }
  0x38   :  { %1171 = vmatprep.subr.mxu1 %v143_v49  ;;  %1137 = vmatpush3.msra.mxu0 %v95_v50  ;;  %v194_v46 = vld [vmem:[%s2292_s1 + $0x548] sm:$0xff]  ;;  %v209_v48 = vld [vmem:[%s2292_s1 + $0x5c0] sm:$0xff] }
  0x39   :  { %1172 = vmatpush3.msra.mxu1 %v127_v52  ;;  %1138 = vmatprep.subr.mxu0 %v110_v53  ;;  %v161_v49 = vld [vmem:[%s2292_s1 + $0x440] sm:$0xff]  ;;  %v176_v52 = vld [vmem:[%s2292_s1 + $0x4b8] sm:$0xff] }
  0x3a   :  { %1173 = vmatprep.subr.mxu1 %v142_v54  ;;  %1139 = vmatpush3.msra.mxu0 %v94_v55  ;;  %v193_v50 = vld [vmem:[%s2292_s1 + $0x540] sm:$0xff]  ;;  %v208_v53 = vld [vmem:[%s2292_s1 + $0x5b8] sm:$0xff] }
  0x3b   :  { %1174 = vmatpush3.msra.mxu1 %v126_v56  ;;  %1140 = vmatprep.subr.mxu0 %v109_v58  ;;  %v160_v54 = vld [vmem:[%s2292_s1 + $0x438] sm:$0xff]  ;;  %v175_v56 = vld [vmem:[%s2292_s1 + $0x4b0] sm:$0xff] }
  0x3c   :  { %1175 = vmatprep.subr.mxu1 %v141_v59  ;;  %1141 = vmatpush3.msra.mxu0 %v93_v60  ;;  %v192_v55 = vld [vmem:[%s2292_s1 + $0x538] sm:$0xff]  ;;  %v159_v58 = vld [vmem:[%s2292_s1 + $0x430] sm:$0xff]  ;;  %v174_v60 = vld [vmem:[%s2292_s1 + $0x4a8] sm:$0xff] }
  0x3d   :  { %1176 = vmatpush3.msra.mxu1 %v125_v61  ;;  %1142 = vmatprep.subr.mxu0 %v108_v62  ;;  %v191_v59 = vld [vmem:[%s2292_s1 + $0x530] sm:$0xff]  ;;  %v206_v61 = vld [vmem:[%s2292_s1 + $0x5a8] sm:$0xff] }
  0x3e   :  { %1177 = vmatprep.subr.mxu1 %v140_v63  ;;  %1143 = vmatpush3.msra.mxu0 %v92_v1 }
  0x3f   :  { %1178 = vmatpush3.msra.mxu1 %v124_v2  ;;  %1144 = vmatprep.subr.mxu0 %v107_v3 }
  0x40   :  { %1179 = vmatprep.subr.mxu1 %v139_v4  ;;  %1145 = vmatpush3.msra.mxu0 %v91_v6 }
  0x41   :  { %1180 = vmatpush3.msra.mxu1 %v123_v7  ;;  %1146 = vmatprep.subr.mxu0 %v106_v8 }
  0x42   :  { %1181 = vmatprep.subr.mxu1 %v138_v9  ;;  %1147 = vmatpush3.msra.mxu0 %v90_v11 }
  0x43   :  { %1182 = vmatpush3.msra.mxu1 %v122_v12  ;;  %1148 = vmatprep.subr.mxu0 %v105_v13 }
  0x44   :  { %1183 = vmatprep.subr.mxu1 %v137_v14  ;;  %1149 = vmatpush3.msra.mxu0 %v89_v16 }
  0x45   :  { %580 = vmatprep.mubr.f32.mxu0 %v324_v15  ;;  %1184 = vmatpush3.msra.mxu1 %v121_v17 }
  0x46   :  { %581 = vmatmul.mubr.f32.vlgmr.msra.gmra.mxu0 %v316_v5  ;;  %650 = vmatprep.mubr.f32.mxu1 %v325_v18 }
  0x47   :  { %1188 = vmatprep.subr.mxu0 %v184_v19  ;;  %1223 = vmatprep.subr.mxu1 %v216_v20 }
  0x48   :  { %651 = vmatmul.mubr.f32.vlgmr.msra.gmra.mxu1 %v323_v10  ;;  %1189 = vmatpush3.msra.mxu0 %v168_v21 }
  0x49   :  { %1224 = vmatpush3.msra.mxu1 %v200_v22  ;;  %1190 = vmatprep.subr.mxu0 %v183_v23 }
  0x4a   :  { %1225 = vmatprep.subr.mxu1 %v215_v24  ;;  %1191 = vmatpush3.msra.mxu0 %v167_v25 }
  0x4b   :  { %1226 = vmatpush3.msra.mxu1 %v199_v26  ;;  %1192 = vmatprep.subr.mxu0 %v182_v27 }
  0x4c   :  { %1227 = vmatprep.subr.mxu1 %v214_v28  ;;  %1193 = vmatpush3.msra.mxu0 %v166_v29 }
  0x4d   :  { %1228 = vmatpush3.msra.mxu1 %v198_v30  ;;  %1194 = vmatprep.subr.mxu0 %v181_v31 }
  0x4e   :  { %1229 = vmatprep.subr.mxu1 %v213_v32  ;;  %1195 = vmatpush3.msra.mxu0 %v165_v33 }
  0x4f   :  { %1230 = vmatpush3.msra.mxu1 %v197_v34  ;;  %1196 = vmatprep.subr.mxu0 %v180_v35 }
  0x50   :  { %1231 = vmatprep.subr.mxu1 %v212_v36  ;;  %1197 = vmatpush3.msra.mxu0 %v164_v37 }
  0x51   :  { %1232 = vmatpush3.msra.mxu1 %v196_v38  ;;  %1198 = vmatprep.subr.mxu0 %v179_v39 }
  0x52   :  { %1233 = vmatprep.subr.mxu1 %v211_v40  ;;  %1199 = vmatpush3.msra.mxu0 %v163_v41 }
  0x53   :  { %1234 = vmatpush3.msra.mxu1 %v195_v42  ;;  %1200 = vmatprep.subr.mxu0 %v178_v43 }
  0x54   :  { %1235 = vmatprep.subr.mxu1 %v210_v44  ;;  %1201 = vmatpush3.msra.mxu0 %v162_v45 }
  0x55   :  { %1236 = vmatpush3.msra.mxu1 %v194_v46  ;;  %1202 = vmatprep.subr.mxu0 %v177_v47 }
  0x56   :  { %1237 = vmatprep.subr.mxu1 %v209_v48  ;;  %1203 = vmatpush3.msra.mxu0 %v161_v49 }
  0x57   :  { %1238 = vmatpush3.msra.mxu1 %v193_v50  ;;  %1204 = vmatprep.subr.mxu0 %v176_v52 }
  0x58   :  { %1239 = vmatprep.subr.mxu1 %v208_v53  ;;  %1205 = vmatpush3.msra.mxu0 %v160_v54 }
  0x59   :  { %1240 = vmatpush3.msra.mxu1 %v192_v55 }
  0x5a   :  { %10 = vsyncpa [#allocation3], 0  ;;  %1206 = vmatprep.subr.mxu0 %v175_v56  ;;  %1241 = vmatprep.subr.mxu1 %v207_v57  ;;  %v158_v62 = vld [vmem:[%s2292_s1 + $0x428] sm:$0xff]  ;;  %v23_v0 = vld [vmem:[%s2291_s0 + $0x10] sm:$0xff]  ;;  %vm1412_vm0 = vmmov 0   ;;  %s1413_s17 = smov [#allocation2]  }
  0x5b   :  { %v190_v63 = vld [vmem:[%s2292_s1 + $0x528] sm:$0xff]  ;;  %1207 = vmatpush3.msra.mxu0 %v159_v58  ;;  %1242 = vmatpush3.msra.mxu1 %v191_v59  ;;  %v173_v1 = vld [vmem:[%s2292_s1 + $0x4a0] sm:$0xff]  ;;  %v172_v5 = vld [vmem:[%s2292_s1 + $0x498] sm:$0xff]  ;;  %v326_v7 = vcombine.high %v23_v0, %v23_v0  ;;  %v333_v12 = vrot.slane %v23_v0, %v1582_v51  ;;  %s1038_s18 = sshll.u32 %s1413_s17, 4  ;;  %vm1030_vm1 = vcmask 74752   ;;  %s1039_s18 = int_to_ptr.vmem [resolvable:$true] %s1038_s18 }
  0x5c   :  { %v205_v2 = vld [vmem:[%s2292_s1 + $0x5a0] sm:$0xff]  ;;  %1208 = vmatprep.subr.mxu0 %v174_v60  ;;  %1243 = vmatprep.subr.mxu1 %v206_v61  ;;  %v204_v6 = vld [vmem:[%s2292_s1 + $0x598] sm:$0xff]  ;;  %v171_v10 = vld [vmem:[%s2292_s1 + $0x490] sm:$0xff]  ;;  %s1388_s19 = scalar_lea.vmem %s1039_s18, 32  ;;  %p1393_p1 = scmp.lt.s32.totalorder %s1039_s18, %s1039_s18 }
  0x5d   :  { %v157_v3 = vld [vmem:[%s2292_s1 + $0x420] sm:$0xff]  ;;  %1209 = vmatpush3.msra.mxu0 %v158_v62  ;;  %1244 = vmatpush3.msra.mxu1 %v190_v63  ;;  %v156_v8 = vld [vmem:[%s2292_s1 + $0x418] sm:$0xff]  ;;  %v203_v11 = vld [vmem:[%s2292_s1 + $0x590] sm:$0xff]  ;;  %v340_v17 = vrot.slane %v326_v7, %v1582_v51  ;;  %v341_v22 = vcombine.high %v333_v12, %v333_v12  ;;  %p1389_p0 = scmp.ne.s32.totalorder %s1039_s18, %s1388_s19  ;;  %p1394_p2 = scmp.lt.s32.totalorder %s1388_s19, %s1388_s19 }
  0x5e   :  { %v189_v4 = vld [vmem:[%s2292_s1 + $0x520] sm:$0xff]  ;;  %1210 = vmatprep.subr.mxu0 %v173_v1  ;;  %1245 = vmatprep.subr.mxu1 %v205_v2  ;;  %v188_v9 = vld [vmem:[%s2292_s1 + $0x518] sm:$0xff]  ;;  %v155_v13 = vld [vmem:[%s2292_s1 + $0x410] sm:$0xff] }
  0x5f   :  { %1211 = vmatpush3.msra.mxu0 %v157_v3  ;;  %1246 = vmatpush3.msra.mxu1 %v189_v4  ;;  %v187_v14 = vld [vmem:[%s2292_s1 + $0x510] sm:$0xff]  ;;  %v170_v15 = vld [vmem:[%s2292_s1 + $0x488] sm:$0xff]  ;;  %v169_v20 = vld [vmem:[%s2292_s1 + $0x480] sm:$0xff]  ;;  %v342_v25 = vcombine.high %v340_v17, %v340_v17  ;;  %p1395_p3 = por %p1394_p2, %p1393_p1 }
  0x60   :  { %1212 = vmatprep.subr.mxu0 %v172_v5  ;;  %1247 = vmatprep.subr.mxu1 %v204_v6  ;;  %v202_v16 = vld [vmem:[%s2292_s1 + $0x588] sm:$0xff]  ;;  %v201_v21 = vld [vmem:[%s2292_s1 + $0x580] sm:$0xff]  ;;  %v248_v26 = vld [vmem:[%s2292_s1 + $0x6f8] sm:$0xff] }
  0x61   :  { %1213 = vmatpush3.msra.mxu0 %v156_v8  ;;  %1248 = vmatpush3.msra.mxu1 %v188_v9  ;;  %v154_v18 = vld [vmem:[%s2292_s1 + $0x408] sm:$0xff]  ;;  %v153_v23 = vld [vmem:[%s2292_s1 + $0x400] sm:$0xff]  ;;  %v280_v27 = vld [vmem:[%s2292_s1 + $0x7f8] sm:$0xff]  ;;  %p1396_p4 = pnand %p1395_p3, %p1389_p0 }
  0x62   :  { %1214 = vmatprep.subr.mxu0 %v171_v10  ;;  %1249 = vmatprep.subr.mxu1 %v203_v11  ;;  %v186_v19 = vld [vmem:[%s2292_s1 + $0x508] sm:$0xff]  ;;  %v185_v24 = vld [vmem:[%s2292_s1 + $0x500] sm:$0xff]  ;;  %v232_v28 = vld [vmem:[%s2292_s1 + $0x678] sm:$0xff] }
  0x63   :  { %1215 = vmatpush3.msra.mxu0 %v155_v13  ;;  %1250 = vmatpush3.msra.mxu1 %v187_v14  ;;  %v264_v29 = vld [vmem:[%s2292_s1 + $0x778] sm:$0xff]  ;;  %v247_v30 = vld [vmem:[%s2292_s1 + $0x6f0] sm:$0xff]  ;;  %v246_v34 = vld [vmem:[%s2292_s1 + $0x6e8] sm:$0xff] }
  0x64   :  { %1216 = vmatprep.subr.mxu0 %v170_v15  ;;  %1251 = vmatprep.subr.mxu1 %v202_v16  ;;  %v279_v31 = vld [vmem:[%s2292_s1 + $0x7f0] sm:$0xff]  ;;  %v278_v35 = vld [vmem:[%s2292_s1 + $0x7e8] sm:$0xff]  ;;  %v245_v38 = vld [vmem:[%s2292_s1 + $0x6e0] sm:$0xff] }
  0x65   :  { %1217 = vmatpush3.msra.mxu0 %v154_v18  ;;  %1252 = vmatpush3.msra.mxu1 %v186_v19  ;;  %v231_v32 = vld [vmem:[%s2292_s1 + $0x670] sm:$0xff]  ;;  %v230_v36 = vld [vmem:[%s2292_s1 + $0x668] sm:$0xff]  ;;  %v277_v39 = vld [vmem:[%s2292_s1 + $0x7e0] sm:$0xff] }
  0x66   :  { %1218 = vmatprep.subr.mxu0 %v169_v20  ;;  %1253 = vmatprep.subr.mxu1 %v201_v21  ;;  %v263_v33 = vld [vmem:[%s2292_s1 + $0x770] sm:$0xff]  ;;  %v262_v37 = vld [vmem:[%s2292_s1 + $0x768] sm:$0xff]  ;;  %v229_v40 = vld [vmem:[%s2292_s1 + $0x660] sm:$0xff] }
  0x67   :  { %1219 = vmatpush3.msra.mxu0 %v153_v23  ;;  %720 = vmatprep.mubr.f32.mxu0 %v341_v22  ;;  %v261_v41 = vld [vmem:[%s2292_s1 + $0x760] sm:$0xff]  ;;  %v244_v42 = vld [vmem:[%s2292_s1 + $0x6d8] sm:$0xff]  ;;  %v243_v46 = vld [vmem:[%s2292_s1 + $0x6d0] sm:$0xff] }
  0x68   :  { %1254 = vmatpush3.msra.mxu1 %v185_v24  ;;  %721 = vmatmul.mubr.f32.vlgmr.msra.gmra.mxu0 %v333_v12  ;;  %v276_v43 = vld [vmem:[%s2292_s1 + $0x7d8] sm:$0xff]  ;;  %v275_v47 = vld [vmem:[%s2292_s1 + $0x7d0] sm:$0xff]  ;;  %v242_v50 = vld [vmem:[%s2292_s1 + $0x6c8] sm:$0xff] }
  0x69   :  { %790 = vmatprep.mubr.f32.mxu1 %v342_v25  ;;  %1258 = vmatprep.subr.mxu0 %v248_v26  ;;  %v228_v44 = vld [vmem:[%s2292_s1 + $0x658] sm:$0xff]  ;;  %v227_v48 = vld [vmem:[%s2292_s1 + $0x650] sm:$0xff]  ;;  %v274_v52 = vld [vmem:[%s2292_s1 + $0x7c8] sm:$0xff] }
  0x6a   :  { %1293 = vmatprep.subr.mxu1 %v280_v27  ;;  %791 = vmatmul.mubr.f32.vlgmr.msra.gmra.mxu1 %v340_v17  ;;  %v260_v45 = vld [vmem:[%s2292_s1 + $0x758] sm:$0xff]  ;;  %v259_v49 = vld [vmem:[%s2292_s1 + $0x750] sm:$0xff]  ;;  %v226_v53 = vld [vmem:[%s2292_s1 + $0x648] sm:$0xff] }
  0x6b   :  { %1259 = vmatpush3.msra.mxu0 %v232_v28  ;;  %1294 = vmatpush3.msra.mxu1 %v264_v29  ;;  %v258_v54 = vld [vmem:[%s2292_s1 + $0x748] sm:$0xff]  ;;  %v241_v55 = vld [vmem:[%s2292_s1 + $0x6c0] sm:$0xff]  ;;  %v240_v59 = vld [vmem:[%s2292_s1 + $0x6b8] sm:$0xff] }
  0x6c   :  { %1260 = vmatprep.subr.mxu0 %v247_v30  ;;  %1295 = vmatprep.subr.mxu1 %v279_v31  ;;  %v273_v56 = vld [vmem:[%s2292_s1 + $0x7c0] sm:$0xff]  ;;  %v272_v60 = vld [vmem:[%s2292_s1 + $0x7b8] sm:$0xff]  ;;  %v239_v63 = vld [vmem:[%s2292_s1 + $0x6b0] sm:$0xff] }
  0x6d   :  { %1261 = vmatpush3.msra.mxu0 %v231_v32  ;;  %1296 = vmatpush3.msra.mxu1 %v263_v33  ;;  %v225_v57 = vld [vmem:[%s2292_s1 + $0x640] sm:$0xff]  ;;  %v224_v61 = vld [vmem:[%s2292_s1 + $0x638] sm:$0xff]  ;;  %v271_v0 = vld [vmem:[%s2292_s1 + $0x7b0] sm:$0xff]  ;;  %v1411_v33 = vmov 0.0  }
  0x6e   :  { %1262 = vmatprep.subr.mxu0 %v246_v34  ;;  %1297 = vmatprep.subr.mxu1 %v278_v35  ;;  %v257_v58 = vld [vmem:[%s2292_s1 + $0x740] sm:$0xff]  ;;  %v256_v62 = vld [vmem:[%s2292_s1 + $0x738] sm:$0xff]  ;;  %v223_v1 = vld [vmem:[%s2292_s1 + $0x630] sm:$0xff] }
  0x6f   :  { %1263 = vmatpush3.msra.mxu0 %v230_v36  ;;  %1298 = vmatpush3.msra.mxu1 %v262_v37  ;;  %v255_v2 = vld [vmem:[%s2292_s1 + $0x730] sm:$0xff]  ;;  %v238_v3 = vld [vmem:[%s2292_s1 + $0x6a8] sm:$0xff]  ;;  %v24_v5 = vld [vmem:[%s2291_s0 + $0x18] sm:$0xff] }
  0x70   :  { %1264 = vmatprep.subr.mxu0 %v245_v38  ;;  %1299 = vmatprep.subr.mxu1 %v277_v39  ;;  %v270_v4 = vld [vmem:[%s2292_s1 + $0x7a8] sm:$0xff]  ;;  %v237_v8 = vld [vmem:[%s2292_s1 + $0x6a0] sm:$0xff]  ;;  %v343_v12 = vcombine.high %v24_v5, %v24_v5  ;;  %v236_v13 = vld [vmem:[%s2292_s1 + $0x698] sm:$0xff]  ;;  %v350_v19 = vrot.slane %v24_v5, %v1582_v51 }
  0x71   :  { %1265 = vmatpush3.msra.mxu0 %v229_v40  ;;  %1300 = vmatpush3.msra.mxu1 %v261_v41  ;;  %v222_v6 = vld [vmem:[%s2292_s1 + $0x628] sm:$0xff]  ;;  %v269_v9 = vld [vmem:[%s2292_s1 + $0x7a0] sm:$0xff]  ;;  %v268_v14 = vld [vmem:[%s2292_s1 + $0x798] sm:$0xff] }
  0x72   :  { %1266 = vmatprep.subr.mxu0 %v244_v42  ;;  %1301 = vmatprep.subr.mxu1 %v276_v43  ;;  %v254_v7 = vld [vmem:[%s2292_s1 + $0x728] sm:$0xff]  ;;  %v221_v10 = vld [vmem:[%s2292_s1 + $0x620] sm:$0xff]  ;;  %v220_v15 = vld [vmem:[%s2292_s1 + $0x618] sm:$0xff]  ;;  %v357_v22 = vrot.slane %v343_v12, %v1582_v51  ;;  %v358_v28 = vcombine.high %v350_v19, %v350_v19 }
  0x73   :  { %1267 = vmatpush3.msra.mxu0 %v228_v44  ;;  %1302 = vmatpush3.msra.mxu1 %v260_v45  ;;  %v253_v11 = vld [vmem:[%s2292_s1 + $0x720] sm:$0xff]  ;;  %v252_v16 = vld [vmem:[%s2292_s1 + $0x718] sm:$0xff]  ;;  %v235_v17 = vld [vmem:[%s2292_s1 + $0x690] sm:$0xff] }
  0x74   :  { %1268 = vmatprep.subr.mxu0 %v243_v46  ;;  %1303 = vmatprep.subr.mxu1 %v275_v47  ;;  %v267_v18 = vld [vmem:[%s2292_s1 + $0x790] sm:$0xff]  ;;  %v234_v23 = vld [vmem:[%s2292_s1 + $0x688] sm:$0xff]  ;;  %v233_v26 = vld [vmem:[%s2292_s1 + $0x680] sm:$0xff]  ;;  %v359_v30 = vcombine.high %v357_v22, %v357_v22 }
  0x75   :  { %1269 = vmatpush3.msra.mxu0 %v227_v48  ;;  %1304 = vmatpush3.msra.mxu1 %v259_v49  ;;  %v219_v20 = vld [vmem:[%s2292_s1 + $0x610] sm:$0xff]  ;;  %v266_v24 = vld [vmem:[%s2292_s1 + $0x788] sm:$0xff]  ;;  %v265_v27 = vld [vmem:[%s2292_s1 + $0x780] sm:$0xff] }
  0x76   :  { %1270 = vmatprep.subr.mxu0 %v242_v50  ;;  %1305 = vmatprep.subr.mxu1 %v274_v52  ;;  %v251_v21 = vld [vmem:[%s2292_s1 + $0x710] sm:$0xff]  ;;  %v218_v25 = vld [vmem:[%s2292_s1 + $0x608] sm:$0xff]  ;;  %v217_v29 = vld [vmem:[%s2292_s1 + $0x600] sm:$0xff] }
  0x77   :  { %1271 = vmatpush3.msra.mxu0 %v226_v53  ;;  %1306 = vmatpush3.msra.mxu1 %v258_v54  ;;  %v250_v51 = vld [vmem:[%s2292_s1 + $0x708] sm:$0xff]  ;;  %v249_v31 = vld [vmem:[%s2292_s1 + $0x700] sm:$0xff]  ;;  %v952_v32 = vld [vmem:[%s2294_s3 + $0x78] sm:$0xff] }
  0x78   :  { %1272 = vmatprep.subr.mxu0 %v241_v55  ;;  %1307 = vmatprep.subr.mxu1 %v273_v56  ;;  %v951_v34 = vld [vmem:[%s2294_s3 + $0x70] sm:$0xff]  ;;  %v950_v35 = vld [vmem:[%s2294_s3 + $0x68] sm:$0xff]  ;;  %v949_v36 = vld [vmem:[%s2294_s3 + $0x60] sm:$0xff] }
  0x79   :  { %1273 = vmatpush3.msra.mxu0 %v225_v57  ;;  %1308 = vmatpush3.msra.mxu1 %v257_v58  ;;  %v948_v37 = vld [vmem:[%s2294_s3 + $0x58] sm:$0xff]  ;;  %v947_v38 = vld [vmem:[%s2294_s3 + $0x50] sm:$0xff]  ;;  %v946_v39 = vld [vmem:[%s2294_s3 + $0x48] sm:$0xff] }
  0x7a   :  { %1274 = vmatprep.subr.mxu0 %v240_v59  ;;  %1309 = vmatprep.subr.mxu1 %v272_v60  ;;  %v945_v40 = vld [vmem:[%s2294_s3 + $0x40] sm:$0xff]  ;;  %v944_v41 = vld [vmem:[%s2294_s3 + $0x38] sm:$0xff]  ;;  %v943_v42 = vld [vmem:[%s2294_s3 + $0x30] sm:$0xff] }
  0x7b   :  { %1275 = vmatpush3.msra.mxu0 %v224_v61  ;;  %1310 = vmatpush3.msra.mxu1 %v256_v62  ;;  %v942_v43 = vld [vmem:[%s2294_s3 + $0x28] sm:$0xff]  ;;  %v941_v44 = vld [vmem:[%s2294_s3 + $0x20] sm:$0xff]  ;;  %v940_v45 = vld [vmem:[%s2294_s3 + $0x18] sm:$0xff] }
  0x7c   :  { %1276 = vmatprep.subr.mxu0 %v239_v63  ;;  %1311 = vmatprep.subr.mxu1 %v271_v0  ;;  %v939_v46 = vld [vmem:[%s2294_s3 + $0x10] sm:$0xff]  ;;  %v938_v47 = vld [vmem:[%s2294_s3 + $0x8] sm:$0xff]  ;;  %v937_v48 = vld [vmem:[%s2294_s3] sm:$0xff] }
  0x7d   :  { %1277 = vmatpush3.msra.mxu0 %v223_v1  ;;  %1312 = vmatpush3.msra.mxu1 %v255_v2  ;;  %v1046_v55 = vld [vmem:[%s2293_s2] ss:$0 sm:$0xff] }
  0x7e   :  { %1278 = vmatprep.subr.mxu0 %v238_v3  ;;  %1313 = vmatprep.subr.mxu1 %v270_v4 }
  0x7f   :  { %1279 = vmatpush3.msra.mxu0 %v222_v6  ;;  %1314 = vmatpush3.msra.mxu1 %v254_v7 }
  0x80   :  { %1280 = vmatprep.subr.mxu0 %v237_v8  ;;  %1315 = vmatprep.subr.mxu1 %v269_v9 }
  0x81   :  { %1281 = vmatpush3.msra.mxu0 %v221_v10  ;;  %1316 = vmatpush3.msra.mxu1 %v253_v11 }
  0x82   :  { %1282 = vmatprep.subr.mxu0 %v236_v13  ;;  %1317 = vmatprep.subr.mxu1 %v268_v14 }
  0x83   :  { %1283 = vmatpush3.msra.mxu0 %v220_v15  ;;  %1318 = vmatpush3.msra.mxu1 %v252_v16 }
  0x84   :  { %1284 = vmatprep.subr.mxu0 %v235_v17  ;;  %1319 = vmatprep.subr.mxu1 %v267_v18 }
  0x85   :  { %1285 = vmatpush3.msra.mxu0 %v219_v20  ;;  %1320 = vmatpush3.msra.mxu1 %v251_v21  ;;  %v1047_v20 = vld [vmem:[%s2295_s4] ss:$0 sm:$0xff] }
  0x86   :  { %1286 = vmatprep.subr.mxu0 %v234_v23  ;;  %1321 = vmatprep.subr.mxu1 %v266_v24 }
  0x87   :  { %1287 = vmatpush3.msra.mxu0 %v218_v25  ;;  %1322 = vmatpush3.msra.mxu1 %v250_v51 }
  0x88   :  { %1288 = vmatprep.subr.mxu0 %v233_v26  ;;  %1323 = vmatprep.subr.mxu1 %v265_v27 }
  0x89   :  { %1289 = vmatpush3.msra.mxu0 %v217_v29  ;;  %860 = vmatprep.mubr.f32.mxu0 %v358_v28 }
  0x8a   :  { %1324 = vmatpush3.msra.mxu1 %v249_v31  ;;  %930 = vmatprep.mubr.f32.mxu1 %v359_v30 }
  0x8b   :  { %861 = vmatmul.mubr.f32.vlgmr.msra.gmra.mxu0 %v350_v19  ;;  %931 = vmatmul.mubr.f32.vlgmr.msra.gmra.mxu1 %v357_v22 }
  0x8c   :  { %1345 = vmatprep.subr.mxu0 %v1411_v33  ;;  %1377 = vmatprep.mubr.msk.f32.mxu0 %vm1412_vm0, %v1411_v33 }
  0x8d   :  { %1346 = vmatpush3.msra.mxu0 %v952_v32 }
  0x8e   :  { %1347 = vmatprep.subr.mxu0 %v1411_v33 }
  0x8f   :  { %1348 = vmatpush3.msra.mxu0 %v951_v34 }
  0x90   :  { %1349 = vmatprep.subr.mxu0 %v1411_v33 }
  0x91   :  { %1350 = vmatpush3.msra.mxu0 %v950_v35 }
  0x92   :  { %1351 = vmatprep.subr.mxu0 %v1411_v33 }
  0x93   :  { %1352 = vmatpush3.msra.mxu0 %v949_v36 }
  0x94   :  { %1353 = vmatprep.subr.mxu0 %v1411_v33 }
  0x95   :  { %1354 = vmatpush3.msra.mxu0 %v948_v37 }
  0x96   :  { %1355 = vmatprep.subr.mxu0 %v1411_v33 }
  0x97   :  { %1356 = vmatpush3.msra.mxu0 %v947_v38 }
  0x98   :  { %1357 = vmatprep.subr.mxu0 %v1411_v33 }
  0x99   :  { %1358 = vmatpush3.msra.mxu0 %v946_v39 }
  0x9a   :  { %1359 = vmatprep.subr.mxu0 %v1411_v33 }
  0x9b   :  { %1360 = vmatpush3.msra.mxu0 %v945_v40 }
  0x9c   :  { %1361 = vmatprep.subr.mxu0 %v1411_v33 }
  0x9d   :  { %1362 = vmatpush3.msra.mxu0 %v944_v41 }
  0x9e   :  { %1363 = vmatprep.subr.mxu0 %v1411_v33 }
  0x9f   :  { %1364 = vmatpush3.msra.mxu0 %v943_v42 }
  0xa0   :  { %1365 = vmatprep.subr.mxu0 %v1411_v33 }
  0xa1   :  { %1366 = vmatpush3.msra.mxu0 %v942_v43 }
  0xa2   :  { %1367 = vmatprep.subr.mxu0 %v1411_v33 }
  0xa3   :  { %1368 = vmatpush3.msra.mxu0 %v941_v44 }
  0xa4   :  { %1369 = vmatprep.subr.mxu0 %v1411_v33 }
  0xa5   :  { %1370 = vmatpush3.msra.mxu0 %v940_v45 }
  0xa6   :  { %1371 = vmatprep.subr.mxu0 %v1411_v33 }
  0xa7   :  { %1372 = vmatpush3.msra.mxu0 %v939_v46 }
  0xa8   :  { %1373 = vmatprep.subr.mxu0 %v1411_v33 }
  0xa9   :  { %1374 = vmatpush3.msra.mxu0 %v938_v47 }
  0xaa   :  { %1375 = vmatprep.subr.mxu0 %v1411_v33 }
  0xab   :  { %1376 = vmatpush3.msra.mxu0 %v937_v48 }
  0xe4   :  { %v1080_v49 = vpop.f32.mrf.mxu0 }
  0xe6   :  { %v1115_v50 = vpop.f32.mrf.mxu1  ;;  %v1081_v52 = vpop.f32.mrf.mxu0 }
  0xe7   :  { %v1082_v54 = vadd.f32 %v1081_v52, %v1080_v49 }
  0xe8   :  { %v1116_v56 = vpop.f32.mrf.mxu1 }
  0xe9   :  { %v443_v59 = vadd.f32 %v1082_v54, %v1046_v55  ;;  %v1117_v60 = vadd.f32 %v1116_v56, %v1115_v50 }
  0xeb   :  { %v513_v0 = vadd.f32 %v1117_v60, %v443_v59 }
 0x106   :  { %v1150_v53 = vpop.f32.mrf.mxu0 }
 0x108   :  { %v1185_v57 = vpop.f32.mrf.mxu1  ;;  %v1151_v58 = vpop.f32.mrf.mxu0 }
 0x109   :  { %v1152_v62 = vadd.f32 %v1151_v58, %v1150_v53 }
 0x10a   :  { %v1186_v63 = vpop.f32.mrf.mxu1 }
 0x10b   :  { %v583_v3 = vadd.f32 %v1152_v62, %v513_v0  ;;  %v1187_v4 = vadd.f32 %v1186_v63, %v1185_v57 }
 0x10d   :  { %v653_v7 = vadd.f32 %v1187_v4, %v583_v3 }
 0x128   :  { %v1220_v61 = vpop.f32.mrf.mxu0 }
 0x12a   :  { %v1255_v1 = vpop.f32.mrf.mxu1  ;;  %v1221_v2 = vpop.f32.mrf.mxu0 }
 0x12b   :  { %v1222_v5 = vadd.f32 %v1221_v2, %v1220_v61 }
 0x12c   :  { %v1256_v6 = vpop.f32.mrf.mxu1 }
 0x12d   :  { %v723_v8 = vadd.f32 %v1222_v5, %v653_v7  ;;  %v1257_v9 = vadd.f32 %v1256_v6, %v1255_v1 }
 0x12f   :  { %v793_v14 = vadd.f32 %v1257_v9, %v723_v8 }
 0x14b   :  { %v1290_v10 = vpop.f32.mrf.mxu0  ;;  %v1325_v11 = vpop.f32.mrf.mxu1 }
 0x14d   :  { %v1291_v12 = vpop.f32.mrf.mxu0  ;;  %v1326_v13 = vpop.f32.mrf.mxu1 }
 0x14e   :  { %v1292_v15 = vadd.f32 %v1291_v12, %v1290_v10  ;;  %v1327_v17 = vadd.f32 %v1326_v13, %v1325_v11 }
 0x150   :  { %v863_v16 = vadd.f32 %v1292_v15, %v793_v14 }
 0x152   :  { %v933_v18 = vadd.f32 %v1327_v17, %v863_v16 }
 0x154   :  { %v936_v19 = vmax.f32 %v933_v18, 0.0 }
 0x156   :  { %1378 = vmatmul.mubr.f32.vlgmr.msra.gmra.mxu0 %v936_v19 }
 0x216   :  { %v1026_v21 = vpop.f32.mrf.mxu0 }
 0x217   :  { %v1027_v22 = vadd.f32 %v1047_v20, %v1026_v21 }
 0x218   :  { %v1379_v23 = vpop.f32.mrf.mxu0 }
 0x219   :  { %1031 = vst.msk [vmem:[#allocation2] sm:$0x3] %vm1030_vm1, %v1027_v22 }
 0x21a   :  { %1399 = shalt.err (!%p1396_p4)
}
 0x21b   :  { %1041 = dma.vmem_to_hbm [thread:$0]  %s1039_s18, 32, %s2296_s5, [#allocation3]  }
 0x21c   :  { %1408 = dma.done.wait [#allocation3], 32  }
 0x21d   :  { %1409 = vsyncadd [#allocation3], 4294967264 }
 0x21e   :  { %1045 = vsyncpa [#allocation3], 1 }

// kernel: simple_cnn_forward.2
= control target key start
LH: loop header
LB: loop body
LE: loop exit
PB: predicated region body
PF: predicated region fallthrough
CT: control target
= control target key end

     0   :  { %s4257_s24 = smov 0   ;;  %s6713_s0 = inlined_call_operand.vmem [shape: f32[2,8,1156], index: 0, kind: input, shape index: {}]   ;;  %s6714_s1 = inlined_call_operand.vmem [shape: f32[16,72], index: 1, kind: input, shape index: {}]   ;;  %s6715_s2 = inlined_call_operand.vmem [shape: f32[16,1], index: 2, kind: input, shape index: {}]   ;;  %s6716_s3 = inlined_call_operand.vmem [shape: f32[1051,324], index: 3, kind: input, shape index: {}]   ;;  %s6717_s4 = inlined_call_operand.vmem [shape: f32[32,144], index: 4, kind: input, shape index: {}]   ;;  %s6718_s5 = inlined_call_operand.vmem [shape: f32[32,1], index: 5, kind: input, shape index: {}]   ;;  %s6719_s6 = inlined_call_operand.vmem [shape: f32[267,64], index: 6, kind: input, shape index: {}]   ;;  %s6720_s7 = inlined_call_operand.vmem [shape: f32[2,32,64], index: 7, kind: output, shape index: {}]  }
   0x1 LB: > { %s3751_s25 = sadd.s32 4294967295, %s4200_s24   ;;  %p3755_p0 = scmp.ge.s32.totalorder %s4200_s24, 1  ;;  %s4200_s24 = sphi %s4257_s24, %s17_s24  }
   0x2   : > { %p237_p1 = scmp.lt.s32.totalorder %s4200_s24, 3 }
   0x4   : > { %p238_p2 = pnand %p3755_p0, %p237_p1 }
   0x5   : > { %p269_p3 = scmp.lt.s32.totalorder (!%p238_p2), %s3751_s25, 1  ;;  %s4202_s30 = smov (!%p238_p2), 58  }
   0x6   : > { %241 = sbr.rel (%p238_p2) target bundleno = 1920 (0x780), region = 48  ;;  %s4203_s8 = smov (!%p238_p2), 59  }
   0x7   : > { %s4204_s9 = smov (!%p238_p2), 60   ;;  %s4205_s10 = smov (!%p238_p2), 92  }
   0x8   : > { %s4206_s11 = smov (!%p238_p2), 93   ;;  %s4207_s12 = smov (!%p238_p2), 94  }
   0x9   : > { %s4208_s13 = smov (!%p238_p2), 126   ;;  %s4210_s14 = smov (!%p238_p2), 127  }
   0xa   : > { %s4212_s23 = smov (!%p238_p2), 91   ;;  %s4215_s27 = smov (!%p238_p2), 110  }
   0xb   : > { %s6722_s25 = smov (!%p269_p3, %s3751_s25), 1  ;;  %v4209_v7 = vmov 0.0   ;;  %vm296_vm0 = vcmask 506880   ;;  %v4211_v10 = vmov 0   ;;  %vm789_vm1 = vcmask 474112   ;;  %v900_v41 = vld [vmem:[%s6715_s2] sm:$0xff] }
   0xc   : > { %s4053_s26 = smul.u32 80, %s6722_s25  ;;  %983 = vmatprep.mubr.f32.mxu0 %v4209_v7  ;;  %1060 = vmatprep.mubr.f32.mxu1 %v4209_v7  ;;  %vm721_vm2 = vcmask 482304   ;;  %vm653_vm3 = vcmask 490496   ;;  %vm586_vm4 = vcmask 752640   ;;  %vm523_vm5 = vcmask 760832   ;;  %v901_v44 = vld [vmem:[%s6715_s2 + $0x8] sm:$0xff] }
   0xd   : > { %4077 = vset.pattern.permute.xlu1 %v4211_v10  ;;  %4078 = vset.pattern.permute.xlu0 %v4211_v10  ;;  %vm460_vm6 = vcmask 769024   ;;  %vm397_vm7 = vcmask 1031168   ;;  %vm334_vm8 = vcmask 1039360   ;;  %v4494_v55 = vld [vmem:[%s6714_s1] sm:$0xff]  ;;  %vm912_vm9 = vcmask 588800   ;;  %v4507_v60 = vld [vmem:[%s6714_s1 + $0x8] sm:$0xff] }
   0xe   : > { %s4271_s29 = scalar_lea.vmem %s6713_s0, %s4053_s26  ;;  %vm1935_vm10 = vcmask 1042432   ;;  %vm1928_vm11 = vcmask 220160   ;;  %s4213_s26 = smov 108   ;;  %vm2707_vm12 = vcmask 556032   ;;  %vm2720_vm13 = vcmask 244736  }
   0xf   : > { %v4274_v0 = vld [vmem:[%s4271_s29 + $0x8] sm:$0xff]  ;;  %v4277_v1 = vld [vmem:[%s4271_s29] sm:$0xff]  ;;  %v4280_v2 = vld [vmem:[%s4271_s29 + $0x10] sm:$0xff]  ;;  %s4216_s28 = smov 90   ;;  %vm3136_vm14 = vcmask 130048   ;;  %vm2992_vm15 = vcmask 744448  }
  0x10   : > { %771 = vrot.lane.b32.xlu0 %v4274_v0, %s4202_s30  ;;  %769 = vrot.lane.b32.xlu1 %v4277_v1, %s4202_s30  ;;  %v4287_v3 = vld [vmem:[%s4271_s29 + $0x18] sm:$0xff]  ;;  %v4290_v4 = vld [vmem:[%s4271_s29 + $0x20] sm:$0xff] }
  0x11   : > { %v4293_v5 = vld [vmem:[%s4271_s29 + $0x28] sm:$0xff]  ;;  %v4296_v6 = vld [vmem:[%s4271_s29 + $0x38] sm:$0xff]  ;;  %v755_v8 = vld [vmem:[%s4271_s29 + $0x30] sm:$0xff] }
  0x12   : > { %v4395_v9 = vld [vmem:[%s4271_s29 + $0x40] sm:$0xff]  ;;  %v758_v11 = vld [vmem:[%s4271_s29 + $0x48] sm:$0xff]  ;;  %v4457_v35 = vld [vmem:[%s4271_s29 + $0x30] sm:$0xff] }
  0x13   : > { %297 = vst.msk [vmem:[#allocation2 + $0x40] sm:$0xff] %vm296_vm0, %v4395_v9 }
  0x14   : > { %773 = vrot.lane.b32.xlu0 %v4280_v2, %s4202_s30  ;;  %703 = vrot.lane.b32.xlu1 %v4274_v0, %s4203_s8 }
  0x18   : > { %705 = vrot.lane.b32.xlu0 %v4280_v2, %s4203_s8  ;;  %701 = vrot.lane.b32.xlu1 %v4277_v1, %s4203_s8 }
  0x1c   : > { %637 = vrot.lane.b32.xlu1 %v4280_v2, %s4204_s9  ;;  %635 = vrot.lane.b32.xlu0 %v4274_v0, %s4204_s9 }
  0x20   : > { %633 = vrot.lane.b32.xlu0 %v4277_v1, %s4204_s9  ;;  %570 = vrot.lane.b32.xlu1 %v4274_v0, %s4205_s10 }
  0x24   : > { %572 = vrot.lane.b32.xlu0 %v4280_v2, %s4205_s10  ;;  %568 = vrot.lane.b32.xlu1 %v4277_v1, %s4205_s10 }
  0x28   : > { %509 = vrot.lane.b32.xlu1 %v4280_v2, %s4206_s11  ;;  %507 = vrot.lane.b32.xlu0 %v4274_v0, %s4206_s11 }
  0x2c   : > { %505 = vrot.lane.b32.xlu0 %v4277_v1, %s4206_s11  ;;  %444 = vrot.lane.b32.xlu1 %v4274_v0, %s4207_s12 }
  0x30   : > { %446 = vrot.lane.b32.xlu0 %v4280_v2, %s4207_s12  ;;  %442 = vrot.lane.b32.xlu1 %v4277_v1, %s4207_s12 }
  0x34   : > { %383 = vrot.lane.b32.xlu1 %v4280_v2, %s4208_s13  ;;  %381 = vrot.lane.b32.xlu0 %v4274_v0, %s4208_s13 }
  0x38   : > { %379 = vrot.lane.b32.xlu0 %v4277_v1, %s4208_s13  ;;  %318 = vrot.lane.b32.xlu1 %v4274_v0, %s4210_s14 }
  0x3c   : > { %320 = vrot.lane.b32.xlu0 %v4280_v2, %s4210_s14  ;;  %316 = vrot.lane.b32.xlu1 %v4277_v1, %s4210_s14 }
  0x40   : > { %775 = vrot.lane.b32.xlu0 %v4287_v3, %s4202_s30  ;;  %777 = vrot.lane.b32.xlu1 %v4290_v4, %s4202_s30 }
  0x44   : > { %779 = vrot.lane.b32.xlu0 %v4293_v5, %s4202_s30  ;;  %781 = vrot.lane.b32.xlu1 %v755_v8, %s4202_s30 }
  0x48   : > { %707 = vrot.lane.b32.xlu0 %v4287_v3, %s4203_s8  ;;  %709 = vrot.lane.b32.xlu1 %v4290_v4, %s4203_s8 }
  0x4c   : > { %711 = vrot.lane.b32.xlu0 %v4293_v5, %s4203_s8  ;;  %713 = vrot.lane.b32.xlu1 %v755_v8, %s4203_s8 }
  0x50   : > { %639 = vrot.lane.b32.xlu0 %v4287_v3, %s4204_s9  ;;  %641 = vrot.lane.b32.xlu1 %v4290_v4, %s4204_s9 }
  0x54   : > { %643 = vrot.lane.b32.xlu0 %v4293_v5, %s4204_s9  ;;  %645 = vrot.lane.b32.xlu1 %v755_v8, %s4204_s9 }
  0x58   : > { %574 = vrot.lane.b32.xlu0 %v4287_v3, %s4205_s10  ;;  %576 = vrot.lane.b32.xlu1 %v4290_v4, %s4205_s10 }
  0x5c   : > { %578 = vrot.lane.b32.xlu0 %v4293_v5, %s4205_s10  ;;  %580 = vrot.lane.b32.xlu1 %v755_v8, %s4205_s10 }
  0x60   : > { %511 = vrot.lane.b32.xlu0 %v4287_v3, %s4206_s11  ;;  %513 = vrot.lane.b32.xlu1 %v4290_v4, %s4206_s11 }
  0x64   : > { %515 = vrot.lane.b32.xlu0 %v4293_v5, %s4206_s11  ;;  %517 = vrot.lane.b32.xlu1 %v755_v8, %s4206_s11 }
  0x68   : > { %448 = vrot.lane.b32.xlu0 %v4287_v3, %s4207_s12  ;;  %450 = vrot.lane.b32.xlu1 %v4290_v4, %s4207_s12 }
  0x6c   : > { %452 = vrot.lane.b32.xlu0 %v4293_v5, %s4207_s12  ;;  %454 = vrot.lane.b32.xlu1 %v755_v8, %s4207_s12 }
  0x70   : > { %385 = vrot.lane.b32.xlu0 %v4287_v3, %s4208_s13  ;;  %387 = vrot.lane.b32.xlu1 %v4290_v4, %s4208_s13 }
  0x74   : > { %389 = vrot.lane.b32.xlu0 %v4293_v5, %s4208_s13  ;;  %391 = vrot.lane.b32.xlu1 %v755_v8, %s4208_s13 }
  0x78   : > { %322 = vrot.lane.b32.xlu0 %v4287_v3, %s4210_s14  ;;  %324 = vrot.lane.b32.xlu1 %v4290_v4, %s4210_s14 }
  0x7c   : > { %326 = vrot.lane.b32.xlu0 %v4293_v5, %s4210_s14  ;;  %328 = vrot.lane.b32.xlu1 %v755_v8, %s4210_s14 }
  0x80   : > { %783 = vrot.lane.b32.xlu0 %v4296_v6, %s4202_s30  ;;  %785 = vrot.lane.b32.xlu1 %v4395_v9, %s4202_s30 }
  0x82   : > { %v772_v12 = vpop.permute.xlu0 %771  ;;  %v770_v13 = vpop.permute.xlu1 %769 }
  0x83   : > { %v790_v14 = vsel %vm789_vm1, %v770_v13, %v772_v12 }
  0x84   : > { %787 = vrot.lane.b32.xlu0 %v758_v11, %s4202_s30  ;;  %715 = vrot.lane.b32.xlu1 %v4296_v6, %s4203_s8 }
  0x86   : > { %v4415_v15 = vpop.permute.xlu0 %773  ;;  %v704_v16 = vpop.permute.xlu1 %703 }
  0x87   : > { %v791_v17 = vsel %vm789_vm1, %v772_v12, %v4415_v15 }
  0x88   : > { %717 = vrot.lane.b32.xlu0 %v4395_v9, %s4203_s8  ;;  %719 = vrot.lane.b32.xlu1 %v758_v11, %s4203_s8 }
  0x89   : > { %933 = vmatprep.subr.mxu0 %v791_v17 }
  0x8a   : > { %v4422_v18 = vpop.permute.xlu0 %705  ;;  %v702_v19 = vpop.permute.xlu1 %701  ;;  %934 = vmatpush1.msra.mxu0 %v790_v14 }
  0x8b   : > { %v723_v20 = vsel %vm721_vm2, %v704_v16, %v4422_v18  ;;  %v722_v21 = vsel %vm721_vm2, %v702_v19, %v704_v16 }
  0x8c   : > { %647 = vrot.lane.b32.xlu0 %v4296_v6, %s4204_s9  ;;  %649 = vrot.lane.b32.xlu1 %v4395_v9, %s4204_s9 }
  0x8d   : > { %935 = vmatprep.subr.mxu0 %v723_v20 }
  0x8e   : > { %v4431_v22 = vpop.permute.xlu1 %637  ;;  %v636_v23 = vpop.permute.xlu0 %635  ;;  %936 = vmatpush1.msra.mxu0 %v722_v21 }
  0x8f   : > { %v655_v24 = vsel %vm653_vm3, %v636_v23, %v4431_v22 }
  0x90   : > { %651 = vrot.lane.b32.xlu0 %v758_v11, %s4204_s9  ;;  %582 = vrot.lane.b32.xlu1 %v4296_v6, %s4205_s10 }
  0x91   : > { %937 = vmatprep.subr.mxu0 %v655_v24 }
  0x92   : > { %v634_v25 = vpop.permute.xlu0 %633  ;;  %v571_v26 = vpop.permute.xlu1 %570 }
  0x93   : > { %v654_v27 = vsel %vm653_vm3, %v634_v25, %v636_v23 }
  0x94   : > { %584 = vrot.lane.b32.xlu0 %v4395_v9, %s4205_s10  ;;  %519 = vrot.lane.b32.xlu1 %v4296_v6, %s4206_s11 }
  0x95   : > { %938 = vmatpush1.msra.mxu0 %v654_v27 }
  0x96   : > { %v4443_v28 = vpop.permute.xlu0 %572  ;;  %v569_v29 = vpop.permute.xlu1 %568 }
  0x97   : > { %v588_v30 = vsel %vm586_vm4, %v571_v26, %v4443_v28  ;;  %v587_v31 = vsel %vm586_vm4, %v569_v29, %v571_v26 }
  0x98   : > { %521 = vrot.lane.b32.xlu0 %v4395_v9, %s4206_s11  ;;  %456 = vrot.lane.b32.xlu1 %v4296_v6, %s4207_s12 }
  0x99   : > { %939 = vmatprep.subr.mxu0 %v588_v30 }
  0x9a   : > { %v4452_v32 = vpop.permute.xlu1 %509  ;;  %v508_v33 = vpop.permute.xlu0 %507  ;;  %940 = vmatpush1.msra.mxu0 %v587_v31 }
  0x9b   : > { %v525_v34 = vsel %vm523_vm5, %v508_v33, %v4452_v32 }
  0x9c   : > { %458 = vrot.lane.b32.xlu0 %v4395_v9, %s4207_s12  ;;  %393 = vrot.lane.b32.xlu1 %v4296_v6, %s4208_s13 }
  0x9d   : > { %941 = vmatprep.subr.mxu0 %v525_v34 }
  0x9e   : > { %v506_v36 = vpop.permute.xlu0 %505  ;;  %v445_v37 = vpop.permute.xlu1 %444 }
  0x9f   : > { %v524_v38 = vsel %vm523_vm5, %v506_v36, %v508_v33 }
  0xa0   : > { %395 = vrot.lane.b32.xlu0 %v4395_v9, %s4208_s13  ;;  %330 = vrot.lane.b32.xlu1 %v4296_v6, %s4210_s14 }
  0xa1   : > { %942 = vmatpush1.msra.mxu0 %v524_v38 }
  0xa2   : > { %v4468_v39 = vpop.permute.xlu0 %446  ;;  %v443_v40 = vpop.permute.xlu1 %442 }
  0xa3   : > { %v462_v42 = vsel %vm460_vm6, %v445_v37, %v4468_v39  ;;  %v461_v43 = vsel %vm460_vm6, %v443_v40, %v445_v37 }
  0xa4   : > { %332 = vrot.lane.b32.xlu0 %v4395_v9, %s4210_s14  ;;  %943 = vmatprep.subr.mxu0 %v462_v42 }
  0xa5   : > { %944 = vmatpush1.msra.mxu0 %v461_v43  ;;  %904 = vperm.xlu1 %4077, %v900_v41  }
  0xa6   : > { %v4481_v45 = vpop.permute.xlu1 %383  ;;  %v382_v46 = vpop.permute.xlu0 %381 }
  0xa7   : > { %v399_v47 = vsel %vm397_vm7, %v382_v46, %v4481_v45 }
  0xa8   : > { %945 = vmatprep.subr.mxu0 %v399_v47  ;;  %909 = vperm.xlu0 %4078, %v901_v44  }
  0xaa   : > { %v380_v48 = vpop.permute.xlu0 %379  ;;  %v319_v49 = vpop.permute.xlu1 %318 }
  0xab   : > { %v398_v50 = vsel %vm397_vm7, %v380_v48, %v382_v46 }
  0xac   : > { %946 = vmatpush1.msra.mxu0 %v398_v50 }
  0xae   : > { %v4486_v51 = vpop.permute.xlu0 %320  ;;  %v317_v52 = vpop.permute.xlu1 %316 }
  0xaf   : > { %v336_v53 = vsel %vm334_vm8, %v319_v49, %v4486_v51  ;;  %v335_v54 = vsel %vm334_vm8, %v317_v52, %v319_v49 }
  0xb0   : > { %947 = vmatprep.subr.mxu0 %v336_v53 }
  0xb1   : > { %948 = vmatpush1.msra.mxu0 %v335_v54 }
  0xb2   : > { %v776_v56 = vpop.permute.xlu0 %775  ;;  %v778_v57 = vpop.permute.xlu1 %777  ;;  %949 = vmatprep.subr.mxu0 %v4274_v0 }
  0xb3   : > { %v792_v58 = vsel %vm789_vm1, %v4415_v15, %v776_v56  ;;  %v793_v59 = vsel %vm789_vm1, %v776_v56, %v778_v57  ;;  %950 = vmatpush1.msra.mxu0 %v4277_v1 }
  0xb4   : > { %3759 = vmatmul.mubr.msk.f32.vlgmr.msra.gmra.mxu0 %vm912_vm9, %v4494_v55  ;;  %1010 = vmatprep.subr.mxu1 %v793_v59 }
  0xb5   : > { %1011 = vmatpush1.msra.mxu1 %v792_v58  ;;  %989 = vmatprep.mubr.f32.mxu0 %v4209_v7 }
  0xb6   : > { %v780_v61 = vpop.permute.xlu0 %779  ;;  %v4509_v62 = vpop.permute.xlu1 %781 }
  0xb7   : > { %v794_v63 = vsel %vm789_vm1, %v778_v57, %v780_v61  ;;  %v795_v0 = vsel %vm789_vm1, %v780_v61, %v4509_v62 }
  0xb8   : > { %1087 = vmatprep.subr.mxu0 %v795_v0  ;;  %3760 = vmatmul.mubr.msk.f32.gmra.mxu0 %vm912_vm9, %v4507_v60 }
  0xb9   : > { %1088 = vmatpush1.msra.mxu0 %v794_v63  ;;  %1137 = vmatprep.mubr.f32.mxu0 %v4209_v7 }
  0xba   : > { %v708_v1 = vpop.permute.xlu0 %707  ;;  %v710_v8 = vpop.permute.xlu1 %709 }
  0xbb   : > { %v724_v9 = vsel %vm721_vm2, %v4422_v18, %v708_v1  ;;  %v725_v10 = vsel %vm721_vm2, %v708_v1, %v710_v8 }
  0xbc   : > { %1012 = vmatprep.subr.mxu1 %v725_v10 }
  0xbd   : > { %1013 = vmatpush1.msra.mxu1 %v724_v9 }
  0xbe   : > { %v712_v11 = vpop.permute.xlu0 %711  ;;  %v4520_v12 = vpop.permute.xlu1 %713 }
  0xbf   : > { %v726_v13 = vsel %vm721_vm2, %v710_v8, %v712_v11  ;;  %v727_v14 = vsel %vm721_vm2, %v712_v11, %v4520_v12 }
  0xc0   : > { %1089 = vmatprep.subr.mxu0 %v727_v14 }
  0xc1   : > { %1090 = vmatpush1.msra.mxu0 %v726_v13 }
  0xc2   : > { %v640_v15 = vpop.permute.xlu0 %639  ;;  %v642_v16 = vpop.permute.xlu1 %641 }
  0xc3   : > { %v656_v17 = vsel %vm653_vm3, %v4431_v22, %v640_v15  ;;  %v657_v18 = vsel %vm653_vm3, %v640_v15, %v642_v16 }
  0xc4   : > { %1014 = vmatprep.subr.mxu1 %v657_v18 }
  0xc5   : > { %1015 = vmatpush1.msra.mxu1 %v656_v17 }
  0xc6   : > { %v644_v19 = vpop.permute.xlu0 %643  ;;  %v4528_v20 = vpop.permute.xlu1 %645 }
  0xc7   : > { %v658_v21 = vsel %vm653_vm3, %v642_v16, %v644_v19  ;;  %v659_v23 = vsel %vm653_vm3, %v644_v19, %v4528_v20 }
  0xc8   : > { %1091 = vmatprep.subr.mxu0 %v659_v23 }
  0xc9   : > { %1092 = vmatpush1.msra.mxu0 %v658_v21 }
  0xca   : > { %v575_v24 = vpop.permute.xlu0 %574  ;;  %v577_v25 = vpop.permute.xlu1 %576 }
  0xcb   : > { %v589_v26 = vsel %vm586_vm4, %v4443_v28, %v575_v24  ;;  %v590_v22 = vsel %vm586_vm4, %v575_v24, %v577_v25 }
  0xcc   : > { %1016 = vmatprep.subr.mxu1 %v590_v22 }
  0xcd   : > { %1017 = vmatpush1.msra.mxu1 %v589_v26 }
  0xce   : > { %v579_v27 = vpop.permute.xlu0 %578  ;;  %v4536_v29 = vpop.permute.xlu1 %580 }
  0xcf   : > { %v591_v30 = vsel %vm586_vm4, %v577_v25, %v579_v27  ;;  %v592_v31 = vsel %vm586_vm4, %v579_v27, %v4536_v29 }
  0xd0   : > { %1093 = vmatprep.subr.mxu0 %v592_v31 }
  0xd1   : > { %1094 = vmatpush1.msra.mxu0 %v591_v30 }
  0xd2   : > { %v512_v33 = vpop.permute.xlu0 %511  ;;  %v514_v34 = vpop.permute.xlu1 %513 }
  0xd3   : > { %v526_v36 = vsel %vm523_vm5, %v4452_v32, %v512_v33  ;;  %v527_v28 = vsel %vm523_vm5, %v512_v33, %v514_v34 }
  0xd4   : > { %1018 = vmatprep.subr.mxu1 %v527_v28 }
  0xd5   : > { %1019 = vmatpush1.msra.mxu1 %v526_v36 }
  0xd6   : > { %v516_v37 = vpop.permute.xlu0 %515  ;;  %v4544_v38 = vpop.permute.xlu1 %517 }
  0xd7   : > { %v528_v40 = vsel %vm523_vm5, %v514_v34, %v516_v37  ;;  %v529_v41 = vsel %vm523_vm5, %v516_v37, %v4544_v38 }
  0xd8   : > { %1095 = vmatprep.subr.mxu0 %v529_v41 }
  0xd9   : > { %1096 = vmatpush1.msra.mxu0 %v528_v40 }
  0xda   : > { %v449_v42 = vpop.permute.xlu0 %448  ;;  %v451_v43 = vpop.permute.xlu1 %450 }
  0xdb   : > { %v463_v44 = vsel %vm460_vm6, %v4468_v39, %v449_v42  ;;  %v464_v32 = vsel %vm460_vm6, %v449_v42, %v451_v43 }
  0xdc   : > { %1020 = vmatprep.subr.mxu1 %v464_v32 }
  0xdd   : > { %1021 = vmatpush1.msra.mxu1 %v463_v44 }
  0xde   : > { %v453_v46 = vpop.permute.xlu0 %452  ;;  %v4552_v47 = vpop.permute.xlu1 %454 }
  0xdf   : > { %v465_v48 = vsel %vm460_vm6, %v451_v43, %v453_v46  ;;  %v466_v49 = vsel %vm460_vm6, %v453_v46, %v4552_v47 }
  0xe0   : > { %1097 = vmatprep.subr.mxu0 %v466_v49 }
  0xe1   : > { %1098 = vmatpush1.msra.mxu0 %v465_v48 }
  0xe2   : > { %v386_v50 = vpop.permute.xlu0 %385  ;;  %v388_v52 = vpop.permute.xlu1 %387 }
  0xe3   : > { %v400_v53 = vsel %vm397_vm7, %v4481_v45, %v386_v50  ;;  %v401_v39 = vsel %vm397_vm7, %v386_v50, %v388_v52 }
  0xe4   : > { %1022 = vmatprep.subr.mxu1 %v401_v39  ;;  %v827_v39 = vld [vmem:[#allocation2 + $0x40] sm:$0xff] }
  0xe5   : > { %1023 = vmatpush1.msra.mxu1 %v400_v53 }
  0xe6   : > { %v390_v54 = vpop.permute.xlu0 %389  ;;  %v4560_v56 = vpop.permute.xlu1 %391 }
  0xe7   : > { %v402_v57 = vsel %vm397_vm7, %v388_v52, %v390_v54  ;;  %v403_v58 = vsel %vm397_vm7, %v390_v54, %v4560_v56 }
  0xe8   : > { %1099 = vmatprep.subr.mxu0 %v403_v58 }
  0xe9   : > { %1100 = vmatpush1.msra.mxu0 %v402_v57 }
  0xea   : > { %v323_v59 = vpop.permute.xlu0 %322  ;;  %v325_v61 = vpop.permute.xlu1 %324 }
  0xeb   : > { %v337_v63 = vsel %vm334_vm8, %v4486_v51, %v323_v59  ;;  %v338_v45 = vsel %vm334_vm8, %v323_v59, %v325_v61 }
  0xec   : > { %1024 = vmatprep.subr.mxu1 %v338_v45 }
  0xed   : > { %1025 = vmatpush1.msra.mxu1 %v337_v63 }
  0xee   : > { %v327_v0 = vpop.permute.xlu0 %326  ;;  %v4568_v1 = vpop.permute.xlu1 %328  ;;  %1026 = vmatprep.subr.mxu1 %v4287_v3 }
  0xef   : > { %v339_v8 = vsel %vm334_vm8, %v325_v61, %v327_v0  ;;  %v340_v9 = vsel %vm334_vm8, %v327_v0, %v4568_v1  ;;  %1027 = vmatpush1.msra.mxu1 %v4280_v2 }
  0xf0   : > { %3761 = vmatmul.mubr.msk.f32.vlgmr.msra.gmra.mxu1 %vm912_vm9, %v4494_v55  ;;  %1101 = vmatprep.subr.mxu0 %v340_v9 }
  0xf1   : > { %1102 = vmatpush1.msra.mxu0 %v339_v8  ;;  %1066 = vmatprep.mubr.f32.mxu1 %v4209_v7 }
  0xf2   : > { %v784_v51 = vpop.permute.xlu0 %783  ;;  %v786_v10 = vpop.permute.xlu1 %785  ;;  %1103 = vmatprep.subr.mxu0 %v4293_v5 }
  0xf3   : > { %v796_v3 = vsel %vm789_vm1, %v4509_v62, %v784_v51  ;;  %v797_v11 = vsel %vm789_vm1, %v784_v51, %v786_v10  ;;  %1104 = vmatpush1.msra.mxu0 %v4290_v4 }
  0xf4   : > { %3763 = vmatmul.mubr.msk.f32.vlgmr.msra.gmra.mxu0 %vm912_vm9, %v4494_v55  ;;  %1164 = vmatprep.subr.mxu1 %v797_v11 }
  0xf5   : > { %1165 = vmatpush1.msra.mxu1 %v796_v3  ;;  %1143 = vmatprep.mubr.f32.mxu0 %v4209_v7 }
  0xf6   : > { %v788_v2 = vpop.permute.xlu0 %787  ;;  %v716_v13 = vpop.permute.xlu1 %715  ;;  %3762 = vmatmul.mubr.msk.f32.gmra.mxu1 %vm912_vm9, %v4507_v60 }
  0xf7   : > { %v798_v5 = vsel %vm789_vm1, %v786_v10, %v788_v2  ;;  %v728_v62 = vsel %vm721_vm2, %v4520_v12, %v716_v13  ;;  %1214 = vmatprep.mubr.f32.mxu1 %v4209_v7  ;;  %vm2870_vm1 = vcmask 891904  }
  0xf8   : > { %816 = vst.msk [vmem:[#allocation2 + $0x280] sm:$0xff] %vm296_vm0, %v798_v5  ;;  %3764 = vmatmul.mubr.msk.f32.gmra.mxu0 %vm912_vm9, %v4507_v60 }
  0xf9   : > { %4029 = vmatprep.mubr.msk.f32.mxu0 %vm912_vm9, %v4494_v55 }
  0xfa   : > { %v718_v4 = vpop.permute.xlu0 %717  ;;  %v720_v14 = vpop.permute.xlu1 %719 }
  0xfb   : > { %v729_v15 = vsel %vm721_vm2, %v716_v13, %v718_v4  ;;  %v730_v16 = vsel %vm721_vm2, %v718_v4, %v720_v14  ;;  %vm2829_vm2 = vcmask 900096  }
  0xfc   : > { %748 = vst.msk [vmem:[#allocation2 + $0x238] sm:$0xff] %vm296_vm0, %v730_v16  ;;  %1166 = vmatprep.subr.mxu1 %v729_v15 }
  0xfd   : > { %1167 = vmatpush1.msra.mxu1 %v728_v62 }
  0xfe   : > { %v648_v12 = vpop.permute.xlu0 %647  ;;  %v650_v17 = vpop.permute.xlu1 %649 }
  0xff   : > { %v660_v18 = vsel %vm653_vm3, %v4528_v20, %v648_v12  ;;  %v661_v19 = vsel %vm653_vm3, %v648_v12, %v650_v17  ;;  %v899_v21 = vld [vmem:[#allocation2 + $0x280] sm:$0xff] }
 0x100   : > { %1168 = vmatprep.subr.mxu1 %v661_v19  ;;  %4011 = vmatprep.subr.mxu0 %v899_v21 }
 0x101   : > { %1169 = vmatpush1.msra.mxu1 %v660_v18  ;;  %4012 = vmatpush3.msra.mxu0 %v899_v21 }
 0x102   : > { %v652_v23 = vpop.permute.xlu0 %651  ;;  %v583_v24 = vpop.permute.xlu1 %582 }
 0x103   : > { %v662_v25 = vsel %vm653_vm3, %v650_v17, %v652_v23  ;;  %v593_v26 = vsel %vm586_vm4, %v4536_v29, %v583_v24  ;;  %v890_v22 = vld [vmem:[#allocation2 + $0x238] sm:$0xff]  ;;  %vm3033_vm3 = vcmask 736256  }
 0x104   : > { %680 = vst.msk [vmem:[#allocation2 + $0x1f0] sm:$0xff] %vm296_vm0, %v662_v25  ;;  %4013 = vmatprep.subr.mxu0 %v890_v22 }
 0x105   : > { %4014 = vmatpush3.msra.mxu0 %v890_v22 }
 0x106   : > { %v585_v20 = vpop.permute.xlu0 %584  ;;  %v520_v27 = vpop.permute.xlu1 %519 }
 0x107   : > { %v594_v30 = vsel %vm586_vm4, %v583_v24, %v585_v20  ;;  %612 = vst.msk [vmem:[#allocation2 + $0x1a8] sm:$0xff] %vm296_vm0, %v585_v20  ;;  %v530_v31 = vsel %vm523_vm5, %v4544_v38, %v520_v27 }
 0x108   : > { %1170 = vmatprep.subr.mxu1 %v594_v30 }
 0x109   : > { %1171 = vmatpush1.msra.mxu1 %v593_v26 }
 0x10a   : > { %v522_v33 = vpop.permute.xlu0 %521  ;;  %v457_v34 = vpop.permute.xlu1 %456 }
 0x10b   : > { %v531_v29 = vsel %vm523_vm5, %v520_v27, %v522_v33  ;;  %549 = vst.msk [vmem:[#allocation2 + $0x160] sm:$0xff] %vm296_vm0, %v522_v33  ;;  %v467_v36 = vsel %vm460_vm6, %v4552_v47, %v457_v34  ;;  %v881_v28 = vld [vmem:[#allocation2 + $0x1f0] sm:$0xff]  ;;  %vm3691_vm5 = vcmask 523264  }
 0x10c   : > { %1172 = vmatprep.subr.mxu1 %v531_v29  ;;  %4015 = vmatprep.subr.mxu0 %v881_v28 }
 0x10d   : > { %1173 = vmatpush1.msra.mxu1 %v530_v31  ;;  %4016 = vmatpush3.msra.mxu0 %v881_v28 }
 0x10e   : > { %v459_v37 = vpop.permute.xlu0 %458  ;;  %v394_v40 = vpop.permute.xlu1 %393  ;;  %v872_v41 = vld [vmem:[#allocation2 + $0x1a8] sm:$0xff] }
 0x10f   : > { %v468_v38 = vsel %vm460_vm6, %v457_v34, %v459_v37  ;;  %486 = vst.msk [vmem:[#allocation2 + $0x118] sm:$0xff] %vm296_vm0, %v459_v37  ;;  %v404_v42 = vsel %vm397_vm7, %v4560_v56, %v394_v40  ;;  %4017 = vmatprep.subr.mxu0 %v872_v41 }
 0x110   : > { %1174 = vmatprep.subr.mxu1 %v468_v38  ;;  %4018 = vmatpush3.msra.mxu0 %v872_v41  ;;  %v1674_v41 = vld [vmem:[%s6716_s3 + $0x470] sm:$0xff]  ;;  %v1673_v38 = vld [vmem:[%s6716_s3 + $0x468] sm:$0xff] }
 0x111   : > { %1175 = vmatpush1.msra.mxu1 %v467_v36 }
 0x112   : > { %v396_v43 = vpop.permute.xlu0 %395  ;;  %v331_v44 = vpop.permute.xlu1 %330  ;;  %v863_v32 = vld [vmem:[#allocation2 + $0x160] sm:$0xff] }
 0x113   : > { %v405_v46 = vsel %vm397_vm7, %v394_v40, %v396_v43  ;;  %423 = vst.msk [vmem:[#allocation2 + $0xd0] sm:$0xff] %vm296_vm0, %v396_v43  ;;  %v341_v47 = vsel %vm334_vm8, %v4568_v1, %v331_v44  ;;  %4019 = vmatprep.subr.mxu0 %v863_v32 }
 0x114   : > { %4020 = vmatpush3.msra.mxu0 %v863_v32  ;;  %1176 = vmatprep.subr.mxu1 %v405_v46  ;;  %v1578_v32 = vld [vmem:[%s6716_s3 + $0x170] sm:$0xff]  ;;  %v1668_v46 = vld [vmem:[%s6716_s3 + $0x440] sm:$0xff] }
 0x115   : > { %1177 = vmatpush1.msra.mxu1 %v404_v42  ;;  %v1671_v42 = vld [vmem:[%s6716_s3 + $0x458] sm:$0xff] }
 0x116   : > { %v333_v48 = vpop.permute.xlu0 %332  ;;  %v854_v49 = vld [vmem:[#allocation2 + $0x118] sm:$0xff] }
 0x117   : > { %v342_v50 = vsel %vm334_vm8, %v331_v44, %v333_v48  ;;  %360 = vst.msk [vmem:[#allocation2 + $0x88] sm:$0xff] %vm296_vm0, %v333_v48  ;;  %4021 = vmatprep.subr.mxu0 %v854_v49  ;;  %v1670_v44 = vld [vmem:[%s6716_s3 + $0x450] sm:$0xff]  ;;  %v1667_v48 = vld [vmem:[%s6716_s3 + $0x438] sm:$0xff]  ;;  %vm2911_vm0 = vcmask 883712  }
 0x118   : > { %4022 = vmatpush3.msra.mxu0 %v854_v49  ;;  %1178 = vmatprep.subr.mxu1 %v342_v50  ;;  %v1575_v49 = vld [vmem:[%s6716_s3 + $0x158] sm:$0xff]  ;;  %v1665_v50 = vld [vmem:[%s6716_s3 + $0x428] sm:$0xff] }
 0x119   : > { %1179 = vmatpush1.msra.mxu1 %v341_v47  ;;  %v1577_v47 = vld [vmem:[%s6716_s3 + $0x168] sm:$0xff] }
 0x11a   : > { %v845_v52 = vld [vmem:[#allocation2 + $0xd0] sm:$0xff]  ;;  %1180 = vmatprep.subr.mxu1 %v4296_v6 }
 0x11b   : > { %4023 = vmatprep.subr.mxu0 %v845_v52  ;;  %1181 = vmatpush1.msra.mxu1 %v4457_v35 }
 0x11c   : > { %4024 = vmatpush3.msra.mxu0 %v845_v52  ;;  %3765 = vmatmul.mubr.msk.f32.vlgmr.msra.gmra.mxu1 %vm912_vm9, %v4494_v55  ;;  %v1574_v52 = vld [vmem:[%s6716_s3 + $0x150] sm:$0xff] }
 0x11d   : > { %1220 = vmatprep.mubr.f32.mxu1 %v4209_v7  ;;  %1945 = vmatprep.subr.mxu1 %v1578_v32  ;;  %v1644_v32 = vld [vmem:[%s6716_s3 + $0x380] sm:$0xff] }
 0x11e   : > { %v836_v53 = vld [vmem:[#allocation2 + $0x88] sm:$0xff]  ;;  %1946 = vmatpush1.msra.mxu1 %v1577_v47  ;;  %v1643_v47 = vld [vmem:[%s6716_s3 + $0x378] sm:$0xff] }
 0x11f   : > { %4025 = vmatprep.subr.mxu0 %v836_v53  ;;  %1947 = vmatprep.subr.mxu1 %v1575_v49  ;;  %v1641_v49 = vld [vmem:[%s6716_s3 + $0x368] sm:$0xff] }
 0x120   : > { %4026 = vmatpush3.msra.mxu0 %v836_v53  ;;  %3766 = vmatmul.mubr.msk.f32.gmra.mxu1 %vm912_vm9, %v4507_v60  ;;  %v905_v6 = vpop.permute.xlu1 %904  ;;  %v1664_v53 = vld [vmem:[%s6716_s3 + $0x420] sm:$0xff] }
 0x121   : > { %4027 = vmatprep.subr.mxu0 %v827_v39  ;;  %1948 = vmatpush1.msra.mxu1 %v1574_v52  ;;  %v1640_v52 = vld [vmem:[%s6716_s3 + $0x360] sm:$0xff] }
 0x122   : > { %4028 = vmatpush3.msra.mxu0 %v827_v39  ;;  %v1572_v39 = vld [vmem:[%s6716_s3 + $0x140] sm:$0xff] }
 0x123   : > { %4030 = vmatmul.mubr.msk.f32.vlgmr.msra.gmra.mxu0 %vm912_vm9, %v4507_v60  ;;  %v4651_v8 = vpop.permute.xlu0 %909  ;;  %2022 = vmatprep.subr.mxu0 %v1674_v41  ;;  %v1647_v41 = vld [vmem:[%s6716_s3 + $0x398] sm:$0xff] }
 0x124   : > { %2023 = vmatpush1.msra.mxu0 %v1673_v38  ;;  %1949 = vmatprep.subr.mxu1 %v1572_v39  ;;  %v1556_v38 = vld [vmem:[%s6716_s3 + $0xc0] sm:$0xff]  ;;  %v1638_v39 = vld [vmem:[%s6716_s3 + $0x350] sm:$0xff] }
 0x125   : > { %2024 = vmatprep.subr.mxu0 %v1671_v42  ;;  %v1646_v42 = vld [vmem:[%s6716_s3 + $0x390] sm:$0xff] }
 0x126   : > { %2025 = vmatpush1.msra.mxu0 %v1670_v44  ;;  %v1554_v44 = vld [vmem:[%s6716_s3 + $0xb0] sm:$0xff] }
 0x127   : > { %2026 = vmatprep.subr.mxu0 %v1668_v46  ;;  %v1553_v46 = vld [vmem:[%s6716_s3 + $0xa8] sm:$0xff] }
 0x128   : > { %2027 = vmatpush1.msra.mxu0 %v1667_v48  ;;  %v1551_v48 = vld [vmem:[%s6716_s3 + $0x98] sm:$0xff] }
 0x129   : > { %2028 = vmatprep.subr.mxu0 %v1665_v50  ;;  %v1550_v50 = vld [vmem:[%s6716_s3 + $0x90] sm:$0xff] }
 0x12a   : > { %2029 = vmatpush1.msra.mxu0 %v1664_v53  ;;  %v1548_v53 = vld [vmem:[%s6716_s3 + $0x80] sm:$0xff] }
 0x174   : > { %v985_v35 = vpop.f32.mrf.mxu0 }
 0x175   : > { %v4634_v54 = vadd.f32 %v985_v35, %v905_v6  ;;  %v1571_v35 = vld [vmem:[%s6716_s3 + $0x138] sm:$0xff] }
 0x176   : > { %v987_v56 = vpop.f32.mrf.mxu0  ;;  %1950 = vmatpush1.msra.mxu1 %v1571_v35  ;;  %v1637_v35 = vld [vmem:[%s6716_s3 + $0x348] sm:$0xff] }
 0x177   : > { %v4636_v55 = vadd.f32 %v987_v56, %v905_v6  ;;  %v1302_v57 = vmax.f32 %v4634_v54, 0.0  ;;  %v1661_v56 = vld [vmem:[%s6716_s3 + $0x408] sm:$0xff] }
 0x178   : > { %v4645_v61 = vpop.f32.mrf.mxu0 }
 0x179   : > { %v1303_v58 = vmax.f32 %v4636_v55, 0.0 }
 0x17a   : > { %v4647_v63 = vpop.f32.mrf.mxu0 }
 0x17b   : > { %v4089_v59 = vpack.i.bf16 %v1302_v57, %v1303_v58 }
 0x17d   : > { %4090 = vrot.lane.b32.xlu0 %v4089_v59, %s4210_s14  ;;  %v1569_v59 = vld [vmem:[%s6716_s3 + $0x128] sm:$0xff] }
 0x17e   : > { %1951 = vmatprep.subr.mxu1 %v1569_v59  ;;  %v1635_v59 = vld [vmem:[%s6716_s3 + $0x338] sm:$0xff] }
 0x1b0   : > { %v1062_v60 = vpop.f32.mrf.mxu1 }
 0x1b1   : > { %v4655_v51 = vadd.f32 %v1062_v60, %v905_v6  ;;  %v1659_v60 = vld [vmem:[%s6716_s3 + $0x3f8] sm:$0xff] }
 0x1b2   : > { %v1064_v45 = vpop.f32.mrf.mxu1 }
 0x1b3   : > { %v4649_v0 = vadd.f32 %v1064_v45, %v905_v6  ;;  %v1304_v16 = vmax.f32 %v4655_v51, 0.0  ;;  %v1568_v45 = vld [vmem:[%s6716_s3 + $0x120] sm:$0xff] }
 0x1b4   : > { %v1139_v1 = vpop.f32.mrf.mxu0  ;;  %1952 = vmatpush1.msra.mxu1 %v1568_v45  ;;  %v1634_v45 = vld [vmem:[%s6716_s3 + $0x330] sm:$0xff] }
 0x1b5   : > { %v4653_v9 = vadd.f32 %v1139_v1, %v905_v6  ;;  %v1305_v11 = vmax.f32 %v4649_v0, 0.0  ;;  %v1658_v1 = vld [vmem:[%s6716_s3 + $0x3f0] sm:$0xff]  ;;  %v1580_v0 = vld [vmem:[%s6716_s3 + $0x180] sm:$0xff] }
 0x1b6   : > { %v1141_v10 = vpop.f32.mrf.mxu0  ;;  %v1068_v3 = vpop.f32.mrf.mxu1 }
 0x1b7   : > { %v1306_v2 = vmax.f32 %v4653_v9, 0.0  ;;  %v4659_v13 = vadd.f32 %v1141_v10, %v905_v6  ;;  %v4662_v5 = vadd.f32 %v1068_v3, %v4651_v8  ;;  %v1566_v10 = vld [vmem:[%s6716_s3 + $0x110] sm:$0xff]  ;;  %v1656_v3 = vld [vmem:[%s6716_s3 + $0x3e0] sm:$0xff] }
 0x1b8   : > { %v1145_v62 = vpop.f32.mrf.mxu0  ;;  %v1070_v23 = vpop.f32.mrf.mxu1  ;;  %1953 = vmatprep.subr.mxu1 %v1566_v10  ;;  %v1632_v10 = vld [vmem:[%s6716_s3 + $0x320] sm:$0xff] }
 0x1b9   : > { %v4079_v4 = vpack.i.bf16 %v1306_v2, %v1305_v11  ;;  %v1307_v14 = vmax.f32 %v4659_v13, 0.0  ;;  %v1313_v12 = vmax.f32 %v4662_v5, 0.0  ;;  %v4687_v25 = vadd.f32 %v1145_v62, %v4651_v8  ;;  %v1565_v62 = vld [vmem:[%s6716_s3 + $0x108] sm:$0xff]  ;;  %v1764_v13 = vld [vmem:[%s6716_s3 + $0x740] sm:$0xff] }
 0x1ba   : > { %v1147_v15 = vpop.f32.mrf.mxu0  ;;  %v4690_v26 = vadd.f32 %v1070_v23, %v4651_v8  ;;  %1954 = vmatpush1.msra.mxu1 %v1565_v62  ;;  %v1652_v23 = vld [vmem:[%s6716_s3 + $0x3c0] sm:$0xff]  ;;  %v1631_v62 = vld [vmem:[%s6716_s3 + $0x318] sm:$0xff] }
 0x1bb   : > { %4080 = vrot.lane.b32.xlu1 %v4079_v4, %s4210_s14  ;;  %v4673_v17 = vadd.f32 %v1147_v15, %v4651_v8  ;;  %v4084_v18 = vpack.i.bf16 %v1304_v16, %v1307_v14  ;;  %v1315_v30 = vmax.f32 %v4687_v25, 0.0  ;;  %v1655_v4 = vld [vmem:[%s6716_s3 + $0x3d8] sm:$0xff] }
 0x1bc   : > { %v1314_v31 = vmax.f32 %v4690_v26, 0.0  ;;  %v1563_v15 = vld [vmem:[%s6716_s3 + $0xf8] sm:$0xff] }
 0x1bd   : > { %v1316_v19 = vmax.f32 %v4673_v17, 0.0  ;;  %1955 = vmatprep.subr.mxu1 %v1563_v15  ;;  %v1629_v15 = vld [vmem:[%s6716_s3 + $0x308] sm:$0xff]  ;;  %v1847_v17 = vld [vmem:[%s6716_s3 + $0x9d8] sm:$0xff] }
 0x1be   : > { %v4099_v28 = vpack.i.bf16 %v1315_v30, %v1314_v31 }
 0x1bf   : > { %4085 = vrot.lane.b32.xlu1 %v4084_v18, %s4210_s14  ;;  %v4104_v21 = vpack.i.bf16 %v1313_v12, %v1316_v19  ;;  %v1653_v18 = vld [vmem:[%s6716_s3 + $0x3c8] sm:$0xff] }
 0x1c1   : > { %4105 = vrot.lane.b32.xlu0 %v4104_v21, %s4210_s14  ;;  %v1562_v21 = vld [vmem:[%s6716_s3 + $0xf0] sm:$0xff] }
 0x1c2   : > { %1956 = vmatpush1.msra.mxu1 %v1562_v21  ;;  %v1628_v21 = vld [vmem:[%s6716_s3 + $0x300] sm:$0xff] }
 0x1dc   : > { %v1216_v24 = vpop.f32.mrf.mxu1 }
 0x1dd   : > { %v4692_v22 = vadd.f32 %v1216_v24, %v905_v6  ;;  %v1560_v24 = vld [vmem:[%s6716_s3 + $0xe0] sm:$0xff] }
 0x1de   : > { %v1218_v20 = vpop.f32.mrf.mxu1  ;;  %1957 = vmatprep.subr.mxu1 %v1560_v24  ;;  %v1722_v24 = vld [vmem:[%s6716_s3 + $0x5f0] sm:$0xff] }
 0x1df   : > { %v4694_v27 = vadd.f32 %v1218_v20, %v905_v6  ;;  %v1308_v33 = vmax.f32 %v4692_v22, 0.0  ;;  %v1650_v20 = vld [vmem:[%s6716_s3 + $0x3b0] sm:$0xff] }
 0x1e1   : > { %v1309_v34 = vmax.f32 %v4694_v27, 0.0 }
 0x1e3   : > { %v4700_v29 = vpop.f32.mrf.mxu0  ;;  %v4094_v36 = vpack.i.bf16 %v1308_v33, %v1309_v34 }
 0x1e5   : > { %v1293_v37 = vpop.f32.mrf.mxu0  ;;  %4095 = vrot.lane.b32.xlu1 %v4094_v36, %s4210_s14  ;;  %v1559_v36 = vld [vmem:[%s6716_s3 + $0xd8] sm:$0xff] }
 0x1e6   : > { %v4711_v40 = vadd.f32 %v1293_v37, %v905_v6  ;;  %v1662_v6 = vld [vmem:[%s6716_s3 + $0x410] sm:$0xff]  ;;  %v1557_v37 = vld [vmem:[%s6716_s3 + $0xc8] sm:$0xff]  ;;  %1958 = vmatpush1.msra.mxu1 %v1559_v36 }
 0x1e7   : > { %2030 = vmatprep.subr.mxu0 %v1662_v6  ;;  %1959 = vmatprep.subr.mxu1 %v1557_v37  ;;  %v1547_v6 = vld [vmem:[%s6716_s3 + $0x78] sm:$0xff]  ;;  %v1721_v36 = vld [vmem:[%s6716_s3 + $0x5e8] sm:$0xff] }
 0x1e8   : > { %v1310_v43 = vmax.f32 %v4711_v40, 0.0  ;;  %2031 = vmatpush1.msra.mxu0 %v1661_v56  ;;  %1960 = vmatpush1.msra.mxu1 %v1556_v38  ;;  %v1545_v56 = vld [vmem:[%s6716_s3 + $0x68] sm:$0xff]  ;;  %v1719_v37 = vld [vmem:[%s6716_s3 + $0x5d8] sm:$0xff]  ;;  %v1718_v38 = vld [vmem:[%s6716_s3 + $0x5d0] sm:$0xff] }
 0x1e9   : > { %4100 = vrot.lane.b32.xlu1 %v4099_v28, %s4210_s14  ;;  %2032 = vmatprep.subr.mxu0 %v1659_v60  ;;  %v1649_v28 = vld [vmem:[%s6716_s3 + $0x3a8] sm:$0xff]  ;;  %v1544_v60 = vld [vmem:[%s6716_s3 + $0x60] sm:$0xff] }
 0x1ea   : > { %1354 = vrot.lane.b32.xlu0 %v1310_v43, %s4210_s14  ;;  %2033 = vmatpush1.msra.mxu0 %v1658_v1  ;;  %v1542_v1 = vld [vmem:[%s6716_s3 + $0x50] sm:$0xff] }
 0x1eb   : > { %2034 = vmatprep.subr.mxu0 %v1656_v3  ;;  %1961 = vmatprep.subr.mxu1 %v1554_v44  ;;  %v1541_v3 = vld [vmem:[%s6716_s3 + $0x48] sm:$0xff]  ;;  %v1716_v44 = vld [vmem:[%s6716_s3 + $0x5c0] sm:$0xff] }
 0x1ec   : > { %2035 = vmatpush1.msra.mxu0 %v1655_v4  ;;  %1962 = vmatpush1.msra.mxu1 %v1553_v46  ;;  %v1539_v4 = vld [vmem:[%s6716_s3 + $0x38] sm:$0xff] }
 0x1ed   : > { %2036 = vmatprep.subr.mxu0 %v1653_v18  ;;  %1963 = vmatprep.subr.mxu1 %v1551_v48  ;;  %v1538_v18 = vld [vmem:[%s6716_s3 + $0x30] sm:$0xff]  ;;  %v1715_v46 = vld [vmem:[%s6716_s3 + $0x5b8] sm:$0xff]  ;;  %v1713_v48 = vld [vmem:[%s6716_s3 + $0x5a8] sm:$0xff] }
 0x1ee   : > { %2037 = vmatpush1.msra.mxu0 %v1652_v23  ;;  %1964 = vmatpush1.msra.mxu1 %v1550_v50  ;;  %v1536_v23 = vld [vmem:[%s6716_s3 + $0x20] sm:$0xff] }
 0x1ef   : > { %2038 = vmatprep.subr.mxu0 %v1650_v20  ;;  %1965 = vmatprep.subr.mxu1 %v1548_v53  ;;  %v1535_v20 = vld [vmem:[%s6716_s3 + $0x18] sm:$0xff]  ;;  %v1712_v50 = vld [vmem:[%s6716_s3 + $0x5a0] sm:$0xff]  ;;  %v1710_v53 = vld [vmem:[%s6716_s3 + $0x590] sm:$0xff] }
 0x1f0   : > { %2039 = vmatpush1.msra.mxu0 %v1649_v28  ;;  %1966 = vmatpush1.msra.mxu1 %v1547_v6  ;;  %v1533_v28 = vld [vmem:[%s6716_s3 + $0x8] sm:$0xff] }
 0x1f1   : > { %2040 = vmatprep.subr.mxu0 %v1647_v41  ;;  %1967 = vmatprep.subr.mxu1 %v1545_v56  ;;  %v1532_v41 = vld [vmem:[%s6716_s3] sm:$0xff]  ;;  %v1709_v6 = vld [vmem:[%s6716_s3 + $0x588] sm:$0xff]  ;;  %v1707_v56 = vld [vmem:[%s6716_s3 + $0x578] sm:$0xff] }
 0x1f2   : > { %2041 = vmatpush1.msra.mxu0 %v1646_v42  ;;  %1968 = vmatpush1.msra.mxu1 %v1544_v60  ;;  %v1626_v42 = vld [vmem:[%s6716_s3 + $0x2f0] sm:$0xff] }
 0x1f3   : > { %2042 = vmatprep.subr.mxu0 %v1644_v32  ;;  %1969 = vmatprep.subr.mxu1 %v1542_v1  ;;  %v1625_v32 = vld [vmem:[%s6716_s3 + $0x2e8] sm:$0xff]  ;;  %v1706_v60 = vld [vmem:[%s6716_s3 + $0x570] sm:$0xff]  ;;  %v1704_v1 = vld [vmem:[%s6716_s3 + $0x560] sm:$0xff] }
 0x1f4   : > { %2043 = vmatpush1.msra.mxu0 %v1643_v47  ;;  %1970 = vmatpush1.msra.mxu1 %v1541_v3  ;;  %v1623_v47 = vld [vmem:[%s6716_s3 + $0x2d8] sm:$0xff] }
 0x1f5   : > { %2044 = vmatprep.subr.mxu0 %v1641_v49  ;;  %1971 = vmatprep.subr.mxu1 %v1539_v4  ;;  %v1622_v49 = vld [vmem:[%s6716_s3 + $0x2d0] sm:$0xff]  ;;  %v1703_v3 = vld [vmem:[%s6716_s3 + $0x558] sm:$0xff]  ;;  %v1701_v4 = vld [vmem:[%s6716_s3 + $0x548] sm:$0xff] }
 0x1f6   : > { %2045 = vmatpush1.msra.mxu0 %v1640_v52  ;;  %1972 = vmatpush1.msra.mxu1 %v1538_v18  ;;  %v1620_v52 = vld [vmem:[%s6716_s3 + $0x2c0] sm:$0xff] }
 0x1f7   : > { %2046 = vmatprep.subr.mxu0 %v1638_v39  ;;  %1973 = vmatprep.subr.mxu1 %v1536_v23  ;;  %v1619_v39 = vld [vmem:[%s6716_s3 + $0x2b8] sm:$0xff]  ;;  %v1700_v18 = vld [vmem:[%s6716_s3 + $0x540] sm:$0xff]  ;;  %v1698_v23 = vld [vmem:[%s6716_s3 + $0x530] sm:$0xff] }
 0x1f8   : > { %2047 = vmatpush1.msra.mxu0 %v1637_v35  ;;  %1974 = vmatpush1.msra.mxu1 %v1535_v20  ;;  %v1617_v35 = vld [vmem:[%s6716_s3 + $0x2a8] sm:$0xff] }
 0x1f9   : > { %2048 = vmatprep.subr.mxu0 %v1635_v59  ;;  %1975 = vmatprep.subr.mxu1 %v1533_v28  ;;  %v1616_v59 = vld [vmem:[%s6716_s3 + $0x2a0] sm:$0xff]  ;;  %v1697_v20 = vld [vmem:[%s6716_s3 + $0x528] sm:$0xff]  ;;  %v1695_v28 = vld [vmem:[%s6716_s3 + $0x518] sm:$0xff] }
 0x1fa   : > { %2049 = vmatpush1.msra.mxu0 %v1634_v45  ;;  %1976 = vmatpush1.msra.mxu1 %v1532_v41  ;;  %v1614_v45 = vld [vmem:[%s6716_s3 + $0x290] sm:$0xff] }
 0x1fb   : > { %2050 = vmatprep.subr.mxu0 %v1632_v10  ;;  %1977 = vmatprep.subr.mxu1 %v1626_v42  ;;  %v1613_v10 = vld [vmem:[%s6716_s3 + $0x288] sm:$0xff]  ;;  %v1694_v41 = vld [vmem:[%s6716_s3 + $0x510] sm:$0xff]  ;;  %v1692_v42 = vld [vmem:[%s6716_s3 + $0x500] sm:$0xff] }
 0x1fc   : > { %2051 = vmatpush1.msra.mxu0 %v1631_v62  ;;  %1978 = vmatpush2.msra.mxu1 %v1625_v32  ;;  %v1611_v62 = vld [vmem:[%s6716_s3 + $0x278] sm:$0xff] }
 0x1fd   : > { %2052 = vmatprep.subr.mxu0 %v1629_v15  ;;  %1979 = vmatprep.subr.mxu1 %v1623_v47  ;;  %v1610_v15 = vld [vmem:[%s6716_s3 + $0x270] sm:$0xff]  ;;  %v1691_v32 = vld [vmem:[%s6716_s3 + $0x4f8] sm:$0xff]  ;;  %v1689_v47 = vld [vmem:[%s6716_s3 + $0x4e8] sm:$0xff] }
 0x1fe   : > { %2053 = vmatpush1.msra.mxu0 %v1628_v21  ;;  %1980 = vmatpush2.msra.mxu1 %v1622_v49  ;;  %v1608_v21 = vld [vmem:[%s6716_s3 + $0x260] sm:$0xff] }
 0x1ff   : > { %2054 = vmatprep.subr.mxu0 %v1722_v24  ;;  %1981 = vmatprep.subr.mxu1 %v1620_v52  ;;  %v1607_v24 = vld [vmem:[%s6716_s3 + $0x258] sm:$0xff]  ;;  %v1688_v49 = vld [vmem:[%s6716_s3 + $0x4e0] sm:$0xff]  ;;  %v1686_v52 = vld [vmem:[%s6716_s3 + $0x4d0] sm:$0xff] }
 0x200   : > { %2055 = vmatpush2.msra.mxu0 %v1721_v36  ;;  %1982 = vmatpush2.msra.mxu1 %v1619_v39  ;;  %v1605_v36 = vld [vmem:[%s6716_s3 + $0x248] sm:$0xff]  ;;  %v1222_v39 = vpop.f32.mrf.mxu1 }
 0x201   : > { %2056 = vmatprep.subr.mxu0 %v1719_v37  ;;  %1983 = vmatprep.subr.mxu1 %v1617_v35  ;;  %v1604_v37 = vld [vmem:[%s6716_s3 + $0x240] sm:$0xff]  ;;  %v1683_v35 = vld [vmem:[%s6716_s3 + $0x4b8] sm:$0xff] }
 0x202   : > { %2057 = vmatpush2.msra.mxu0 %v1718_v38  ;;  %1984 = vmatpush2.msra.mxu1 %v1616_v59  ;;  %v1602_v38 = vld [vmem:[%s6716_s3 + $0x230] sm:$0xff]  ;;  %v1593_v59 = vld [vmem:[%s6716_s3 + $0x1e8] sm:$0xff] }
 0x203   : > { %2058 = vmatprep.subr.mxu0 %v1716_v44  ;;  %1985 = vmatprep.subr.mxu1 %v1614_v45  ;;  %v1601_v44 = vld [vmem:[%s6716_s3 + $0x228] sm:$0xff] }
 0x204   : > { %2059 = vmatpush2.msra.mxu0 %v1715_v46  ;;  %1986 = vmatpush2.msra.mxu1 %v1613_v10  ;;  %v1599_v46 = vld [vmem:[%s6716_s3 + $0x218] sm:$0xff]  ;;  %v1592_v10 = vld [vmem:[%s6716_s3 + $0x1e0] sm:$0xff] }
 0x205   : > { %2060 = vmatprep.subr.mxu0 %v1713_v48  ;;  %1987 = vmatprep.subr.mxu1 %v1611_v62  ;;  %v1598_v48 = vld [vmem:[%s6716_s3 + $0x210] sm:$0xff]  ;;  %v4091_v62 = vpop.permute.xlu0 %4090 }
 0x206   : > { %2061 = vmatpush2.msra.mxu0 %v1712_v50  ;;  %1988 = vmatpush2.msra.mxu1 %v1610_v15  ;;  %v1596_v50 = vld [vmem:[%s6716_s3 + $0x200] sm:$0xff]  ;;  %v1679_v15 = vld [vmem:[%s6716_s3 + $0x498] sm:$0xff] }
 0x207   : > { %2062 = vmatprep.subr.mxu0 %v1710_v53  ;;  %1989 = vmatprep.subr.mxu1 %v1608_v21  ;;  %v1685_v53 = vld [vmem:[%s6716_s3 + $0x4c8] sm:$0xff] }
 0x208   : > { %2063 = vmatpush2.msra.mxu0 %v1709_v6  ;;  %1990 = vmatpush2.msra.mxu1 %v1607_v24  ;;  %v1595_v6 = vld [vmem:[%s6716_s3 + $0x1f8] sm:$0xff]  ;;  %v1589_v21 = vld [vmem:[%s6716_s3 + $0x1c8] sm:$0xff]  ;;  %v5083_v24 = vadd.f32 %v4645_v61, %v4651_v8 }
 0x209   : > { %2064 = vmatprep.subr.mxu0 %v1707_v56  ;;  %1991 = vmatprep.subr.mxu1 %v1605_v36 }
 0x20a   : > { %2065 = vmatpush2.msra.mxu0 %v1706_v60  ;;  %1992 = vmatpush2.msra.mxu1 %v1604_v37  ;;  %v1682_v60 = vld [vmem:[%s6716_s3 + $0x4b0] sm:$0xff]  ;;  %v1676_v37 = vld [vmem:[%s6716_s3 + $0x480] sm:$0xff]  ;;  %v1311_v9 = vmax.f32 %v5083_v24, 0.0 }
 0x20b   : > { %2066 = vmatprep.subr.mxu0 %v1704_v1  ;;  %1993 = vmatprep.subr.mxu1 %v1602_v38 }
 0x20c   : > { %2067 = vmatpush2.msra.mxu0 %v1703_v3  ;;  %1994 = vmatpush2.msra.mxu1 %v1601_v44  ;;  %v1680_v3 = vld [vmem:[%s6716_s3 + $0x4a0] sm:$0xff] }
 0x20d   : > { %2068 = vmatprep.subr.mxu0 %v1701_v4  ;;  %1995 = vmatprep.subr.mxu1 %v1599_v46  ;;  %v1590_v4 = vld [vmem:[%s6716_s3 + $0x1d0] sm:$0xff]  ;;  %v1584_v44 = vld [vmem:[%s6716_s3 + $0x1a0] sm:$0xff] }
 0x20e   : > { %2069 = vmatpush2.msra.mxu0 %v1700_v18  ;;  %1996 = vmatpush2.msra.mxu1 %v1598_v48  ;;  %v1224_v18 = vpop.f32.mrf.mxu1 }
 0x20f   : > { %2070 = vmatprep.subr.mxu0 %v1698_v23  ;;  %1997 = vmatprep.subr.mxu1 %v1596_v50  ;;  %v1677_v23 = vld [vmem:[%s6716_s3 + $0x488] sm:$0xff]  ;;  %v5106_v46 = vadd.f32 %v1224_v18, %v4651_v8  ;;  %v1583_v50 = vld [vmem:[%s6716_s3 + $0x198] sm:$0xff] }
 0x210   : > { %2071 = vmatpush2.msra.mxu0 %v1697_v20  ;;  %1998 = vmatpush2.msra.mxu1 %v1595_v6  ;;  %v5087_v20 = vadd.f32 %v4647_v63, %v4651_v8  ;;  %v1586_v63 = vld [vmem:[%s6716_s3 + $0x1b0] sm:$0xff] }
 0x211   : > { %2072 = vmatprep.subr.mxu0 %v1695_v28  ;;  %1999 = vmatprep.subr.mxu1 %v1593_v59  ;;  %v1587_v28 = vld [vmem:[%s6716_s3 + $0x1b8] sm:$0xff]  ;;  %v5152_v59 = vadd.f32 %v4700_v29, %v4651_v8 }
 0x212   : > { %2073 = vmatpush2.msra.mxu0 %v1694_v41  ;;  %2000 = vmatpush2.msra.mxu1 %v1592_v10  ;;  %v4092_v41 = vunpack.i.l.bf16 %v4091_v62 }
 0x213   : > { %2074 = vmatprep.subr.mxu0 %v1692_v42  ;;  %2001 = vmatprep.subr.mxu1 %v1590_v4 }
 0x214   : > { %2075 = vmatpush2.msra.mxu0 %v1691_v32  ;;  %2002 = vmatpush2.msra.mxu1 %v1589_v21  ;;  %v5103_v32 = vadd.f32 %v1222_v39, %v4651_v8 }
 0x215   : > { %2076 = vmatprep.subr.mxu0 %v1689_v47  ;;  %2003 = vmatprep.subr.mxu1 %v1587_v28 }
 0x216   : > { %2077 = vmatpush2.msra.mxu0 %v1688_v49  ;;  %2004 = vmatpush2.msra.mxu1 %v1586_v63  ;;  %v1317_v55 = vmax.f32 %v5103_v32, 0.0 }
 0x217   : > { %2078 = vmatprep.subr.mxu0 %v1686_v52  ;;  %2005 = vmatprep.subr.mxu1 %v1584_v44 }
 0x218   : > { %2079 = vmatpush2.msra.mxu0 %v1685_v53  ;;  %2006 = vmatpush2.msra.mxu1 %v1583_v50 }
 0x219   : > { %2080 = vmatprep.subr.mxu0 %v1683_v35  ;;  %v1581_v35 = vld [vmem:[%s6716_s3 + $0x188] sm:$0xff] }
 0x21a   : > { %2081 = vmatpush2.msra.mxu0 %v1682_v60  ;;  %2007 = vmatprep.subr.mxu1 %v1581_v35 }
 0x21b   : > { %2082 = vmatprep.subr.mxu0 %v1680_v3  ;;  %2008 = vmatpush2.msra.mxu1 %v1580_v0 }
 0x21c   : > { %2083 = vmatpush2.msra.mxu0 %v1679_v15 }
 0x21d   : > { %2084 = vmatprep.subr.mxu0 %v1677_v23 }
 0x21e   : > { %2085 = vmatpush2.msra.mxu0 %v1676_v37  ;;  %v1866_v37 = vld [vmem:[%s6716_s3 + $0xa70] sm:$0xff] }
 0x21f   : > { %2176 = vmatprep.subr.mxu0 %v1866_v37 }
 0x22d   : > { %v4081_v56 = vpop.permute.xlu1 %4080 }
 0x22e   : > { %v4083_v45 = vunpack.i.h.bf16 %v4081_v56  ;;  %v4082_v1 = vunpack.i.l.bf16 %v4081_v56 }
 0x230   : > { %v1377_v38 = vsel %vm334_vm8, %v4082_v1, %v4083_v45 }
 0x231   : > { %v4086_v36 = vpop.permute.xlu1 %4085  ;;  %v5116_v52 = vmax.f32 %v1305_v11, %v1377_v38  ;;  %v1312_v11 = vmax.f32 %v5087_v20, 0.0 }
 0x232   : > { %v4088_v61 = vunpack.i.h.bf16 %v4086_v36  ;;  %v4087_v42 = vunpack.i.l.bf16 %v4086_v36 }
 0x233   : > { %v4119_v56 = vpack.i.bf16 %v1311_v9, %v1312_v11  ;;  %v5171_v8 = vpop.permute.xlu0 %4105 }
 0x234   : > { %v1375_v47 = vsel %vm334_vm8, %v4092_v41, %v4088_v61  ;;  %v1376_v48 = vsel %vm334_vm8, %v4088_v61, %v4082_v1  ;;  %v1378_v49 = vsel %vm334_vm8, %v4083_v45, %v4087_v42  ;;  %v1319_v1 = vmax.f32 %v5152_v59, 0.0 }
 0x235   : > { %v5120_v53 = vmax.f32 %v1306_v2, %v1378_v49  ;;  %v5124_v39 = vmax.f32 %v1303_v58, %v1375_v47  ;;  %v5128_v6 = vmax.f32 %v1304_v16, %v1376_v48  ;;  %v1318_v58 = vmax.f32 %v5106_v46, 0.0  ;;  %v1770_v48 = vld [vmem:[%s6716_s3 + $0x770] sm:$0xff]  ;;  %v1769_v46 = vld [vmem:[%s6716_s3 + $0x768] sm:$0xff] }
 0x236   : > { %v4093_v16 = vunpack.i.h.bf16 %v4091_v62  ;;  %v4108_v4 = vunpack.i.h.bf16 %v5171_v8  ;;  %v4107_v15 = vunpack.i.l.bf16 %v5171_v8  ;;  %2099 = vmatprep.subr.mxu1 %v1770_v48  ;;  %v1763_v8 = vld [vmem:[%s6716_s3 + $0x738] sm:$0xff] }
 0x237   : > { %v4114_v51 = vpack.i.bf16 %v5120_v53, %v5116_v52  ;;  %v4109_v2 = vpack.i.bf16 %v5124_v39, %v5128_v6  ;;  %v4124_v60 = vpack.i.bf16 %v1317_v55, %v1318_v58 }
 0x238   : > { %v1374_v45 = vsel %vm334_vm8, %v4093_v16, %v4092_v41 }
 0x239   : > { %4115 = vrot.lane.b32.xlu1 %v4114_v51, %s4207_s12  ;;  %4110 = vrot.lane.b32.xlu0 %v4109_v2, %s4207_s12  ;;  %v5164_v10 = vmax.f32 %v1302_v57, %v1374_v45 }
 0x23d   : > { %4120 = vrot.lane.b32.xlu1 %v4119_v56, %s4210_s14  ;;  %4125 = vrot.lane.b32.xlu0 %v4124_v60, %s4210_s14 }
 0x241   : > { %1372 = vrot.lane.b32.xlu1 %v1319_v1, %s4210_s14  ;;  %1444 = vrot.lane.b32.xlu0 %v5164_v10, %s4207_s12 }
 0x257   : > { %v4096_v29 = vpop.permute.xlu1 %4095 }
 0x258   : > { %v4098_v3 = vunpack.i.h.bf16 %v4096_v29  ;;  %v4097_v62 = vunpack.i.l.bf16 %v4096_v29 }
 0x25a   : > { %v5176_v54 = vsel %vm334_vm8, %v4087_v42, %v4098_v3  ;;  %v1380_v57 = vsel %vm334_vm8, %v4098_v3, %v4097_v62  ;;  %v1865_v3 = vld [vmem:[%s6716_s3 + $0xa68] sm:$0xff] }
 0x25b   : > { %v4101_v18 = vpop.permute.xlu1 %4100  ;;  %v5312_v32 = vmax.f32 %v1307_v14, %v5176_v54 }
 0x25c   : > { %v1355_v21 = vpop.permute.xlu0 %1354  ;;  %v4103_v23 = vunpack.i.h.bf16 %v4101_v18  ;;  %v4102_v36 = vunpack.i.l.bf16 %v4101_v18 }
 0x25d   : > { %v1381_v28 = vsel %vm334_vm8, %v4097_v62, %v1355_v21  ;;  %v5215_v5 = vmax.f32 %v1310_v43, %v1355_v21  ;;  %v1862_v62 = vld [vmem:[%s6716_s3 + $0xa50] sm:$0xff] }
 0x25e   : > { %v1384_v41 = vsel %vm334_vm8, %v4108_v4, %v4102_v36  ;;  %v1385_v38 = vsel %vm334_vm8, %v4102_v36, %v4103_v23  ;;  %v1386_v61 = vsel %vm334_vm8, %v4103_v23, %v4107_v15  ;;  %v5190_v42 = vmax.f32 %v1309_v34, %v1381_v28 }
 0x25f   : > { %v5194_v63 = vmax.f32 %v1314_v31, %v1385_v38  ;;  %v5198_v44 = vmax.f32 %v1315_v30, %v1386_v61  ;;  %v5202_v47 = vmax.f32 %v1313_v12, %v1384_v41  ;;  %v5253_v23 = vmax.f32 %v1308_v33, %v1380_v57  ;;  %v1859_v57 = vld [vmem:[%s6716_s3 + $0xa38] sm:$0xff]  ;;  %v1854_v61 = vld [vmem:[%s6716_s3 + $0xa10] sm:$0xff] }
 0x260   : > { %v1767_v38 = vld [vmem:[%s6716_s3 + $0x758] sm:$0xff] }
 0x261   : > { %v4129_v27 = vpack.i.bf16 %v5198_v44, %v5194_v63  ;;  %v4134_v26 = vpack.i.bf16 %v5190_v42, %v5202_v47 }
 0x263   : > { %4130 = vrot.lane.b32.xlu1 %v4129_v27, %s4207_s12  ;;  %4135 = vrot.lane.b32.xlu0 %v4134_v26, %s4207_s12  ;;  %v1853_v27 = vld [vmem:[%s6716_s3 + $0xa08] sm:$0xff] }
 0x264   : > { %v1761_v26 = vld [vmem:[%s6716_s3 + $0x728] sm:$0xff] }
 0x267   : > { %1460 = vrot.lane.b32.xlu1 %v5215_v5, %s4207_s12 }
 0x2ab   : > { %v5219_v12 = vpop.permute.xlu1 %4115  ;;  %v4111_v25 = vpop.permute.xlu0 %4110 }
 0x2ac   : > { %v4118_v30 = vunpack.i.h.bf16 %v5219_v12  ;;  %v4117_v31 = vunpack.i.l.bf16 %v5219_v12  ;;  %v4113_v34 = vunpack.i.h.bf16 %v4111_v25  ;;  %v4112_v49 = vunpack.i.l.bf16 %v4111_v25  ;;  %v1848_v25 = vld [vmem:[%s6716_s3 + $0x9e0] sm:$0xff]  ;;  %v1917_v12 = vld [vmem:[%s6716_s3 + $0xc08] sm:$0xff] }
 0x2ae   : > { %v1482_v50 = vsel %vm460_vm6, %v4112_v49, %v4117_v31  ;;  %v1481_v35 = vsel %vm460_vm6, %v4113_v34, %v4112_v49  ;;  %v1483_v40 = vsel %vm460_vm6, %v4117_v31, %v4118_v30  ;;  %v1760_v31 = vld [vmem:[%s6716_s3 + $0x720] sm:$0xff]  ;;  %v1757_v49 = vld [vmem:[%s6716_s3 + $0x708] sm:$0xff] }
 0x2af   : > { %v5229_v43 = vmax.f32 %v5128_v6, %v1482_v50  ;;  %v4121_v0 = vpop.permute.xlu1 %4120  ;;  %v4126_v51 = vpop.permute.xlu0 %4125  ;;  %v5232_v2 = vmax.f32 %v5124_v39, %v1481_v35  ;;  %v5235_v16 = vmax.f32 %v5116_v52, %v1483_v40  ;;  %v1863_v39 = vld [vmem:[%s6716_s3 + $0xa58] sm:$0xff]  ;;  %v1844_v50 = vld [vmem:[%s6716_s3 + $0x9c0] sm:$0xff]  ;;  %v1842_v40 = vld [vmem:[%s6716_s3 + $0x9b0] sm:$0xff] }
 0x2b0   : > { %v4123_v56 = vunpack.i.h.bf16 %v4121_v0  ;;  %v4122_v60 = vunpack.i.l.bf16 %v4121_v0  ;;  %v4128_v45 = vunpack.i.h.bf16 %v4126_v51  ;;  %v4127_v29 = vunpack.i.l.bf16 %v4126_v51  ;;  %v1755_v35 = vld [vmem:[%s6716_s3 + $0x6f8] sm:$0xff]  ;;  %v1754_v0 = vld [vmem:[%s6716_s3 + $0x6f0] sm:$0xff]  ;;  %v1841_v51 = vld [vmem:[%s6716_s3 + $0x9a8] sm:$0xff] }
 0x2b1   : > { %2009 = vmatprep.mubr.f32.mxu1 %v5232_v2  ;;  %2086 = vmatprep.mubr.f32.mxu0 %v5235_v16 }
 0x2b2   : > { %v1382_v6 = vsel %vm334_vm8, %v4123_v56, %v4122_v60  ;;  %v1383_v52 = vsel %vm334_vm8, %v4122_v60, %v4108_v4  ;;  %2087 = vmatmul.mubr.f32.vlgmr.msra.gmra.mxu0 %v5229_v43  ;;  %v1860_v4 = vld [vmem:[%s6716_s3 + $0xa40] sm:$0xff]  ;;  %v1388_v28 = vsel %vm334_vm8, %v4128_v45, %v4127_v29  ;;  %v1387_v59 = vsel %vm334_vm8, %v4107_v15, %v4128_v45  ;;  %v1850_v15 = vld [vmem:[%s6716_s3 + $0x9f0] sm:$0xff]  ;;  %v1839_v60 = vld [vmem:[%s6716_s3 + $0x998] sm:$0xff] }
 0x2b3   : > { %v1373_v18 = vpop.permute.xlu1 %1372  ;;  %v1445_v21 = vpop.permute.xlu0 %1444  ;;  %v5257_v36 = vmax.f32 %v1312_v11, %v1383_v52  ;;  %2177 = vmatpush1.msra.mxu0 %v1865_v3  ;;  %v5276_v11 = vmax.f32 %v1311_v9, %v1382_v6  ;;  %v5293_v9 = vmax.f32 %v1317_v55, %v1388_v28  ;;  %v1766_v55 = vld [vmem:[%s6716_s3 + $0x750] sm:$0xff]  ;;  %v5342_v54 = vmax.f32 %v1316_v19, %v1387_v59  ;;  %v1752_v56 = vld [vmem:[%s6716_s3 + $0x6e0] sm:$0xff]  ;;  %v1751_v45 = vld [vmem:[%s6716_s3 + $0x6d8] sm:$0xff] }
 0x2b4   : > { %v1389_v37 = vsel %vm334_vm8, %v4127_v29, %v1373_v18  ;;  %v1480_v41 = vsel %vm460_vm6, %v1445_v21, %v4113_v34  ;;  %2178 = vmatprep.subr.mxu0 %v1863_v39  ;;  %v5306_v48 = vmax.f32 %v1319_v1, %v1373_v18  ;;  %v1851_v1 = vld [vmem:[%s6716_s3 + $0x9f8] sm:$0xff]  ;;  %v1758_v19 = vld [vmem:[%s6716_s3 + $0x710] sm:$0xff]  ;;  %v1845_v34 = vld [vmem:[%s6716_s3 + $0x9c8] sm:$0xff] }
 0x2b5   : > { %v5267_v22 = vmax.f32 %v1318_v58, %v1389_v37  ;;  %v5270_v33 = vmax.f32 %v5164_v10, %v1480_v41  ;;  %v4139_v20 = vpack.i.bf16 %v5257_v36, %v5253_v23  ;;  %2179 = vmatpush1.msra.mxu0 %v1862_v62  ;;  %v1857_v58 = vld [vmem:[%s6716_s3 + $0xa28] sm:$0xff]  ;;  %v1856_v10 = vld [vmem:[%s6716_s3 + $0xa20] sm:$0xff]  ;;  %v4149_v14 = vpack.i.bf16 %v5312_v32, %v5293_v9  ;;  %v1838_v29 = vld [vmem:[%s6716_s3 + $0x990] sm:$0xff] }
 0x2b6   : > { %2180 = vmatprep.subr.mxu0 %v1860_v4  ;;  %v1749_v3 = vld [vmem:[%s6716_s3 + $0x6c8] sm:$0xff]  ;;  %v1836_v39 = vld [vmem:[%s6716_s3 + $0x980] sm:$0xff]  ;;  %v1835_v52 = vld [vmem:[%s6716_s3 + $0x978] sm:$0xff] }
 0x2b7   : > { %4140 = vrot.lane.b32.xlu0 %v4139_v20, %s4207_s12  ;;  %2010 = vmatmul.mubr.f32.vlgmr.msra.gmra.mxu1 %v5270_v33  ;;  %v4144_v24 = vpack.i.bf16 %v5267_v22, %v5276_v11  ;;  %v1748_v6 = vld [vmem:[%s6716_s3 + $0x6c0] sm:$0xff]  ;;  %v1746_v62 = vld [vmem:[%s6716_s3 + $0x6b0] sm:$0xff]  ;;  %v1833_v18 = vld [vmem:[%s6716_s3 + $0x968] sm:$0xff] }
 0x2b8   : > { %2181 = vmatpush1.msra.mxu0 %v1859_v57  ;;  %2100 = vmatpush1.msra.mxu1 %v1769_v46  ;;  %v1745_v21 = vld [vmem:[%s6716_s3 + $0x6a8] sm:$0xff]  ;;  %v1832_v4 = vld [vmem:[%s6716_s3 + $0x960] sm:$0xff]  ;;  %v1743_v28 = vld [vmem:[%s6716_s3 + $0x698] sm:$0xff] }
 0x2b9   : > { %4145 = vrot.lane.b32.xlu1 %v4144_v24, %s4207_s12  ;;  %2182 = vmatprep.subr.mxu0 %v1857_v58  ;;  %v1830_v37 = vld [vmem:[%s6716_s3 + $0x950] sm:$0xff]  ;;  %v1829_v20 = vld [vmem:[%s6716_s3 + $0x948] sm:$0xff]  ;;  %v1740_v57 = vld [vmem:[%s6716_s3 + $0x680] sm:$0xff] }
 0x2ba   : > { %2183 = vmatpush1.msra.mxu0 %v1856_v10  ;;  %2101 = vmatprep.subr.mxu1 %v1767_v38  ;;  %v1742_v41 = vld [vmem:[%s6716_s3 + $0x690] sm:$0xff]  ;;  %v1827_v46 = vld [vmem:[%s6716_s3 + $0x938] sm:$0xff]  ;;  %v1737_v10 = vld [vmem:[%s6716_s3 + $0x668] sm:$0xff] }
 0x2bb   : > { %1478 = vrot.lane.b32.xlu0 %v5306_v48, %s4207_s12  ;;  %2184 = vmatprep.subr.mxu0 %v1854_v61  ;;  %v1739_v58 = vld [vmem:[%s6716_s3 + $0x678] sm:$0xff]  ;;  %v1826_v24 = vld [vmem:[%s6716_s3 + $0x930] sm:$0xff]  ;;  %v1824_v38 = vld [vmem:[%s6716_s3 + $0x920] sm:$0xff] }
 0x2bc   : > { %2102 = vmatpush1.msra.mxu1 %v1766_v55  ;;  %2185 = vmatpush1.msra.mxu0 %v1853_v27  ;;  %v1736_v61 = vld [vmem:[%s6716_s3 + $0x660] sm:$0xff]  ;;  %v1823_v55 = vld [vmem:[%s6716_s3 + $0x918] sm:$0xff]  ;;  %v1734_v27 = vld [vmem:[%s6716_s3 + $0x650] sm:$0xff] }
 0x2bd   : > { %4150 = vrot.lane.b32.xlu1 %v4149_v14, %s4207_s12  ;;  %2103 = vmatprep.subr.mxu1 %v1764_v13  ;;  %v1821_v59 = vld [vmem:[%s6716_s3 + $0x908] sm:$0xff]  ;;  %v1820_v14 = vld [vmem:[%s6716_s3 + $0x900] sm:$0xff] }
 0x2be   : > { %2186 = vmatprep.subr.mxu0 %v1851_v1  ;;  %2104 = vmatpush1.msra.mxu1 %v1763_v8  ;;  %v1733_v13 = vld [vmem:[%s6716_s3 + $0x648] sm:$0xff]  ;;  %v1731_v1 = vld [vmem:[%s6716_s3 + $0x638] sm:$0xff]  ;;  %v1914_v8 = vld [vmem:[%s6716_s3 + $0xbf0] sm:$0xff] }
 0x2bf   : > { %1472 = vrot.lane.b32.xlu0 %v5342_v54, %s4207_s12  ;;  %2187 = vmatpush1.msra.mxu0 %v1850_v15  ;;  %v1730_v15 = vld [vmem:[%s6716_s3 + $0x630] sm:$0xff]  ;;  %s4214_s12 = smov 109  }
 0x2c0   : > { %2105 = vmatprep.subr.mxu1 %v1761_v26  ;;  %2188 = vmatprep.subr.mxu0 %v1848_v25  ;;  %v1913_v26 = vld [vmem:[%s6716_s3 + $0xbe8] sm:$0xff]  ;;  %v1728_v25 = vld [vmem:[%s6716_s3 + $0x620] sm:$0xff] }
 0x2c1   : > { %2106 = vmatpush1.msra.mxu1 %v1760_v31  ;;  %2189 = vmatpush1.msra.mxu0 %v1847_v17  ;;  %v1911_v31 = vld [vmem:[%s6716_s3 + $0xbd8] sm:$0xff] }
 0x2c2   : > { %2107 = vmatprep.subr.mxu1 %v1758_v19  ;;  %2190 = vmatprep.subr.mxu0 %v1845_v34  ;;  %v1727_v17 = vld [vmem:[%s6716_s3 + $0x618] sm:$0xff]  ;;  %v1910_v19 = vld [vmem:[%s6716_s3 + $0xbd0] sm:$0xff] }
 0x2c3   : > { %2108 = vmatpush1.msra.mxu1 %v1757_v49  ;;  %2191 = vmatpush1.msra.mxu0 %v1844_v50  ;;  %v1725_v50 = vld [vmem:[%s6716_s3 + $0x608] sm:$0xff] }
 0x2c4   : > { %2109 = vmatprep.subr.mxu1 %v1755_v35  ;;  %2192 = vmatprep.subr.mxu0 %v1842_v40  ;;  %v1908_v35 = vld [vmem:[%s6716_s3 + $0xbc0] sm:$0xff] }
 0x2c5   : > { %2110 = vmatpush1.msra.mxu1 %v1754_v0  ;;  %2193 = vmatpush1.msra.mxu0 %v1841_v51 }
 0x2c6   : > { %2111 = vmatprep.subr.mxu1 %v1752_v56  ;;  %2194 = vmatprep.subr.mxu0 %v1839_v60  ;;  %v1724_v56 = vld [vmem:[%s6716_s3 + $0x600] sm:$0xff]  ;;  %v1907_v60 = vld [vmem:[%s6716_s3 + $0xbb8] sm:$0xff] }
 0x2c7   : > { %2112 = vmatpush1.msra.mxu1 %v1751_v45  ;;  %2195 = vmatpush1.msra.mxu0 %v1838_v29  ;;  %v1818_v45 = vld [vmem:[%s6716_s3 + $0x8f0] sm:$0xff]  ;;  %v1905_v29 = vld [vmem:[%s6716_s3 + $0xba8] sm:$0xff] }
 0x2c8   : > { %2113 = vmatprep.subr.mxu1 %v1749_v3  ;;  %2196 = vmatprep.subr.mxu0 %v1836_v39 }
 0x2c9   : > { %2114 = vmatpush1.msra.mxu1 %v1748_v6  ;;  %2197 = vmatpush1.msra.mxu0 %v1835_v52  ;;  %v1817_v52 = vld [vmem:[%s6716_s3 + $0x8e8] sm:$0xff] }
 0x2ca   : > { %2115 = vmatprep.subr.mxu1 %v1746_v62  ;;  %2198 = vmatprep.subr.mxu0 %v1833_v18 }
 0x2cb   : > { %2116 = vmatpush1.msra.mxu1 %v1745_v21  ;;  %2199 = vmatpush1.msra.mxu0 %v1832_v4  ;;  %v1815_v4 = vld [vmem:[%s6716_s3 + $0x8d8] sm:$0xff] }
 0x2cc   : > { %2117 = vmatprep.subr.mxu1 %v1743_v28  ;;  %2200 = vmatprep.subr.mxu0 %v1830_v37  ;;  %v1902_v37 = vld [vmem:[%s6716_s3 + $0xb90] sm:$0xff] }
 0x2cd   : > { %2118 = vmatpush1.msra.mxu1 %v1742_v41  ;;  %2201 = vmatpush1.msra.mxu0 %v1829_v20  ;;  %v1814_v41 = vld [vmem:[%s6716_s3 + $0x8d0] sm:$0xff]  ;;  %v1901_v20 = vld [vmem:[%s6716_s3 + $0xb88] sm:$0xff] }
 0x2ce   : > { %2119 = vmatprep.subr.mxu1 %v1740_v57  ;;  %2202 = vmatprep.subr.mxu0 %v1827_v46  ;;  %v1899_v57 = vld [vmem:[%s6716_s3 + $0xb78] sm:$0xff] }
 0x2cf   : > { %2120 = vmatpush1.msra.mxu1 %v1739_v58  ;;  %2203 = vmatpush1.msra.mxu0 %v1826_v24  ;;  %v1811_v46 = vld [vmem:[%s6716_s3 + $0x8b8] sm:$0xff]  ;;  %v1898_v58 = vld [vmem:[%s6716_s3 + $0xb70] sm:$0xff]  ;;  %v1809_v24 = vld [vmem:[%s6716_s3 + $0x8a8] sm:$0xff] }
 0x2d0   : > { %2121 = vmatprep.subr.mxu1 %v1737_v10  ;;  %2204 = vmatprep.subr.mxu0 %v1824_v38  ;;  %v1896_v10 = vld [vmem:[%s6716_s3 + $0xb60] sm:$0xff] }
 0x2d1   : > { %2122 = vmatpush1.msra.mxu1 %v1736_v61  ;;  %2205 = vmatpush1.msra.mxu0 %v1823_v55  ;;  %v1808_v38 = vld [vmem:[%s6716_s3 + $0x8a0] sm:$0xff]  ;;  %v1895_v61 = vld [vmem:[%s6716_s3 + $0xb58] sm:$0xff]  ;;  %v1806_v55 = vld [vmem:[%s6716_s3 + $0x890] sm:$0xff] }
 0x2d2   : > { %2123 = vmatprep.subr.mxu1 %v1734_v27  ;;  %2206 = vmatprep.subr.mxu0 %v1821_v59  ;;  %v1893_v27 = vld [vmem:[%s6716_s3 + $0xb48] sm:$0xff] }
 0x2d3   : > { %2124 = vmatpush1.msra.mxu1 %v1733_v13  ;;  %2207 = vmatpush1.msra.mxu0 %v1820_v14  ;;  %v1805_v59 = vld [vmem:[%s6716_s3 + $0x888] sm:$0xff]  ;;  %v1892_v13 = vld [vmem:[%s6716_s3 + $0xb40] sm:$0xff]  ;;  %v1803_v14 = vld [vmem:[%s6716_s3 + $0x878] sm:$0xff] }
 0x2d4   : > { %2125 = vmatprep.subr.mxu1 %v1731_v1  ;;  %2208 = vmatprep.subr.mxu0 %v1914_v8  ;;  %v1890_v1 = vld [vmem:[%s6716_s3 + $0xb30] sm:$0xff] }
 0x2d5   : > { %v5490_v34 = vpop.permute.xlu1 %4130  ;;  %v5492_v49 = vpop.permute.xlu0 %4135  ;;  %2126 = vmatpush1.msra.mxu1 %v1730_v15  ;;  %2209 = vmatpush2.msra.mxu0 %v1913_v26  ;;  %v1802_v8 = vld [vmem:[%s6716_s3 + $0x870] sm:$0xff]  ;;  %v1889_v15 = vld [vmem:[%s6716_s3 + $0xb28] sm:$0xff]  ;;  %v1800_v26 = vld [vmem:[%s6716_s3 + $0x860] sm:$0xff] }
 0x2d6   : > { %v4133_v40 = vunpack.i.h.bf16 %v5490_v34  ;;  %v4132_v0 = vunpack.i.l.bf16 %v5490_v34  ;;  %v4137_v51 = vunpack.i.l.bf16 %v5492_v49  ;;  %2127 = vmatprep.subr.mxu1 %v1728_v25  ;;  %2210 = vmatprep.subr.mxu0 %v1911_v31  ;;  %v4138_v3 = vunpack.i.h.bf16 %v5492_v49  ;;  %v1887_v25 = vld [vmem:[%s6716_s3 + $0xb18] sm:$0xff]  ;;  %v1621_v34 = vld [vmem:[%s6716_s3 + $0x2c8] sm:$0xff] }
 0x2d7   : > { %2128 = vmatpush1.msra.mxu1 %v1727_v17  ;;  %2211 = vmatpush2.msra.mxu0 %v1910_v19  ;;  %v1799_v31 = vld [vmem:[%s6716_s3 + $0x858] sm:$0xff]  ;;  %v1886_v17 = vld [vmem:[%s6716_s3 + $0xb10] sm:$0xff]  ;;  %v1797_v19 = vld [vmem:[%s6716_s3 + $0x848] sm:$0xff] }
 0x2d8   : > { %v1491_v39 = vsel %vm460_vm6, %v4132_v0, %v4133_v40  ;;  %v1490_v6 = vsel %vm460_vm6, %v4137_v51, %v4132_v0  ;;  %2129 = vmatprep.subr.mxu1 %v1725_v50  ;;  %2212 = vmatprep.subr.mxu0 %v1908_v35  ;;  %v1884_v50 = vld [vmem:[%s6716_s3 + $0xb00] sm:$0xff]  ;;  %v1883_v0 = vld [vmem:[%s6716_s3 + $0xaf8] sm:$0xff] }
 0x2d9   : > { %v5525_v62 = vpop.permute.xlu1 %1460  ;;  %v5528_v18 = vmax.f32 %v5194_v63, %v1491_v39  ;;  %v5531_v21 = vmax.f32 %v5202_v47, %v1490_v6  ;;  %2130 = vmatpush1.msra.mxu1 %v1724_v56  ;;  %2213 = vmatpush2.msra.mxu0 %v1907_v60  ;;  %v1904_v63 = vld [vmem:[%s6716_s3 + $0xba0] sm:$0xff]  ;;  %v1794_v56 = vld [vmem:[%s6716_s3 + $0x830] sm:$0xff]  ;;  %v1881_v60 = vld [vmem:[%s6716_s3 + $0xae8] sm:$0xff] }
 0x2da   : > { %v1487_v28 = vsel %vm460_vm6, %v4138_v3, %v5525_v62  ;;  %2131 = vmatprep.subr.mxu1 %v1818_v45  ;;  %2214 = vmatprep.subr.mxu0 %v1905_v29  ;;  %v1796_v35 = vld [vmem:[%s6716_s3 + $0x840] sm:$0xff]  ;;  %v1793_v45 = vld [vmem:[%s6716_s3 + $0x828] sm:$0xff]  ;;  %v1791_v39 = vld [vmem:[%s6716_s3 + $0x818] sm:$0xff] }
 0x2db   : > { %v5544_v47 = vmax.f32 %v5190_v42, %v1487_v28  ;;  %2092 = vmatprep.mubr.f32.mxu0 %v5528_v18  ;;  %2132 = vmatpush2.msra.mxu1 %v1817_v52  ;;  %v1812_v42 = vld [vmem:[%s6716_s3 + $0x8c0] sm:$0xff]  ;;  %v1878_v6 = vld [vmem:[%s6716_s3 + $0xad0] sm:$0xff] }
 0x2dc   : > { %2093 = vmatmul.mubr.f32.gmra.mxu0 %v5531_v21  ;;  %2133 = vmatprep.subr.mxu1 %v1815_v4  ;;  %v1880_v29 = vld [vmem:[%s6716_s3 + $0xae0] sm:$0xff]  ;;  %v1790_v52 = vld [vmem:[%s6716_s3 + $0x810] sm:$0xff]  ;;  %v1877_v4 = vld [vmem:[%s6716_s3 + $0xac8] sm:$0xff] }
 0x2dd   : > { %2240 = vmatprep.mubr.f32.mxu0 %v5544_v47  ;;  %2215 = vmatpush2.msra.mxu0 %v1904_v63  ;;  %v1788_v28 = vld [vmem:[%s6716_s3 + $0x800] sm:$0xff]  ;;  %v1875_v63 = vld [vmem:[%s6716_s3 + $0xab8] sm:$0xff] }
 0x2de   : > { %2216 = vmatprep.subr.mxu0 %v1902_v37  ;;  %2134 = vmatpush2.msra.mxu1 %v1814_v41  ;;  %v1787_v37 = vld [vmem:[%s6716_s3 + $0x7f8] sm:$0xff]  ;;  %v1874_v41 = vld [vmem:[%s6716_s3 + $0xab0] sm:$0xff] }
 0x2df   : > { %2217 = vmatpush2.msra.mxu0 %v1901_v20  ;;  %2135 = vmatprep.subr.mxu1 %v1812_v42  ;;  %v1785_v20 = vld [vmem:[%s6716_s3 + $0x7e8] sm:$0xff]  ;;  %v1872_v42 = vld [vmem:[%s6716_s3 + $0xaa0] sm:$0xff] }
 0x2e0   : > { %2218 = vmatprep.subr.mxu0 %v1899_v57  ;;  %2136 = vmatpush2.msra.mxu1 %v1811_v46  ;;  %v1784_v57 = vld [vmem:[%s6716_s3 + $0x7e0] sm:$0xff]  ;;  %v1871_v46 = vld [vmem:[%s6716_s3 + $0xa98] sm:$0xff] }
 0x2e1   : > { %2219 = vmatpush2.msra.mxu0 %v1898_v58  ;;  %2137 = vmatprep.subr.mxu1 %v1809_v24  ;;  %v1782_v58 = vld [vmem:[%s6716_s3 + $0x7d0] sm:$0xff]  ;;  %v1869_v24 = vld [vmem:[%s6716_s3 + $0xa88] sm:$0xff] }
 0x2e2   : > { %2220 = vmatprep.subr.mxu0 %v1896_v10  ;;  %2138 = vmatpush2.msra.mxu1 %v1808_v38  ;;  %v1781_v10 = vld [vmem:[%s6716_s3 + $0x7c8] sm:$0xff]  ;;  %v1868_v38 = vld [vmem:[%s6716_s3 + $0xa80] sm:$0xff] }
 0x2e3   : > { %2221 = vmatpush2.msra.mxu0 %v1895_v61  ;;  %2139 = vmatprep.subr.mxu1 %v1806_v55  ;;  %v1779_v61 = vld [vmem:[%s6716_s3 + $0x7b8] sm:$0xff]  ;;  %v1778_v55 = vld [vmem:[%s6716_s3 + $0x7b0] sm:$0xff] }
 0x2e4   : > { %2222 = vmatprep.subr.mxu0 %v1893_v27  ;;  %2140 = vmatpush2.msra.mxu1 %v1805_v59  ;;  %v1926_v27 = vld [vmem:[%s6716_s3 + $0xc50] sm:$0x7]  ;;  %v1776_v59 = vld [vmem:[%s6716_s3 + $0x7a0] sm:$0xff] }
 0x2e5   : > { %2223 = vmatpush2.msra.mxu0 %v1892_v13  ;;  %2141 = vmatprep.subr.mxu1 %v1803_v14  ;;  %v1775_v13 = vld [vmem:[%s6716_s3 + $0x798] sm:$0xff]  ;;  %v1773_v14 = vld [vmem:[%s6716_s3 + $0x788] sm:$0xff] }
 0x2e6   : > { %2224 = vmatprep.subr.mxu0 %v1890_v1  ;;  %2142 = vmatpush2.msra.mxu1 %v1802_v8  ;;  %v1772_v1 = vld [vmem:[%s6716_s3 + $0x780] sm:$0xff]  ;;  %v1627_v8 = vld [vmem:[%s6716_s3 + $0x2f8] sm:$0xff] }
 0x2e7   : > { %2225 = vmatpush2.msra.mxu0 %v1889_v15  ;;  %2143 = vmatprep.subr.mxu1 %v1800_v26 }
 0x2e8   : > { %2226 = vmatprep.subr.mxu0 %v1887_v25  ;;  %2144 = vmatpush2.msra.mxu1 %v1799_v31 }
 0x2e9   : > { %2227 = vmatpush2.msra.mxu0 %v1886_v17  ;;  %2145 = vmatprep.subr.mxu1 %v1797_v19 }
 0x2ea   : > { %2228 = vmatprep.subr.mxu0 %v1884_v50  ;;  %2146 = vmatpush2.msra.mxu1 %v1796_v35 }
 0x2eb   : > { %2229 = vmatpush2.msra.mxu0 %v1883_v0  ;;  %2147 = vmatprep.subr.mxu1 %v1794_v56 }
 0x2ec   : > { %2230 = vmatprep.subr.mxu0 %v1881_v60  ;;  %2148 = vmatpush2.msra.mxu1 %v1793_v45  ;;  %v1925_v45 = vld [vmem:[%s6716_s3 + $0xc48] sm:$0x7] }
 0x2ed   : > { %2231 = vmatpush2.msra.mxu0 %v1880_v29  ;;  %2149 = vmatprep.subr.mxu1 %v1791_v39 }
 0x2ee   : > { %2232 = vmatprep.subr.mxu0 %v1878_v6  ;;  %2150 = vmatpush2.msra.mxu1 %v1790_v52 }
 0x2ef   : > { %2233 = vmatpush2.msra.mxu0 %v1877_v4  ;;  %2151 = vmatprep.subr.mxu1 %v1788_v28 }
 0x2f0   : > { %2234 = vmatprep.subr.mxu0 %v1875_v63  ;;  %2152 = vmatpush2.msra.mxu1 %v1787_v37  ;;  %v1919_v63 = vld [vmem:[%s6716_s3 + $0xc18] sm:$0xff] }
 0x2f1   : > { %2235 = vmatpush2.msra.mxu0 %v1874_v41  ;;  %2153 = vmatprep.subr.mxu1 %v1785_v20 }
 0x2f2   : > { %2236 = vmatprep.subr.mxu0 %v1872_v42  ;;  %2154 = vmatpush2.msra.mxu1 %v1784_v57  ;;  %v1579_v42 = vld [vmem:[%s6716_s3 + $0x178] sm:$0xff] }
 0x2f3   : > { %2237 = vmatpush2.msra.mxu0 %v1871_v46  ;;  %2155 = vmatprep.subr.mxu1 %v1782_v58  ;;  %v1624_v46 = vld [vmem:[%s6716_s3 + $0x2e0] sm:$0xff] }
 0x2f4   : > { %2238 = vmatprep.subr.mxu0 %v1869_v24  ;;  %2156 = vmatpush2.msra.mxu1 %v1781_v10  ;;  %v1576_v58 = vld [vmem:[%s6716_s3 + $0x160] sm:$0xff]  ;;  %v1675_v24 = vld [vmem:[%s6716_s3 + $0x478] sm:$0xff] }
 0x2f5   : > { %2239 = vmatpush2.msra.mxu0 %v1868_v38  ;;  %2157 = vmatprep.subr.mxu1 %v1779_v61  ;;  %v1573_v38 = vld [vmem:[%s6716_s3 + $0x148] sm:$0xff]  ;;  %v1570_v61 = vld [vmem:[%s6716_s3 + $0x130] sm:$0xff] }
 0x2f6   : > { %2158 = vmatpush2.msra.mxu1 %v1778_v55  ;;  %3769 = vmatprep.subr.msk.mxu0 %vm1935_vm10, %v1926_v27  ;;  %v1717_v55 = vld [vmem:[%s6716_s3 + $0x5c8] sm:$0xff]  ;;  %v1615_v27 = vld [vmem:[%s6716_s3 + $0x298] sm:$0xff] }
 0x2f7   : > { %2159 = vmatprep.subr.mxu1 %v1776_v59 }
 0x2f8   : > { %2160 = vmatpush2.msra.mxu1 %v1775_v13  ;;  %v1669_v13 = vld [vmem:[%s6716_s3 + $0x448] sm:$0xff] }
 0x2f9   : > { %2161 = vmatprep.subr.mxu1 %v1773_v14  ;;  %v1567_v14 = vld [vmem:[%s6716_s3 + $0x118] sm:$0xff] }
 0x2fa   : > { %2162 = vmatpush2.msra.mxu1 %v1772_v1  ;;  %v1666_v1 = vld [vmem:[%s6716_s3 + $0x430] sm:$0xff] }
 0x2fb   : > { %3803 = vmatprep.subr.mxu1 %v1627_v8  ;;  %v1564_v8 = vld [vmem:[%s6716_s3 + $0x100] sm:$0xff] }
 0x329   : > { %v4141_v15 = vpop.permute.xlu0 %4140 }
 0x32a   : > { %v4143_v26 = vunpack.i.h.bf16 %v4141_v15  ;;  %v4142_v25 = vunpack.i.l.bf16 %v4141_v15  ;;  %v1711_v15 = vld [vmem:[%s6716_s3 + $0x598] sm:$0xff] }
 0x32b   : > { %v4146_v31 = vpop.permute.xlu1 %4145 }
 0x32c   : > { %v1486_v17 = vsel %vm460_vm6, %v4142_v25, %v4138_v3  ;;  %v4148_v19 = vunpack.i.h.bf16 %v4146_v31  ;;  %v4147_v50 = vunpack.i.l.bf16 %v4146_v31  ;;  %v1489_v35 = vsel %vm460_vm6, %v4143_v26, %v4137_v51  ;;  %v1561_v31 = vld [vmem:[%s6716_s3 + $0xe8] sm:$0xff] }
 0x32d   : > { %v5722_v0 = vmax.f32 %v5253_v23, %v1486_v17  ;;  %v5724_v56 = vpop.permute.xlu0 %1478  ;;  %v5727_v60 = vmax.f32 %v5257_v36, %v1489_v35  ;;  %v1923_v36 = vld [vmem:[%s6716_s3 + $0xc38] sm:$0xff]  ;;  %v1708_v17 = vld [vmem:[%s6716_s3 + $0x580] sm:$0xff]  ;;  %v1705_v35 = vld [vmem:[%s6716_s3 + $0x568] sm:$0xff] }
 0x32e   : > { %v1495_v3 = vsel %vm460_vm6, %v4148_v19, %v5724_v56  ;;  %v1488_v29 = vsel %vm460_vm6, %v4147_v50, %v4143_v26  ;;  %v5842_v59 = vmax.f32 %v5306_v48, %v5724_v56  ;;  %v1612_v48 = vld [vmem:[%s6716_s3 + $0x280] sm:$0xff]  ;;  %v1609_v26 = vld [vmem:[%s6716_s3 + $0x268] sm:$0xff]  ;;  %v1558_v50 = vld [vmem:[%s6716_s3 + $0xd0] sm:$0xff] }
 0x32f   : > { %v5736_v49 = vmax.f32 %v5267_v22, %v1495_v3  ;;  %v4151_v51 = vpop.permute.xlu1 %4150  ;;  %2015 = vmatprep.mubr.f32.mxu1 %v5727_v60  ;;  %2241 = vmatmul.mubr.f32.vlgmr.msra.gmra.mxu0 %v5722_v0  ;;  %v5741_v23 = vmax.f32 %v5276_v11, %v1488_v29  ;;  %v1922_v22 = vld [vmem:[%s6716_s3 + $0xc30] sm:$0xff]  ;;  %v1920_v11 = vld [vmem:[%s6716_s3 + $0xc20] sm:$0xff]  ;;  %v1603_v56 = vld [vmem:[%s6716_s3 + $0x238] sm:$0xff] }
 0x330   : > { %v4153_v39 = vunpack.i.h.bf16 %v4151_v51  ;;  %v4152_v6 = vunpack.i.l.bf16 %v4151_v51  ;;  %3770 = vmatpush1.msk.msra.mxu0 %vm1935_vm10, %v1925_v45  ;;  %v1657_v45 = vld [vmem:[%s6716_s3 + $0x3e8] sm:$0xff]  ;;  %v1555_v3 = vld [vmem:[%s6716_s3 + $0xb8] sm:$0xff]  ;;  %v1702_v29 = vld [vmem:[%s6716_s3 + $0x550] sm:$0xff] }
 0x331   : > { %v1473_v52 = vpop.permute.xlu0 %1472  ;;  %2016 = vmatmul.mubr.f32.gmra.mxu1 %v5741_v23  ;;  %2246 = vmatprep.mubr.f32.mxu0 %v5736_v49  ;;  %v1600_v51 = vld [vmem:[%s6716_s3 + $0x220] sm:$0xff] }
 0x332   : > { %v1484_v4 = vsel %vm460_vm6, %v4118_v30, %v4153_v39  ;;  %2279 = vmatprep.subr.mxu0 %v1923_v36  ;;  %v1485_v28 = vsel %vm460_vm6, %v4153_v39, %v4142_v25  ;;  %v1493_v41 = vsel %vm460_vm6, %v1473_v52, %v4152_v6  ;;  %v1494_v30 = vsel %vm460_vm6, %v4152_v6, %v4148_v19  ;;  %v1663_v25 = vld [vmem:[%s6716_s3 + $0x418] sm:$0xff]  ;;  %v1660_v19 = vld [vmem:[%s6716_s3 + $0x400] sm:$0xff]  ;;  %v1654_v36 = vld [vmem:[%s6716_s3 + $0x3d0] sm:$0xff] }
 0x333   : > { %v5763_v37 = vmax.f32 %v5120_v53, %v1484_v4  ;;  %2280 = vmatpush1.msra.mxu0 %v1922_v22  ;;  %v5767_v20 = vmax.f32 %v5312_v32, %v1485_v28  ;;  %v5778_v53 = vmax.f32 %v5293_v9, %v1494_v30  ;;  %v1916_v32 = vld [vmem:[%s6716_s3 + $0xc00] sm:$0xff]  ;;  %v5784_v57 = vmax.f32 %v5342_v54, %v1493_v41  ;;  %v1723_v54 = vld [vmem:[%s6716_s3 + $0x5f8] sm:$0xff]  ;;  %v1597_v22 = vld [vmem:[%s6716_s3 + $0x208] sm:$0xff] }
 0x334   : > { %2281 = vmatprep.subr.mxu0 %v1920_v11  ;;  %v1492_v9 = vsel %vm460_vm6, %v4133_v40, %v1473_v52  ;;  %v5806_v40 = vmax.f32 %v5215_v5, %v5525_v62  ;;  %v1720_v5 = vld [vmem:[%s6716_s3 + $0x5e0] sm:$0xff]  ;;  %v1618_v62 = vld [vmem:[%s6716_s3 + $0x2b0] sm:$0xff]  ;;  %v1699_v6 = vld [vmem:[%s6716_s3 + $0x538] sm:$0xff] }
 0x335   : > { %2163 = vmatprep.mubr.f32.mxu1 %v5767_v20  ;;  %2282 = vmatpush1.msra.mxu0 %v1919_v63  ;;  %v5813_v10 = vmax.f32 %v5198_v44, %v1492_v9  ;;  %v1672_v44 = vld [vmem:[%s6716_s3 + $0x460] sm:$0xff]  ;;  %v1651_v52 = vld [vmem:[%s6716_s3 + $0x3b8] sm:$0xff]  ;;  %v1549_v11 = vld [vmem:[%s6716_s3 + $0x88] sm:$0xff] }
 0x336   : > { %2164 = vmatmul.mubr.f32.vlgmr.msra.gmra.mxu1 %v5763_v37  ;;  %2283 = vmatprep.subr.mxu0 %v1917_v12  ;;  %v1552_v39 = vld [vmem:[%s6716_s3 + $0xa0] sm:$0xff]  ;;  %v1594_v28 = vld [vmem:[%s6716_s3 + $0x1f0] sm:$0xff]  ;;  %v1693_v12 = vld [vmem:[%s6716_s3 + $0x508] sm:$0xff] }
 0x337   : > { %2247 = vmatmul.mubr.f32.gmra.mxu0 %v5778_v53  ;;  %3804 = vmatpush3.msra.mxu1 %v1579_v42  ;;  %v1696_v4 = vld [vmem:[%s6716_s3 + $0x520] sm:$0xff]  ;;  %v1546_v41 = vld [vmem:[%s6716_s3 + $0x70] sm:$0xff]  ;;  %v1591_v30 = vld [vmem:[%s6716_s3 + $0x1d8] sm:$0xff] }
 0x338   : > { %2169 = vmatprep.mubr.f32.mxu1 %v5784_v57  ;;  %2284 = vmatpush1.msra.mxu0 %v1916_v32  ;;  %v1648_v63 = vld [vmem:[%s6716_s3 + $0x3a0] sm:$0xff]  ;;  %v1645_v42 = vld [vmem:[%s6716_s3 + $0x388] sm:$0xff]  ;;  %v1543_v32 = vld [vmem:[%s6716_s3 + $0x58] sm:$0xff] }
 0x339   : > { %3805 = vmatprep.subr.mxu1 %v1624_v46  ;;  %2317 = vmatprep.mubr.f32.mxu0 %v4209_v7  ;;  %v1690_v46 = vld [vmem:[%s6716_s3 + $0x4f0] sm:$0xff]  ;;  %v1588_v9 = vld [vmem:[%s6716_s3 + $0x1c0] sm:$0xff] }
 0x33a   : > { %3806 = vmatpush3.msra.mxu1 %v1576_v58  ;;  %3841 = vmatprep.subr.mxu0 %v1723_v54  ;;  %v1642_v58 = vld [vmem:[%s6716_s3 + $0x370] sm:$0xff]  ;;  %v1540_v54 = vld [vmem:[%s6716_s3 + $0x40] sm:$0xff] }
 0x33b   : > { %3771 = vmatmul.mubr.msk.f32.vlgmr.msra.gmra.mxu0 %vm1928_vm11, %v5806_v40  ;;  %3807 = vmatprep.subr.mxu1 %v1621_v34  ;;  %v1687_v34 = vld [vmem:[%s6716_s3 + $0x4d8] sm:$0xff] }
 0x33c   : > { %3842 = vmatpush3.msra.mxu0 %v1675_v24  ;;  %2170 = vmatmul.mubr.f32.gmra.mxu1 %v5813_v10  ;;  %v1585_v24 = vld [vmem:[%s6716_s3 + $0x1a8] sm:$0xff] }
 0x33d   : > { %3808 = vmatpush3.msra.mxu1 %v1573_v38  ;;  %3843 = vmatprep.subr.mxu0 %v1720_v5  ;;  %v1639_v38 = vld [vmem:[%s6716_s3 + $0x358] sm:$0xff]  ;;  %v1537_v5 = vld [vmem:[%s6716_s3 + $0x28] sm:$0xff] }
 0x33e   : > { %3809 = vmatprep.subr.mxu1 %v1618_v62  ;;  %2394 = vmatprep.mubr.f32.mxu1 %v5232_v2  ;;  %v1714_v2 = vld [vmem:[%s6716_s3 + $0x5b0] sm:$0xff]  ;;  %v1684_v62 = vld [vmem:[%s6716_s3 + $0x4c0] sm:$0xff] }
 0x33f   : > { %3844 = vmatpush3.msra.mxu0 %v1672_v44  ;;  %2323 = vmatprep.mubr.f32.mxu0 %v4209_v7  ;;  %v1582_v44 = vld [vmem:[%s6716_s3 + $0x190] sm:$0xff] }
 0x340   : > { %3810 = vmatpush3.msra.mxu1 %v1570_v61  ;;  %3845 = vmatprep.subr.mxu0 %v1717_v55  ;;  %v1636_v61 = vld [vmem:[%s6716_s3 + $0x340] sm:$0xff]  ;;  %v1534_v55 = vld [vmem:[%s6716_s3 + $0x10] sm:$0xff] }
 0x341   : > { %3772 = vmatmul.mubr.msk.f32.gmra.mxu0 %vm1928_vm11, %v5842_v59  ;;  %3811 = vmatprep.subr.mxu1 %v1615_v27  ;;  %v1681_v27 = vld [vmem:[%s6716_s3 + $0x4a8] sm:$0xff] }
 0x342   : > { %3846 = vmatpush3.msra.mxu0 %v1669_v13  ;;  %3812 = vmatpush3.msra.mxu1 %v1567_v14  ;;  %v1633_v13 = vld [vmem:[%s6716_s3 + $0x328] sm:$0xff]  ;;  %v1819_v14 = vld [vmem:[%s6716_s3 + $0x8f8] sm:$0xff] }
 0x343   : > { %3847 = vmatprep.subr.mxu0 %v1714_v2  ;;  %2469 = vmatprep.mubr.f32.mxu0 %v5235_v16  ;;  %v1606_v16 = vld [vmem:[%s6716_s3 + $0x250] sm:$0xff] }
 0x344   : > { %3813 = vmatprep.subr.mxu1 %v1612_v48  ;;  %3848 = vmatpush3.msra.mxu0 %v1666_v1  ;;  %v1678_v2 = vld [vmem:[%s6716_s3 + $0x490] sm:$0xff]  ;;  %v1771_v48 = vld [vmem:[%s6716_s3 + $0x778] sm:$0xff] }
 0x345   : > { %3814 = vmatpush3.msra.mxu1 %v1564_v8  ;;  %3849 = vmatprep.subr.mxu0 %v1711_v15  ;;  %v1630_v1 = vld [vmem:[%s6716_s3 + $0x310] sm:$0xff]  ;;  %v1816_v8 = vld [vmem:[%s6716_s3 + $0x8e0] sm:$0xff] }
 0x346   : > { %3815 = vmatprep.subr.mxu1 %v1609_v26  ;;  %3850 = vmatpush3.msra.mxu0 %v1663_v25  ;;  %v1768_v15 = vld [vmem:[%s6716_s3 + $0x760] sm:$0xff]  ;;  %v1813_v26 = vld [vmem:[%s6716_s3 + $0x8c8] sm:$0xff] }
 0x347   : > { %3816 = vmatpush3.msra.mxu1 %v1561_v31  ;;  %3851 = vmatprep.subr.mxu0 %v1708_v17  ;;  %v1765_v25 = vld [vmem:[%s6716_s3 + $0x748] sm:$0xff]  ;;  %v1912_v31 = vld [vmem:[%s6716_s3 + $0xbe0] sm:$0xff] }
 0x348   : > { %3817 = vmatprep.subr.mxu1 %v1606_v16  ;;  %3852 = vmatpush3.msra.mxu0 %v1660_v19  ;;  %v1864_v17 = vld [vmem:[%s6716_s3 + $0xa60] sm:$0xff]  ;;  %v1807_v16 = vld [vmem:[%s6716_s3 + $0x898] sm:$0xff]  ;;  %v1861_v19 = vld [vmem:[%s6716_s3 + $0xa48] sm:$0xff] }
 0x349   : > { %3818 = vmatpush3.msra.mxu1 %v1558_v50  ;;  %3853 = vmatprep.subr.mxu0 %v1705_v35  ;;  %v1906_v50 = vld [vmem:[%s6716_s3 + $0xbb0] sm:$0xff]  ;;  %v1804_v35 = vld [vmem:[%s6716_s3 + $0x880] sm:$0xff] }
 0x34a   : > { %3819 = vmatprep.subr.mxu1 %v1603_v56  ;;  %3854 = vmatpush3.msra.mxu0 %v1657_v45  ;;  %v1858_v56 = vld [vmem:[%s6716_s3 + $0xa30] sm:$0xff]  ;;  %v1903_v45 = vld [vmem:[%s6716_s3 + $0xb98] sm:$0xff] }
 0x34b   : > { %3820 = vmatpush3.msra.mxu1 %v1555_v3  ;;  %3855 = vmatprep.subr.mxu0 %v1702_v29  ;;  %v1801_v3 = vld [vmem:[%s6716_s3 + $0x868] sm:$0xff]  ;;  %v1855_v29 = vld [vmem:[%s6716_s3 + $0xa18] sm:$0xff] }
 0x34c   : > { %3821 = vmatprep.subr.mxu1 %v1600_v51  ;;  %3856 = vmatpush3.msra.mxu0 %v1654_v36  ;;  %v1900_v51 = vld [vmem:[%s6716_s3 + $0xb80] sm:$0xff]  ;;  %v1798_v36 = vld [vmem:[%s6716_s3 + $0x850] sm:$0xff] }
 0x34d   : > { %3822 = vmatpush3.msra.mxu1 %v1552_v39  ;;  %3857 = vmatprep.subr.mxu0 %v1699_v6  ;;  %v1852_v39 = vld [vmem:[%s6716_s3 + $0xa00] sm:$0xff]  ;;  %v1750_v6 = vld [vmem:[%s6716_s3 + $0x6d0] sm:$0xff] }
 0x34e   : > { %3823 = vmatprep.subr.mxu1 %v1597_v22  ;;  %3858 = vmatpush3.msra.mxu0 %v1651_v52  ;;  %v1897_v22 = vld [vmem:[%s6716_s3 + $0xb68] sm:$0xff]  ;;  %v1795_v52 = vld [vmem:[%s6716_s3 + $0x838] sm:$0xff] }
 0x34f   : > { %3824 = vmatpush3.msra.mxu1 %v1549_v11  ;;  %3859 = vmatprep.subr.mxu0 %v1696_v4  ;;  %v1849_v11 = vld [vmem:[%s6716_s3 + $0x9e8] sm:$0xff]  ;;  %v1747_v4 = vld [vmem:[%s6716_s3 + $0x6b8] sm:$0xff] }
 0x350   : > { %3825 = vmatprep.subr.mxu1 %v1594_v28  ;;  %3860 = vmatpush3.msra.mxu0 %v1648_v63  ;;  %v1894_v28 = vld [vmem:[%s6716_s3 + $0xb50] sm:$0xff]  ;;  %v1792_v63 = vld [vmem:[%s6716_s3 + $0x820] sm:$0xff] }
 0x351   : > { %3826 = vmatpush3.msra.mxu1 %v1546_v41  ;;  %3861 = vmatprep.subr.mxu0 %v1693_v12  ;;  %v1846_v41 = vld [vmem:[%s6716_s3 + $0x9d0] sm:$0xff]  ;;  %v1744_v12 = vld [vmem:[%s6716_s3 + $0x6a0] sm:$0xff] }
 0x352   : > { %3827 = vmatprep.subr.mxu1 %v1591_v30  ;;  %3862 = vmatpush3.msra.mxu0 %v1645_v42  ;;  %v1891_v30 = vld [vmem:[%s6716_s3 + $0xb38] sm:$0xff]  ;;  %v1789_v42 = vld [vmem:[%s6716_s3 + $0x808] sm:$0xff] }
 0x353   : > { %3828 = vmatpush3.msra.mxu1 %v1543_v32  ;;  %3863 = vmatprep.subr.mxu0 %v1690_v46  ;;  %v1843_v32 = vld [vmem:[%s6716_s3 + $0x9b8] sm:$0xff]  ;;  %v1741_v46 = vld [vmem:[%s6716_s3 + $0x688] sm:$0xff] }
 0x354   : > { %3829 = vmatprep.subr.mxu1 %v1588_v9  ;;  %3864 = vmatpush3.msra.mxu0 %v1642_v58  ;;  %v1888_v9 = vld [vmem:[%s6716_s3 + $0xb20] sm:$0xff]  ;;  %v1786_v58 = vld [vmem:[%s6716_s3 + $0x7f0] sm:$0xff] }
 0x355   : > { %3830 = vmatpush3.msra.mxu1 %v1540_v54  ;;  %3865 = vmatprep.subr.mxu0 %v1687_v34  ;;  %v1840_v54 = vld [vmem:[%s6716_s3 + $0x9a0] sm:$0xff]  ;;  %v1738_v34 = vld [vmem:[%s6716_s3 + $0x670] sm:$0xff] }
 0x356   : > { %3831 = vmatprep.subr.mxu1 %v1585_v24  ;;  %3866 = vmatpush3.msra.mxu0 %v1639_v38  ;;  %v1885_v24 = vld [vmem:[%s6716_s3 + $0xb08] sm:$0xff]  ;;  %v1783_v38 = vld [vmem:[%s6716_s3 + $0x7d8] sm:$0xff] }
 0x357   : > { %3832 = vmatpush3.msra.mxu1 %v1537_v5  ;;  %3867 = vmatprep.subr.mxu0 %v1684_v62  ;;  %v1837_v5 = vld [vmem:[%s6716_s3 + $0x988] sm:$0xff]  ;;  %v1735_v62 = vld [vmem:[%s6716_s3 + $0x658] sm:$0xff] }
 0x358   : > { %3833 = vmatprep.subr.mxu1 %v1582_v44  ;;  %3868 = vmatpush3.msra.mxu0 %v1636_v61  ;;  %v1882_v44 = vld [vmem:[%s6716_s3 + $0xaf0] sm:$0xff]  ;;  %v1780_v61 = vld [vmem:[%s6716_s3 + $0x7c0] sm:$0xff] }
 0x359   : > { %3834 = vmatpush3.msra.mxu1 %v1534_v55  ;;  %3869 = vmatprep.subr.mxu0 %v1681_v27  ;;  %v1834_v55 = vld [vmem:[%s6716_s3 + $0x970] sm:$0xff]  ;;  %v1732_v27 = vld [vmem:[%s6716_s3 + $0x640] sm:$0xff] }
 0x35a   : > { %2395 = vmatmul.mubr.f32.vlgmr.msra.gmra.mxu1 %v5270_v33  ;;  %3870 = vmatpush3.msra.mxu0 %v1633_v13  ;;  %v1915_v33 = vld [vmem:[%s6716_s3 + $0xbf8] sm:$0xff] }
 0x35b   : > { %3879 = vmatprep.subr.mxu1 %v1819_v14  ;;  %2399 = vmatprep.mubr.f32.mxu1 %v5727_v60  ;;  %v1867_v60 = vld [vmem:[%s6716_s3 + $0xa78] sm:$0xff]  ;;  %v1777_v14 = vld [vmem:[%s6716_s3 + $0x7a8] sm:$0xff] }
 0x35c   : > { %3871 = vmatprep.subr.mxu0 %v1678_v2  ;;  %3880 = vmatpush3.msra.mxu1 %v1771_v48  ;;  %v1879_v13 = vld [vmem:[%s6716_s3 + $0xad8] sm:$0xff]  ;;  %v1729_v48 = vld [vmem:[%s6716_s3 + $0x628] sm:$0xff] }
 0x35d   : > { %3872 = vmatpush3.msra.mxu0 %v1630_v1  ;;  %3881 = vmatprep.subr.mxu1 %v1816_v8  ;;  %v1831_v2 = vld [vmem:[%s6716_s3 + $0x958] sm:$0xff]  ;;  %v1876_v1 = vld [vmem:[%s6716_s3 + $0xac0] sm:$0xff]  ;;  %v1774_v8 = vld [vmem:[%s6716_s3 + $0x790] sm:$0xff] }
 0x35e   : > { %2470 = vmatmul.mubr.f32.vlgmr.msra.gmra.mxu0 %v5229_v43  ;;  %3882 = vmatpush3.msra.mxu1 %v1768_v15  ;;  %v1810_v43 = vld [vmem:[%s6716_s3 + $0x8b0] sm:$0xff]  ;;  %v1828_v15 = vld [vmem:[%s6716_s3 + $0x940] sm:$0xff] }
 0x35f   : > { %3917 = vmatprep.subr.mxu0 %v1915_v33  ;;  %2400 = vmatmul.mubr.f32.gmra.mxu1 %v5741_v23  ;;  %v1762_v23 = vld [vmem:[%s6716_s3 + $0x730] sm:$0xff] }
 0x360   : > { %2474 = vmatprep.mubr.f32.mxu0 %v5528_v18  ;;  %3883 = vmatprep.subr.mxu1 %v1813_v26  ;;  %v1909_v18 = vld [vmem:[%s6716_s3 + $0xbc8] sm:$0xff]  ;;  %v1726_v33 = vld [vmem:[%s6716_s3 + $0x610] sm:$0xff] }
 0x361   : > { %3918 = vmatpush3.msra.mxu0 %v1867_v60  ;;  %3884 = vmatpush3.msra.mxu1 %v1765_v25  ;;  %v1873_v26 = vld [vmem:[%s6716_s3 + $0xaa8] sm:$0xff]  ;;  %v1927_v25 = vld [vmem:[%s6716_s3 + $0xc58] sm:$0x7] }
 0x362   : > { %2544 = vmatprep.mubr.f32.mxu1 %v5767_v20  ;;  %3919 = vmatprep.subr.mxu0 %v1912_v31  ;;  %v1759_v20 = vld [vmem:[%s6716_s3 + $0x718] sm:$0xff]  ;;  %v1825_v60 = vld [vmem:[%s6716_s3 + $0x928] sm:$0xff]  ;;  %v1870_v31 = vld [vmem:[%s6716_s3 + $0xa90] sm:$0xff] }
 0x363   : > { %3885 = vmatprep.subr.mxu1 %v1810_v43  ;;  %3920 = vmatpush3.msra.mxu0 %v1864_v17  ;;  %v1822_v43 = vld [vmem:[%s6716_s3 + $0x910] sm:$0xff]  ;;  %v1924_v17 = vld [vmem:[%s6716_s3 + $0xc40] sm:$0xff] }
 0x364   : > { %2475 = vmatmul.mubr.f32.gmra.mxu0 %v5531_v21  ;;  %3886 = vmatpush3.msra.mxu1 %v1762_v23  ;;  %v1756_v21 = vld [vmem:[%s6716_s3 + $0x700] sm:$0xff] }
 0x365   : > { %3921 = vmatprep.subr.mxu0 %v1909_v18  ;;  %3887 = vmatprep.subr.mxu1 %v1807_v16 }
 0x366   : > { %3922 = vmatpush3.msra.mxu0 %v1861_v19  ;;  %2619 = vmatprep.mubr.f32.mxu0 %v5544_v47  ;;  %v1753_v47 = vld [vmem:[%s6716_s3 + $0x6e8] sm:$0xff] }
 0x367   : > { %3888 = vmatpush3.msra.mxu1 %v1759_v20  ;;  %3923 = vmatprep.subr.mxu0 %v1906_v50 }
 0x368   : > { %3889 = vmatprep.subr.mxu1 %v1804_v35  ;;  %3924 = vmatpush3.msra.mxu0 %v1858_v56 }
 0x369   : > { %3890 = vmatpush3.msra.mxu1 %v1756_v21  ;;  %3925 = vmatprep.subr.mxu0 %v1903_v45 }
 0x36a   : > { %3891 = vmatprep.subr.mxu1 %v1801_v3  ;;  %3926 = vmatpush3.msra.mxu0 %v1855_v29 }
 0x36b   : > { %3892 = vmatpush3.msra.mxu1 %v1753_v47  ;;  %3927 = vmatprep.subr.mxu0 %v1900_v51 }
 0x36c   : > { %3893 = vmatprep.subr.mxu1 %v1798_v36  ;;  %3928 = vmatpush3.msra.mxu0 %v1852_v39 }
 0x36d   : > { %3894 = vmatpush3.msra.mxu1 %v1750_v6  ;;  %3929 = vmatprep.subr.mxu0 %v1897_v22 }
 0x36e   : > { %3895 = vmatprep.subr.mxu1 %v1795_v52  ;;  %3930 = vmatpush3.msra.mxu0 %v1849_v11 }
 0x36f   : > { %3896 = vmatpush3.msra.mxu1 %v1747_v4  ;;  %3931 = vmatprep.subr.mxu0 %v1894_v28 }
 0x370   : > { %3897 = vmatprep.subr.mxu1 %v1792_v63  ;;  %3932 = vmatpush3.msra.mxu0 %v1846_v41 }
 0x371   : > { %3898 = vmatpush3.msra.mxu1 %v1744_v12  ;;  %3933 = vmatprep.subr.mxu0 %v1891_v30 }
 0x372   : > { %3899 = vmatprep.subr.mxu1 %v1789_v42  ;;  %3934 = vmatpush3.msra.mxu0 %v1843_v32 }
 0x373   : > { %3900 = vmatpush3.msra.mxu1 %v1741_v46  ;;  %3935 = vmatprep.subr.mxu0 %v1888_v9 }
 0x374   : > { %3901 = vmatprep.subr.mxu1 %v1786_v58  ;;  %3936 = vmatpush3.msra.mxu0 %v1840_v54 }
 0x375   : > { %3902 = vmatpush3.msra.mxu1 %v1738_v34  ;;  %3937 = vmatprep.subr.mxu0 %v1885_v24 }
 0x376   : > { %3903 = vmatprep.subr.mxu1 %v1783_v38  ;;  %3938 = vmatpush3.msra.mxu0 %v1837_v5 }
 0x377   : > { %3904 = vmatpush3.msra.mxu1 %v1735_v62  ;;  %3939 = vmatprep.subr.mxu0 %v1882_v44 }
 0x378   : > { %3905 = vmatprep.subr.mxu1 %v1780_v61  ;;  %3940 = vmatpush3.msra.mxu0 %v1834_v55 }
 0x379   : > { %3906 = vmatpush3.msra.mxu1 %v1732_v27  ;;  %3941 = vmatprep.subr.mxu0 %v1879_v13 }
 0x37a   : > { %3907 = vmatprep.subr.mxu1 %v1777_v14  ;;  %3942 = vmatpush3.msra.mxu0 %v1831_v2 }
 0x37b   : > { %3908 = vmatpush3.msra.mxu1 %v1729_v48  ;;  %3943 = vmatprep.subr.mxu0 %v1876_v1 }
 0x37c   : > { %3909 = vmatprep.subr.mxu1 %v1774_v8  ;;  %3944 = vmatpush3.msra.mxu0 %v1828_v15 }
 0x37d   : > { %3910 = vmatpush3.msra.mxu1 %v1726_v33  ;;  %3945 = vmatprep.subr.mxu0 %v1873_v26 }
 0x37e   : > { %2545 = vmatmul.mubr.f32.vlgmr.msra.gmra.mxu1 %v5763_v37  ;;  %3946 = vmatpush3.msra.mxu0 %v1825_v60  ;;  %v1921_v37 = vld [vmem:[%s6716_s3 + $0xc28] sm:$0xff] }
 0x37f   : > { %4032 = vmatprep.subr.msk.mxu1 %vm1935_vm10, %v1927_v25  ;;  %2549 = vmatprep.mubr.f32.mxu1 %v5784_v57  ;;  %v1918_v57 = vld [vmem:[%s6716_s3 + $0xc10] sm:$0xff] }
 0x380   : > { %3947 = vmatprep.subr.mxu0 %v1870_v31  ;;  %4033 = vmatpush3.msk.msra.mxu1 %vm1935_vm10, %v1927_v25 }
 0x381   : > { %3948 = vmatpush3.msra.mxu0 %v1822_v43  ;;  %4034 = vmatprep.subr.mxu1 %v1924_v17 }
 0x382   : > { %2620 = vmatmul.mubr.f32.vlgmr.msra.gmra.mxu0 %v5722_v0  ;;  %4035 = vmatpush3.msra.mxu1 %v1924_v17  ;;  %v2088_v0 = vpop.f32.mrf.mxu0 }
 0x383   : > { %2550 = vmatmul.mubr.f32.gmra.mxu1 %v5813_v10  ;;  %2624 = vmatprep.mubr.f32.mxu0 %v5736_v49  ;;  %v2011_v10 = vpop.f32.mrf.mxu1 }
 0x384   : > { %4036 = vmatprep.subr.mxu1 %v1921_v37  ;;  %4040 = vmatprep.mubr.msk.f32.mxu1 %vm1928_vm11, %v5806_v40  ;;  %v2090_v49 = vpop.f32.mrf.mxu0  ;;  %v2089_v40 = vadd.f32 %v2088_v0, %v2011_v10 }
 0x385   : > { %4037 = vmatpush3.msra.mxu1 %v1921_v37  ;;  %3238 = vmatprep.subr.mxu0 %v4209_v7  ;;  %v2013_v18 = vpop.f32.mrf.mxu1 }
 0x386   : > { %4038 = vmatprep.subr.mxu1 %v1918_v57  ;;  %2625 = vmatmul.mubr.f32.gmra.mxu0 %v5778_v53  ;;  %v2091_v21 = vadd.f32 %v2090_v49, %v2013_v18 }
 0x387   : > { %4039 = vmatpush3.msra.mxu1 %v1918_v57 }
 0x388   : > { %4041 = vmatmul.mubr.msk.f32.vlgmr.msra.gmra.mxu1 %vm1928_vm11, %v5842_v59 }
 0x39c   : > { %v2094_v23 = vpop.f32.mrf.mxu0 }
 0x39e   : > { %v2096_v16 = vpop.f32.mrf.mxu0 }
 0x3ef   : > { %v2242_v19 = vpop.f32.mrf.mxu0 }
 0x3f1   : > { %v2017_v20 = vpop.f32.mrf.mxu1  ;;  %v2244_v35 = vpop.f32.mrf.mxu0 }
 0x3f2   : > { %v2095_v59 = vadd.f32 %v2094_v23, %v2017_v20 }
 0x3f3   : > { %v2019_v50 = vpop.f32.mrf.mxu1 }
 0x3f4   : > { %v2097_v52 = vadd.f32 %v2096_v16, %v2019_v50 }
 0x3f6   : > { %v2165_v56 = vpop.f32.mrf.mxu1 }
 0x3f7   : > { %v2248_v45 = vpop.f32.mrf.mxu0  ;;  %v2166_v3 = vadd.f32 %v2165_v56, %v2089_v40  ;;  %v3051_v40 = vld [vmem:[%s6717_s4 + $0x8] sm:$0xff] }
 0x3f8   : > { %v2167_v53 = vpop.f32.mrf.mxu1  ;;  %3780 = vmatprep.mubr.msk.f32.mxu0 %vm3136_vm14, %v3051_v40  ;;  %3776 = vmatprep.mubr.msk.f32.mxu1 %vm3136_vm14, %v3051_v40 }
 0x3f9   : > { %v2250_v29 = vpop.f32.mrf.mxu0  ;;  %v2168_v47 = vadd.f32 %v2167_v53, %v2091_v21  ;;  %v2243_v51 = vadd.f32 %v2242_v19, %v2166_v3  ;;  %v3112_v21 = vld [vmem:[%s6718_s5] sm:$0xff]  ;;  %v3114_v53 = vld [vmem:[%s6718_s5 + $0x10] sm:$0xff] }
 0x3fb   : > { %v2319_v36 = vpop.f32.mrf.mxu0  ;;  %v2245_v39 = vadd.f32 %v2244_v35, %v2168_v47  ;;  %v3113_v47 = vld [vmem:[%s6718_s5 + $0x8] sm:$0xff] }
 0x3fc   : > { %v6223_v6 = vadd.f32 %v2319_v36, %v2243_v51  ;;  %v2171_v22 = vpop.f32.mrf.mxu1  ;;  %v3115_v36 = vld [vmem:[%s6718_s5 + $0x18] sm:$0xff] }
 0x3fd   : > { %v2172_v11 = vadd.f32 %v2171_v22, %v2095_v59  ;;  %v2321_v4 = vpop.f32.mrf.mxu0 }
 0x3fe   : > { %v6225_v28 = vadd.f32 %v2321_v4, %v2245_v39  ;;  %v2173_v63 = vpop.f32.mrf.mxu1  ;;  %2980 = vrot.lane.b32.xlu0 %v6223_v6, %s4212_s23 }
 0x3ff   : > { %v2174_v41 = vadd.f32 %v2173_v63, %v2097_v52  ;;  %v2249_v12 = vadd.f32 %v2248_v45, %v2172_v11 }
 0x401   : > { %v2325_v30 = vpop.f32.mrf.mxu0  ;;  %v2251_v42 = vadd.f32 %v2250_v29, %v2174_v41 }
 0x402   : > { %v6229_v32 = vadd.f32 %v2325_v30, %v2249_v12  ;;  %2940 = vrot.lane.b32.xlu0 %v6223_v6, %s4205_s10 }
 0x403   : > { %v2327_v46 = vpop.f32.mrf.mxu0 }
 0x404   : > { %v6233_v9 = vadd.f32 %v2327_v46, %v2251_v42  ;;  %2986 = vrot.lane.b32.xlu1 %v6229_v32, %s4212_s23 }
 0x406   : > { %2899 = vrot.lane.b32.xlu0 %v6223_v6, %s4213_s26 }
 0x408   : > { %2946 = vrot.lane.b32.xlu1 %v6229_v32, %s4205_s10 }
 0x40a   : > { %2858 = vrot.lane.b32.xlu0 %v6223_v6, %s4214_s12 }
 0x40c   : > { %2905 = vrot.lane.b32.xlu1 %v6229_v32, %s4213_s26 }
 0x40e   : > { %2817 = vrot.lane.b32.xlu0 %v6223_v6, %s4215_s27 }
 0x410   : > { %2864 = vrot.lane.b32.xlu1 %v6229_v32, %s4214_s12 }
 0x412   : > { %2777 = vrot.lane.b32.xlu0 %v6223_v6, %s4208_s13 }
 0x414   : > { %2823 = vrot.lane.b32.xlu1 %v6229_v32, %s4215_s27 }
 0x416   : > { %2737 = vrot.lane.b32.xlu0 %v6223_v6, %s4210_s14 }
 0x418   : > { %2783 = vrot.lane.b32.xlu1 %v6229_v32, %s4208_s13 }
 0x41a   : > { %2982 = vrot.lane.b32.xlu0 %v6225_v28, %s4212_s23  ;;  %v3835_v58 = vpop.f32.mrf.mxu1 }
 0x41c   : > { %2743 = vrot.lane.b32.xlu1 %v6229_v32, %s4210_s14  ;;  %v3836_v34 = vpop.f32.mrf.mxu1 }
 0x41d   : > { %v3837_v55 = vadd.f32 %v3836_v34, %v3835_v58 }
 0x41e   : > { %2942 = vrot.lane.b32.xlu0 %v6225_v28, %s4205_s10  ;;  %v3873_v54 = vpop.f32.mrf.mxu0 }
 0x41f   : > { %v3838_v38 = vpop.f32.mrf.mxu1 }
 0x420   : > { %2988 = vrot.lane.b32.xlu1 %v6233_v9, %s4212_s23  ;;  %v3874_v24 = vpop.f32.mrf.mxu0 }
 0x421   : > { %v3839_v62 = vpop.f32.mrf.mxu1  ;;  %v3875_v44 = vadd.f32 %v3874_v24, %v3873_v54 }
 0x422   : > { %2901 = vrot.lane.b32.xlu0 %v6225_v28, %s4213_s26  ;;  %v3840_v33 = vadd.f32 %v3839_v62, %v3838_v38 }
 0x423   : > { %v2472_v14 = vadd.f32 %v3875_v44, %v3837_v55 }
 0x424   : > { %2948 = vrot.lane.b32.xlu1 %v6233_v9, %s4205_s10  ;;  %v3876_v5 = vpop.f32.mrf.mxu0 }
 0x426   : > { %2860 = vrot.lane.b32.xlu0 %v6225_v28, %s4214_s12  ;;  %v3877_v27 = vpop.f32.mrf.mxu0 }
 0x427   : > { %v3878_v48 = vadd.f32 %v3877_v27, %v3876_v5 }
 0x428   : > { %2907 = vrot.lane.b32.xlu1 %v6233_v9, %s4213_s26 }
 0x429   : > { %v2477_v31 = vadd.f32 %v3878_v48, %v3840_v33 }
 0x42a   : > { %2819 = vrot.lane.b32.xlu0 %v6225_v28, %s4215_s27 }
 0x42c   : > { %2866 = vrot.lane.b32.xlu1 %v6233_v9, %s4214_s12 }
 0x42e   : > { %2779 = vrot.lane.b32.xlu0 %v6225_v28, %s4208_s13 }
 0x430   : > { %2825 = vrot.lane.b32.xlu1 %v6233_v9, %s4215_s27 }
 0x432   : > { %2739 = vrot.lane.b32.xlu0 %v6225_v28, %s4210_s14 }
 0x434   : > { %2785 = vrot.lane.b32.xlu1 %v6233_v9, %s4208_s13 }
 0x438   : > { %2745 = vrot.lane.b32.xlu1 %v6233_v9, %s4210_s14 }
 0x43c   : > { %3029 = vrot.lane.b32.xlu1 %v6233_v9, %s4216_s28 }
 0x43e   : > { %v3911_v61 = vpop.f32.mrf.mxu1 }
 0x440   : > { %v3912_v13 = vpop.f32.mrf.mxu1 }
 0x441   : > { %v3913_v2 = vadd.f32 %v3912_v13, %v3911_v61 }
 0x442   : > { %v3949_v1 = vpop.f32.mrf.mxu0 }
 0x443   : > { %v2547_v8 = vadd.f32 %v3913_v2, %v2472_v14  ;;  %v3914_v15 = vpop.f32.mrf.mxu1 }
 0x444   : > { %v3950_v26 = vpop.f32.mrf.mxu0 }
 0x445   : > { %v3951_v60 = vadd.f32 %v3950_v26, %v3949_v1  ;;  %v3915_v25 = vpop.f32.mrf.mxu1 }
 0x446   : > { %v3916_v43 = vadd.f32 %v3915_v25, %v3914_v15  ;;  %v3952_v17 = vpop.f32.mrf.mxu0 }
 0x447   : > { %v2622_v37 = vadd.f32 %v3951_v60, %v2547_v8 }
 0x448   : > { %v2552_v57 = vadd.f32 %v3916_v43, %v2477_v31  ;;  %v4042_v0 = vpop.f32.mrf.mxu1  ;;  %v3953_v49 = vpop.f32.mrf.mxu0 }
 0x449   : > { %v3954_v10 = vadd.f32 %v3953_v49, %v3952_v17 }
 0x44a   : > { %v2696_v23 = vpop.f32.mrf.mxu1 }
 0x44b   : > { %v2627_v18 = vadd.f32 %v3954_v10, %v2552_v57  ;;  %v2697_v16 = vadd.f32 %v2696_v23, %v2622_v37 }
 0x44d   : > { %v2702_v19 = vadd.f32 %v4042_v0, %v2627_v18  ;;  %2708 = vst.msk [vmem:[#allocation3 + $0x10] sm:$0xff] %vm2707_vm12, %v2697_v16 }
 0x44f   : > { %2711 = vst.msk [vmem:[#allocation3 + $0x28] sm:$0xff] %vm2707_vm12, %v2702_v19 }
 0x454   : > { %v2714_v20 = vld [vmem:[#allocation3 + $0x10] sm:$0xff] }
 0x455   : > { %2984 = vrot.lane.b32.xlu1 %v2714_v20, %s4212_s23  ;;  %2721 = vst.msk [vmem:[#allocation4 + $0x10] sm:$0xff] %vm2720_vm13, %v2714_v20 }
 0x456   : > { %v2973_v50 = vld [vmem:[#allocation3 + $0x28] sm:$0xff] }
 0x457   : > { %2990 = vrot.lane.b32.xlu0 %v2973_v50, %s4212_s23  ;;  %2724 = vst.msk [vmem:[#allocation4 + $0x28] sm:$0xff] %vm2720_vm13, %v2973_v50 }
 0x459   : > { %2944 = vrot.lane.b32.xlu1 %v2714_v20, %s4205_s10 }
 0x45b   : > { %2950 = vrot.lane.b32.xlu0 %v2973_v50, %s4205_s10 }
 0x45d   : > { %2903 = vrot.lane.b32.xlu1 %v2714_v20, %s4213_s26 }
 0x45f   : > { %2909 = vrot.lane.b32.xlu0 %v2973_v50, %s4213_s26 }
 0x461   : > { %2862 = vrot.lane.b32.xlu1 %v2714_v20, %s4214_s12 }
 0x463   : > { %2868 = vrot.lane.b32.xlu0 %v2973_v50, %s4214_s12 }
 0x465   : > { %2821 = vrot.lane.b32.xlu1 %v2714_v20, %s4215_s27 }
 0x467   : > { %2827 = vrot.lane.b32.xlu0 %v2973_v50, %s4215_s27 }
 0x469   : > { %2781 = vrot.lane.b32.xlu1 %v2714_v20, %s4208_s13 }
 0x46b   : > { %2787 = vrot.lane.b32.xlu0 %v2973_v50, %s4208_s13 }
 0x46d   : > { %2741 = vrot.lane.b32.xlu1 %v2714_v20, %s4210_s14 }
 0x46f   : > { %2747 = vrot.lane.b32.xlu0 %v2973_v50, %s4210_s14 }
 0x470   : > { %v2981_v35 = vpop.permute.xlu0 %2980 }
 0x471   : > { %3027 = vrot.lane.b32.xlu1 %v6229_v32, %s4216_s28 }
 0x473   : > { %3023 = vrot.lane.b32.xlu0 %v6225_v28, %s4216_s28 }
 0x474   : > { %v2941_v56 = vpop.permute.xlu0 %2940 }
 0x475   : > { %3025 = vrot.lane.b32.xlu1 %v2714_v20, %s4216_s28 }
 0x476   : > { %v2987_v45 = vpop.permute.xlu1 %2986 }
 0x477   : > { %3031 = vrot.lane.b32.xlu0 %v2973_v50, %s4216_s28 }
 0x478   : > { %v2900_v3 = vpop.permute.xlu0 %2899 }
 0x479   : > { %3118 = vperm.xlu1 %4077, %v3112_v21  }
 0x47a   : > { %v2947_v29 = vpop.permute.xlu1 %2946 }
 0x47b   : > { %3021 = vrot.lane.b32.xlu0 %v6223_v6, %s4216_s28 }
 0x47c   : > { %v2859_v51 = vpop.permute.xlu0 %2858 }
 0x47d   : > { %3128 = vperm.xlu1 %4077, %v3114_v53  }
 0x47e   : > { %v2906_v59 = vpop.permute.xlu1 %2905 }
 0x47f   : > { %3123 = vperm.xlu0 %4078, %v3113_v47  }
 0x480   : > { %v2818_v39 = vpop.permute.xlu0 %2817 }
 0x482   : > { %v2865_v22 = vpop.permute.xlu1 %2864 }
 0x483   : > { %3133 = vperm.xlu0 %4078, %v3115_v36  }
 0x484   : > { %v2778_v52 = vpop.permute.xlu0 %2777 }
 0x486   : > { %v2824_v11 = vpop.permute.xlu1 %2823 }
 0x488   : > { %v2738_v4 = vpop.permute.xlu0 %2737 }
 0x48a   : > { %v2784_v63 = vpop.permute.xlu1 %2783 }
 0x48c   : > { %v2983_v41 = vpop.permute.xlu0 %2982 }
 0x48d   : > { %v2993_v12 = vsel %vm2992_vm15, %v2981_v35, %v2983_v41 }
 0x48e   : > { %v2744_v30 = vpop.permute.xlu1 %2743 }
 0x490   : > { %v2943_v42 = vpop.permute.xlu0 %2942 }
 0x491   : > { %v2952_v46 = vsel %vm586_vm4, %v2941_v56, %v2943_v42 }
 0x492   : > { %v2989_v58 = vpop.permute.xlu1 %2988 }
 0x493   : > { %v2995_v54 = vsel %vm2992_vm15, %v2987_v45, %v2989_v58 }
 0x494   : > { %v2902_v34 = vpop.permute.xlu0 %2901 }
 0x495   : > { %v6334_v24 = vsel %vm2911_vm0, %v2900_v3, %v2902_v34 }
 0x496   : > { %v2949_v38 = vpop.permute.xlu1 %2948 }
 0x497   : > { %v2954_v5 = vsel %vm586_vm4, %v2947_v29, %v2949_v38 }
 0x498   : > { %v2861_v62 = vpop.permute.xlu0 %2860 }
 0x499   : > { %v6338_v44 = vsel %vm2870_vm1, %v2859_v51, %v2861_v62 }
 0x49a   : > { %v2908_v61 = vpop.permute.xlu1 %2907 }
 0x49b   : > { %v2914_v55 = vsel %vm2911_vm0, %v2906_v59, %v2908_v61 }
 0x49c   : > { %v6341_v27 = vpop.permute.xlu0 %2819 }
 0x49d   : > { %v6345_v13 = vsel %vm2829_vm2, %v2818_v39, %v6341_v27 }
 0x49e   : > { %v2867_v14 = vpop.permute.xlu1 %2866 }
 0x49f   : > { %v2873_v2 = vsel %vm2870_vm1, %v2865_v22, %v2867_v14 }
 0x4a0   : > { %v6348_v48 = vpop.permute.xlu0 %2779 }
 0x4a1   : > { %v6352_v1 = vsel %vm397_vm7, %v2778_v52, %v6348_v48 }
 0x4a2   : > { %v6354_v8 = vpop.permute.xlu1 %2825 }
 0x4a3   : > { %v6358_v15 = vsel %vm2829_vm2, %v2824_v11, %v6354_v8 }
 0x4a4   : > { %v6360_v33 = vpop.permute.xlu0 %2739 }
 0x4a5   : > { %v6364_v26 = vsel %vm334_vm8, %v2738_v4, %v6360_v33 }
 0x4a6   : > { %v6366_v60 = vpop.permute.xlu1 %2785 }
 0x4a7   : > { %v6370_v25 = vsel %vm397_vm7, %v2784_v63, %v6366_v60 }
 0x4aa   : > { %v6372_v31 = vpop.permute.xlu1 %2745 }
 0x4ab   : > { %v6376_v43 = vsel %vm334_vm8, %v2744_v30, %v6372_v31 }
 0x4ae   : > { %v6378_v17 = vpop.permute.xlu1 %3029 }
 0x4c7   : > { %v2985_v37 = vpop.permute.xlu1 %2984 }
 0x4c8   : > { %v2994_v57 = vsel %vm2992_vm15, %v2983_v41, %v2985_v37  ;;  %3005 = vst.msk [vmem:[#allocation4 + $0x160] sm:$0xff] %vm2720_vm13, %v2985_v37 }
 0x4c9   : > { %v2991_v0 = vpop.permute.xlu0 %2990 }
 0x4ca   : > { %v2996_v49 = vsel %vm2992_vm15, %v2989_v58, %v2991_v0  ;;  %3008 = vst.msk [vmem:[#allocation4 + $0x178] sm:$0xff] %vm2720_vm13, %v2991_v0 }
 0x4cb   : > { %v2945_v10 = vpop.permute.xlu1 %2944  ;;  %3149 = vmatprep.subr.mxu1 %v2996_v49 }
 0x4cc   : > { %v2953_v23 = vsel %vm586_vm4, %v2943_v42, %v2945_v10  ;;  %2964 = vst.msk [vmem:[#allocation4 + $0x130] sm:$0xff] %vm2720_vm13, %v2945_v10  ;;  %3150 = vmatpush1.msra.mxu1 %v2995_v54 }
 0x4cd   : > { %v2951_v18 = vpop.permute.xlu0 %2950  ;;  %3151 = vmatprep.subr.mxu1 %v2994_v57 }
 0x4ce   : > { %v2955_v16 = vsel %vm586_vm4, %v2949_v38, %v2951_v18  ;;  %2967 = vst.msk [vmem:[#allocation4 + $0x148] sm:$0xff] %vm2720_vm13, %v2951_v18  ;;  %3152 = vmatpush1.msra.mxu1 %v2993_v12  ;;  %vm3505_vm4 = vcmask 89088  }
 0x4cf   : > { %v2904_v19 = vpop.permute.xlu1 %2903  ;;  %3153 = vmatprep.subr.mxu1 %v2955_v16  ;;  %v3102_v21 = vld [vmem:[#allocation4 + $0x160] sm:$0xff] }
 0x4d0   : > { %v2913_v20 = vsel %vm2911_vm0, %v2902_v34, %v2904_v19  ;;  %2924 = vst.msk [vmem:[#allocation4 + $0x100] sm:$0xff] %vm2720_vm13, %v2904_v19  ;;  %3154 = vmatpush1.msra.mxu1 %v2954_v5 }
 0x4d1   : > { %v2910_v50 = vpop.permute.xlu0 %2909  ;;  %v3105_v40 = vld [vmem:[#allocation4 + $0x178] sm:$0xff]  ;;  %3155 = vmatprep.subr.mxu1 %v2953_v23 }
 0x4d2   : > { %v2915_v35 = vsel %vm2911_vm0, %v2908_v61, %v2910_v50  ;;  %2927 = vst.msk [vmem:[#allocation4 + $0x118] sm:$0xff] %vm2720_vm13, %v2910_v50  ;;  %3239 = vmatpush1.msra.mxu0 %v3105_v40  ;;  %3156 = vmatpush1.msra.mxu1 %v2952_v46 }
 0x4d3   : > { %v2863_v56 = vpop.permute.xlu1 %2862  ;;  %3240 = vmatprep.subr.mxu0 %v4209_v7  ;;  %3157 = vmatprep.subr.mxu1 %v2915_v35  ;;  %v3096_v51 = vld [vmem:[#allocation4 + $0x130] sm:$0xff] }
 0x4d4   : > { %v2872_v45 = vsel %vm2870_vm1, %v2861_v62, %v2863_v56  ;;  %2883 = vst.msk [vmem:[#allocation4 + $0xd0] sm:$0xff] %vm2720_vm13, %v2863_v56  ;;  %3241 = vmatpush1.msra.mxu0 %v3102_v21  ;;  %3158 = vmatpush1.msra.mxu1 %v2914_v55 }
 0x4d5   : > { %v2869_v3 = vpop.permute.xlu0 %2868  ;;  %3242 = vmatprep.subr.mxu0 %v4209_v7  ;;  %v3099_v53 = vld [vmem:[#allocation4 + $0x148] sm:$0xff]  ;;  %3159 = vmatprep.subr.mxu1 %v2913_v20 }
 0x4d6   : > { %v2874_v29 = vsel %vm2870_vm1, %v2867_v14, %v2869_v3  ;;  %2886 = vst.msk [vmem:[#allocation4 + $0xe8] sm:$0xff] %vm2720_vm13, %v2869_v3  ;;  %3243 = vmatpush1.msra.mxu0 %v3099_v53  ;;  %3160 = vmatpush1.msra.mxu1 %v6334_v24 }
 0x4d7   : > { %v2822_v47 = vpop.permute.xlu1 %2821  ;;  %3244 = vmatprep.subr.mxu0 %v4209_v7  ;;  %3161 = vmatprep.subr.mxu1 %v2874_v29  ;;  %v3090_v11 = vld [vmem:[#allocation4 + $0x100] sm:$0xff] }
 0x4d8   : > { %v2831_v59 = vsel %vm2829_vm2, %v6341_v27, %v2822_v47  ;;  %2842 = vst.msk [vmem:[#allocation4 + $0xa0] sm:$0xff] %vm2720_vm13, %v2822_v47  ;;  %3245 = vmatpush1.msra.mxu0 %v3096_v51  ;;  %3162 = vmatpush1.msra.mxu1 %v2873_v2 }
 0x4d9   : > { %v2828_v36 = vpop.permute.xlu0 %2827  ;;  %3246 = vmatprep.subr.mxu0 %v4209_v7  ;;  %v3093_v39 = vld [vmem:[#allocation4 + $0x118] sm:$0xff]  ;;  %3163 = vmatprep.subr.mxu1 %v2872_v45 }
 0x4da   : > { %v2833_v22 = vsel %vm2829_vm2, %v6354_v8, %v2828_v36  ;;  %2845 = vst.msk [vmem:[#allocation4 + $0xb8] sm:$0xff] %vm2720_vm13, %v2828_v36  ;;  %3247 = vmatpush1.msra.mxu0 %v3093_v39  ;;  %3164 = vmatpush1.msra.mxu1 %v6338_v44  ;;  %v3060_v8 = vld [vmem:[#allocation4 + $0x10] sm:$0xff] }
 0x4db   : > { %v2782_v52 = vpop.permute.xlu1 %2781  ;;  %3248 = vmatprep.subr.mxu0 %v4209_v7  ;;  %3165 = vmatprep.subr.mxu1 %v2833_v22  ;;  %v3084_v42 = vld [vmem:[#allocation4 + $0xd0] sm:$0xff] }
 0x4dc   : > { %v2790_v4 = vsel %vm397_vm7, %v6348_v48, %v2782_v52  ;;  %2801 = vst.msk [vmem:[#allocation4 + $0x70] sm:$0xff] %vm2720_vm13, %v2782_v52  ;;  %3249 = vmatpush1.msra.mxu0 %v3090_v11  ;;  %3166 = vmatpush1.msra.mxu1 %v6358_v15  ;;  %v3063_v48 = vld [vmem:[#allocation4 + $0x28] sm:$0xff] }
 0x4dd   : > { %v2788_v63 = vpop.permute.xlu0 %2787  ;;  %3250 = vmatprep.subr.mxu0 %v4209_v7  ;;  %v3087_v41 = vld [vmem:[#allocation4 + $0xe8] sm:$0xff]  ;;  %3167 = vmatprep.subr.mxu1 %v2831_v59 }
 0x4de   : > { %v2792_v12 = vsel %vm397_vm7, %v6366_v60, %v2788_v63  ;;  %2804 = vst.msk [vmem:[#allocation4 + $0x88] sm:$0xff] %vm2720_vm13, %v2788_v63  ;;  %3251 = vmatpush1.msra.mxu0 %v3087_v41  ;;  %3168 = vmatpush1.msra.mxu1 %v6345_v13 }
 0x4df   : > { %v2742_v30 = vpop.permute.xlu1 %2741  ;;  %3252 = vmatprep.subr.mxu0 %v4209_v7  ;;  %3169 = vmatprep.subr.mxu1 %v2792_v12  ;;  %v3078_v38 = vld [vmem:[#allocation4 + $0xa0] sm:$0xff] }
 0x4e0   : > { %v2750_v46 = vsel %vm334_vm8, %v6360_v33, %v2742_v30  ;;  %2761 = vst.msk [vmem:[#allocation4 + $0x40] sm:$0xff] %vm2720_vm13, %v2742_v30  ;;  %3253 = vmatpush1.msra.mxu0 %v3084_v42  ;;  %3170 = vmatpush1.msra.mxu1 %v6370_v25  ;;  %v3052_v33 = vld [vmem:[%s6717_s4 + $0x10] sm:$0xff]  ;;  %v3054_v25 = vld [vmem:[%s6717_s4 + $0x20] sm:$0xff] }
 0x4e1   : > { %v2748_v58 = vpop.permute.xlu0 %2747  ;;  %3254 = vmatprep.subr.mxu0 %v4209_v7  ;;  %v3081_v54 = vld [vmem:[#allocation4 + $0xb8] sm:$0xff]  ;;  %3171 = vmatprep.subr.mxu1 %v2790_v4 }
 0x4e2   : > { %v2752_v34 = vsel %vm334_vm8, %v6372_v31, %v2748_v58  ;;  %2764 = vst.msk [vmem:[#allocation4 + $0x58] sm:$0xff] %vm2720_vm13, %v2748_v58  ;;  %3255 = vmatpush1.msra.mxu0 %v3081_v54  ;;  %3172 = vmatpush1.msra.mxu1 %v6352_v1  ;;  %v3057_v31 = vld [vmem:[%s6717_s4 + $0x38] sm:$0xff] }
 0x4e3   : > { %v3028_v24 = vpop.permute.xlu1 %3027  ;;  %3256 = vmatprep.subr.mxu0 %v4209_v7  ;;  %3173 = vmatprep.subr.mxu1 %v2752_v34  ;;  %v3072_v55 = vld [vmem:[#allocation4 + $0x70] sm:$0xff] }
 0x4e4   : > { %v3036_v5 = vsel %vm3033_vm3, %v3028_v24, %v6378_v17  ;;  %3257 = vmatpush1.msra.mxu0 %v3078_v38  ;;  %3174 = vmatpush1.msra.mxu1 %v6376_v43  ;;  %v3502_v38 = vld [vmem:[%s6719_s6 + $0xf8] sm:$0xff] }
 0x4e5   : > { %v3024_v62 = vpop.permute.xlu0 %3023  ;;  %3258 = vmatprep.subr.mxu0 %v4209_v7  ;;  %v3075_v44 = vld [vmem:[#allocation4 + $0x88] sm:$0xff]  ;;  %3175 = vmatprep.subr.mxu1 %v2750_v46 }
 0x4e6   : > { %3259 = vmatpush1.msra.mxu0 %v3075_v44  ;;  %3176 = vmatpush1.msra.mxu1 %v6364_v26  ;;  %v3055_v26 = vld [vmem:[%s6717_s4 + $0x28] sm:$0xff] }
 0x4e7   : > { %v3026_v61 = vpop.permute.xlu1 %3025  ;;  %3260 = vmatprep.subr.mxu0 %v4209_v7  ;;  %3177 = vmatprep.subr.mxu1 %v6233_v9  ;;  %v3066_v9 = vld [vmem:[#allocation4 + $0x40] sm:$0xff] }
 0x4e8   : > { %v3035_v27 = vsel %vm3033_vm3, %v3024_v62, %v3026_v61  ;;  %3046 = vst.msk [vmem:[#allocation4 + $0x190] sm:$0xff] %vm2720_vm13, %v3026_v61  ;;  %3261 = vmatpush1.msra.mxu0 %v3072_v55  ;;  %3178 = vmatpush1.msra.mxu1 %v6229_v32  ;;  %v3485_v61 = vld [vmem:[%s6719_s6 + $0x70] sm:$0xff] }
 0x4e9   : > { %v3032_v13 = vpop.permute.xlu0 %3031  ;;  %3262 = vmatprep.subr.mxu0 %v4209_v7  ;;  %v3069_v14 = vld [vmem:[#allocation4 + $0x58] sm:$0xff]  ;;  %3179 = vmatprep.subr.mxu1 %v6225_v28  ;;  %v3050_v28 = vld [vmem:[%s6717_s4] sm:$0xff] }
 0x4ea   : > { %v3037_v2 = vsel %vm3033_vm3, %v6378_v17, %v3032_v13  ;;  %3049 = vst.msk [vmem:[#allocation4 + $0x1a8] sm:$0xff] %vm2720_vm13, %v3032_v13  ;;  %3263 = vmatpush1.msra.mxu0 %v3069_v14  ;;  %3180 = vmatpush1.msra.mxu1 %v6223_v6  ;;  %v3053_v6 = vld [vmem:[%s6717_s4 + $0x18] sm:$0xff]  ;;  %v3500_v14 = vld [vmem:[%s6719_s6 + $0xe8] sm:$0xff] }
 0x4eb   : > { %3264 = vmatprep.subr.mxu0 %v4209_v7  ;;  %3209 = vmatprep.subr.mxu1 %v3037_v2 }
 0x4ec   : > { %3265 = vmatpush1.msra.mxu0 %v3066_v9  ;;  %3210 = vmatpush2.msra.mxu1 %v3036_v5  ;;  %v3486_v5 = vld [vmem:[%s6719_s6 + $0x78] sm:$0xff]  ;;  %v3484_v9 = vld [vmem:[%s6719_s6 + $0x68] sm:$0xff] }
 0x4ed   : > { %v3022_v32 = vpop.permute.xlu0 %3021  ;;  %3266 = vmatprep.subr.mxu0 %v4209_v7  ;;  %3211 = vmatprep.subr.mxu1 %v3035_v27 }
 0x4ee   : > { %v3034_v1 = vsel %vm3033_vm3, %v3022_v32, %v3024_v62  ;;  %3267 = vmatpush1.msra.mxu0 %v3063_v48  ;;  %v3501_v62 = vld [vmem:[%s6719_s6 + $0xf0] sm:$0xff] }
 0x4ef   : > { %3268 = vmatprep.subr.mxu0 %v4209_v7  ;;  %3212 = vmatpush2.msra.mxu1 %v3034_v1  ;;  %v3108_v60 = vld [vmem:[#allocation4 + $0x190] sm:$0xff] }
 0x4f0   : > { %3269 = vmatpush1.msra.mxu0 %v3060_v8  ;;  %3214 = vmatmul.mubr.f32.vlgmr.msra.gmra.mxu1 %v3050_v28  ;;  %v3498_v8 = vld [vmem:[%s6719_s6 + $0xd8] sm:$0xff] }
 0x4f1   : > { %3298 = vmatprep.subr.mxu0 %v4209_v7  ;;  %v3111_v15 = vld [vmem:[#allocation4 + $0x1a8] sm:$0xff]  ;;  %3777 = vmatprep.mubr.msk.f32.mxu1 %vm3136_vm14, %v3053_v6 }
 0x4f2   : > { %3299 = vmatpush2.msra.mxu0 %v3111_v15  ;;  %3961 = vmatprep.subr.mxu1 %v3502_v38  ;;  %v3482_v15 = vld [vmem:[%s6719_s6 + $0x58] sm:$0xff] }
 0x4f3   : > { %3300 = vmatprep.subr.mxu0 %v4209_v7  ;;  %v3056_v7 = vld [vmem:[%s6717_s4 + $0x30] sm:$0xff]  ;;  %3962 = vmatpush3.msra.mxu1 %v3486_v5 }
 0x4f4   : > { %3301 = vmatpush2.msra.mxu0 %v3108_v60  ;;  %3220 = vmatmul.mubr.f32.gmra.mxu1 %v3052_v33  ;;  %v3119_v43 = vpop.permute.xlu1 %3118  ;;  %v3496_v60 = vld [vmem:[%s6719_s6 + $0xc8] sm:$0xff] }
 0x4f5   : > { %3303 = vmatmul.mubr.f32.vlgmr.msra.gmra.mxu0 %v3050_v28  ;;  %3778 = vmatprep.mubr.msk.f32.mxu1 %vm3136_vm14, %v3055_v26  ;;  %v3499_v28 = vld [vmem:[%s6719_s6 + $0xe0] sm:$0xff] }
 0x4f6   : > { %3781 = vmatprep.mubr.msk.f32.mxu0 %vm3136_vm14, %v3053_v6  ;;  %3963 = vmatprep.subr.mxu1 %v3501_v62  ;;  %v3483_v6 = vld [vmem:[%s6719_s6 + $0x60] sm:$0xff] }
 0x4f7   : > { %3964 = vmatpush3.msra.mxu1 %v3485_v61 }
 0x4f8   : > { %3226 = vmatmul.mubr.f32.gmra.mxu1 %v3054_v25  ;;  %v3129_v21 = vpop.permute.xlu1 %3128  ;;  %3965 = vmatprep.subr.mxu1 %v3500_v14 }
 0x4f9   : > { %3308 = vmatmul.mubr.f32.gmra.mxu0 %v3052_v33  ;;  %3779 = vmatprep.mubr.msk.f32.mxu1 %vm3136_vm14, %v3057_v31  ;;  %v3497_v33 = vld [vmem:[%s6719_s6 + $0xd0] sm:$0xff] }
 0x4fa   : > { %3782 = vmatprep.mubr.msk.f32.mxu0 %vm3136_vm14, %v3055_v26  ;;  %v3124_v49 = vpop.permute.xlu0 %3123  ;;  %3966 = vmatpush3.msra.mxu1 %v3484_v9  ;;  %v3481_v26 = vld [vmem:[%s6719_s6 + $0x50] sm:$0xff] }
 0x4fb   : > { %3967 = vmatprep.subr.mxu1 %v3499_v28 }
 0x4fc   : > { %3232 = vmatmul.mubr.f32.gmra.mxu1 %v3056_v7 }
 0x4fd   : > { %3313 = vmatmul.mubr.f32.gmra.mxu0 %v3054_v25  ;;  %3968 = vmatpush3.msra.mxu1 %v3483_v6  ;;  %v3480_v25 = vld [vmem:[%s6719_s6 + $0x48] sm:$0xff] }
 0x4fe   : > { %3783 = vmatprep.mubr.msk.f32.mxu0 %vm3136_vm14, %v3057_v31  ;;  %v3134_v11 = vpop.permute.xlu0 %3133  ;;  %3969 = vmatprep.subr.mxu1 %v3498_v8  ;;  %v3495_v31 = vld [vmem:[%s6719_s6 + $0xc0] sm:$0xff] }
 0x4ff   : > { %3970 = vmatpush3.msra.mxu1 %v3482_v15 }
 0x500   : > { %3971 = vmatprep.subr.mxu1 %v3497_v33 }
 0x501   : > { %3318 = vmatmul.mubr.f32.gmra.mxu0 %v3056_v7  ;;  %3972 = vmatpush3.msra.mxu1 %v3481_v26  ;;  %v3479_v7 = vld [vmem:[%s6719_s6 + $0x40] sm:$0xff] }
 0x502   : > { %3973 = vmatprep.subr.mxu1 %v3496_v60 }
 0x503   : > { %3974 = vmatpush3.msra.mxu1 %v3480_v25 }
 0x504   : > { %3975 = vmatprep.subr.mxu1 %v3495_v31 }
 0x505   : > { %3976 = vmatpush3.msra.mxu1 %v3479_v7 }
 0x5b0   : > { %v3215_v17 = vpop.f32.mrf.mxu1 }
 0x5b1   : > { %v6478_v37 = vadd.f32 %v3215_v17, %v3119_v43  ;;  %v3478_v17 = vld [vmem:[%s6719_s6 + $0x38] sm:$0xff] }
 0x5b2   : > { %v3217_v57 = vpop.f32.mrf.mxu1 }
 0x5b3   : > { %v6480_v0 = vadd.f32 %v3217_v57, %v3119_v43  ;;  %v3323_v18 = vmax.f32 %v6478_v37, 0.0  ;;  %v3493_v57 = vld [vmem:[%s6719_s6 + $0xb0] sm:$0xff] }
 0x5b4   : > { %v3221_v10 = vpop.f32.mrf.mxu1 }
 0x5b5   : > { %v3304_v23 = vpop.f32.mrf.mxu0  ;;  %v3324_v16 = vmax.f32 %v6480_v0, 0.0  ;;  %v6484_v19 = vadd.f32 %v3221_v10, %v3124_v49  ;;  %v3492_v10 = vld [vmem:[%s6719_s6 + $0xa8] sm:$0xff] }
 0x5b6   : > { %v6486_v20 = vadd.f32 %v3304_v23, %v3119_v43  ;;  %v3223_v50 = vpop.f32.mrf.mxu1  ;;  %v3494_v43 = vld [vmem:[%s6719_s6 + $0xb8] sm:$0xff]  ;;  %v3476_v23 = vld [vmem:[%s6719_s6 + $0x28] sm:$0xff] }
 0x5b7   : > { %v3306_v40 = vpop.f32.mrf.mxu0  ;;  %v4154_v35 = vpack.i.bf16 %v3323_v18, %v3324_v16  ;;  %v6492_v56 = vadd.f32 %v3223_v50, %v3124_v49  ;;  %v3326_v29 = vmax.f32 %v6484_v19, 0.0  ;;  %3977 = vmatprep.subr.mxu1 %v3494_v43  ;;  %v3504_v50 = vld [vmem:[%s6719_s6 + $0x108] sm:$0x7] }
 0x5b8   : > { %v3325_v45 = vmax.f32 %v6486_v20, 0.0  ;;  %v3227_v3 = vpop.f32.mrf.mxu1  ;;  %3978 = vmatpush3.msra.mxu1 %v3478_v17  ;;  %v3491_v40 = vld [vmem:[%s6719_s6 + $0xa0] sm:$0xff]  ;;  %4043 = vmatprep.subr.msk.mxu0 %vm1935_vm10, %v3504_v50 }
 0x5b9   : > { %v3309_v53 = vpop.f32.mrf.mxu0  ;;  %v3327_v47 = vmax.f32 %v6492_v56, 0.0  ;;  %v6497_v51 = vadd.f32 %v3227_v3, %v3129_v21  ;;  %4155 = vrot.lane.b32.xlu1 %v4154_v35, %s4210_s14  ;;  %3979 = vmatprep.subr.mxu1 %v3493_v57  ;;  %v3475_v35 = vld [vmem:[%s6719_s6 + $0x20] sm:$0xff]  ;;  %v3474_v3 = vld [vmem:[%s6719_s6 + $0x18] sm:$0xff] }
 0x5ba   : > { %v6500_v59 = vadd.f32 %v3309_v53, %v3124_v49  ;;  %3351 = vrot.lane.b32.xlu0 %v3325_v45, %s4210_s14  ;;  %v3229_v36 = vpop.f32.mrf.mxu1  ;;  %v3477_v49 = vld [vmem:[%s6719_s6 + $0x30] sm:$0xff]  ;;  %4044 = vmatpush3.msk.msra.mxu0 %vm1935_vm10, %v3504_v50  ;;  %v3503_v53 = vld [vmem:[%s6719_s6 + $0x100] sm:$0xff] }
 0x5bb   : > { %v3311_v39 = vpop.f32.mrf.mxu0  ;;  %v4159_v22 = vpack.i.bf16 %v3326_v29, %v3327_v47  ;;  %v6509_v52 = vadd.f32 %v3229_v36, %v3129_v21  ;;  %v3329_v12 = vmax.f32 %v6497_v51, 0.0  ;;  %3980 = vmatpush3.msra.mxu1 %v3477_v49  ;;  %v3489_v36 = vld [vmem:[%s6719_s6 + $0x90] sm:$0xff]  ;;  %4045 = vmatprep.subr.mxu0 %v3503_v53 }
 0x5bc   : > { %v3328_v4 = vmax.f32 %v6500_v59, 0.0  ;;  %v3233_v63 = vpop.f32.mrf.mxu1  ;;  %3981 = vmatprep.subr.mxu1 %v3492_v10  ;;  %v3473_v39 = vld [vmem:[%s6719_s6 + $0x10] sm:$0xff]  ;;  %4046 = vmatpush3.msra.mxu0 %v3503_v53 }
 0x5bd   : > { %v3314_v41 = vpop.f32.mrf.mxu0  ;;  %v3330_v30 = vmax.f32 %v6509_v52, 0.0  ;;  %v6514_v42 = vadd.f32 %v3233_v63, %v3134_v11  ;;  %4160 = vrot.lane.b32.xlu1 %v4159_v22, %s4210_s14  ;;  %3982 = vmatpush3.msra.mxu1 %v3476_v23  ;;  %v3488_v22 = vld [vmem:[%s6719_s6 + $0x88] sm:$0xff]  ;;  %v3487_v63 = vld [vmem:[%s6719_s6 + $0x80] sm:$0xff] }
 0x5be   : > { %v6517_v46 = vadd.f32 %v3314_v41, %v3129_v21  ;;  %3357 = vrot.lane.b32.xlu0 %v3328_v4, %s4210_s14  ;;  %v3235_v58 = vpop.f32.mrf.mxu1  ;;  %3983 = vmatprep.subr.mxu1 %v3491_v40  ;;  %v3490_v21 = vld [vmem:[%s6719_s6 + $0x98] sm:$0xff] }
 0x5bf   : > { %v3316_v54 = vpop.f32.mrf.mxu0  ;;  %v4164_v34 = vpack.i.bf16 %v3329_v12, %v3330_v30  ;;  %v6526_v24 = vadd.f32 %v3235_v58, %v3134_v11  ;;  %v3332_v27 = vmax.f32 %v6514_v42, 0.0  ;;  %3984 = vmatpush3.msra.mxu1 %v3475_v35  ;;  %v3471_v58 = vld [vmem:[%s6719_s6] sm:$0xff] }
 0x5c0   : > { %v3331_v44 = vmax.f32 %v6517_v46, 0.0  ;;  %3985 = vmatprep.subr.mxu1 %v3490_v21 }
 0x5c1   : > { %v3319_v55 = vpop.f32.mrf.mxu0  ;;  %v3333_v13 = vmax.f32 %v6526_v24, 0.0  ;;  %4165 = vrot.lane.b32.xlu1 %v4164_v34, %s4210_s14  ;;  %3986 = vmatpush3.msra.mxu1 %v3474_v3 }
 0x5c2   : > { %v6547_v2 = vadd.f32 %v3319_v55, %v3134_v11  ;;  %3363 = vrot.lane.b32.xlu0 %v3331_v44, %s4210_s14  ;;  %3987 = vmatprep.subr.mxu1 %v3489_v36  ;;  %v3472_v11 = vld [vmem:[%s6719_s6 + $0x8] sm:$0xff] }
 0x5c3   : > { %v4169_v32 = vpack.i.bf16 %v3332_v27, %v3333_v13  ;;  %v3321_v48 = vpop.f32.mrf.mxu0  ;;  %3988 = vmatpush3.msra.mxu1 %v3473_v39 }
 0x5c4   : > { %v3334_v1 = vmax.f32 %v6547_v2, 0.0  ;;  %3989 = vmatprep.subr.mxu1 %v3488_v22 }
 0x5c5   : > { %4170 = vrot.lane.b32.xlu1 %v4169_v32, %s4210_s14  ;;  %3990 = vmatpush3.msra.mxu1 %v3472_v11 }
 0x5c6   : > { %3369 = vrot.lane.b32.xlu0 %v3334_v1, %s4210_s14  ;;  %3991 = vmatprep.subr.mxu1 %v3487_v63 }
 0x5c7   : > { %3992 = vmatpush3.msra.mxu1 %v3471_v58 }
 0x62b   : > { %v4156_v41 = vpop.permute.xlu1 %4155 }
 0x62c   : > { %v3352_v54 = vpop.permute.xlu0 %3351  ;;  %v4158_v34 = vunpack.i.h.bf16 %v4156_v41  ;;  %v4157_v38 = vunpack.i.l.bf16 %v4156_v41 }
 0x62d   : > { %v3393_v5 = vmax.f32 %v3325_v45, %v3352_v54 }
 0x62e   : > { %v3371_v62 = vsel %vm334_vm8, %v4158_v34, %v4157_v38  ;;  %v3372_v61 = vsel %vm334_vm8, %v4157_v38, %v3352_v54 }
 0x62f   : > { %3419 = vrot.lane.b32.xlu0 %v3393_v5, %s4215_s27  ;;  %v3391_v55 = vmax.f32 %v3323_v18, %v3371_v62  ;;  %v3392_v14 = vmax.f32 %v3324_v16, %v3372_v61  ;;  %v4161_v9 = vpop.permute.xlu1 %4160 }
 0x630   : > { %v3358_v32 = vpop.permute.xlu0 %3357  ;;  %v4163_v48 = vunpack.i.h.bf16 %v4161_v9  ;;  %v4162_v28 = vunpack.i.l.bf16 %v4161_v9 }
 0x631   : > { %v3396_v20 = vmax.f32 %v3328_v4, %v3358_v32  ;;  %v4174_v45 = vpack.i.bf16 %v3391_v55, %v3392_v14 }
 0x632   : > { %v3373_v6 = vsel %vm334_vm8, %v4163_v48, %v4162_v28  ;;  %v3374_v8 = vsel %vm334_vm8, %v4162_v28, %v3358_v32 }
 0x633   : > { %3425 = vrot.lane.b32.xlu0 %v3396_v20, %s4215_s27  ;;  %v3394_v37 = vmax.f32 %v3326_v29, %v3373_v6  ;;  %v3395_v0 = vmax.f32 %v3327_v47, %v3374_v8  ;;  %v4166_v18 = vpop.permute.xlu1 %4165  ;;  %4175 = vrot.lane.b32.xlu1 %v4174_v45, %s4215_s27 }
 0x634   : > { %v3364_v16 = vpop.permute.xlu0 %3363  ;;  %v4168_v15 = vunpack.i.h.bf16 %v4166_v18  ;;  %v4167_v59 = vunpack.i.l.bf16 %v4166_v18 }
 0x635   : > { %v3399_v4 = vmax.f32 %v3331_v44, %v3364_v16  ;;  %v4179_v33 = vpack.i.bf16 %v3394_v37, %v3395_v0 }
 0x636   : > { %v3375_v26 = vsel %vm334_vm8, %v4168_v15, %v4167_v59  ;;  %v3376_v60 = vsel %vm334_vm8, %v4167_v59, %v3364_v16 }
 0x637   : > { %3431 = vrot.lane.b32.xlu0 %v3399_v4, %s4215_s27  ;;  %v3397_v19 = vmax.f32 %v3329_v12, %v3375_v26  ;;  %v3398_v56 = vmax.f32 %v3330_v30, %v3376_v60  ;;  %v4171_v29 = vpop.permute.xlu1 %4170  ;;  %4180 = vrot.lane.b32.xlu1 %v4179_v33, %s4215_s27 }
 0x638   : > { %v3370_v47 = vpop.permute.xlu0 %3369  ;;  %v4173_v25 = vunpack.i.h.bf16 %v4171_v29  ;;  %v4172_v46 = vunpack.i.l.bf16 %v4171_v29 }
 0x639   : > { %v3402_v44 = vmax.f32 %v3334_v1, %v3370_v47  ;;  %v4184_v31 = vpack.i.bf16 %v3397_v19, %v3398_v56 }
 0x63a   : > { %v3377_v7 = vsel %vm334_vm8, %v4173_v25, %v4172_v46  ;;  %v3378_v43 = vsel %vm334_vm8, %v4172_v46, %v3370_v47 }
 0x63b   : > { %3437 = vrot.lane.b32.xlu0 %v3402_v44, %s4215_s27  ;;  %v3400_v51 = vmax.f32 %v3332_v27, %v3377_v7  ;;  %v3401_v52 = vmax.f32 %v3333_v13, %v3378_v43  ;;  %4185 = vrot.lane.b32.xlu1 %v4184_v31, %s4215_s27 }
 0x63d   : > { %v4189_v12 = vpack.i.bf16 %v3400_v51, %v3401_v52 }
 0x63f   : > { %4190 = vrot.lane.b32.xlu1 %v4189_v12, %s4215_s27  ;;  %s3791_s27 = sshll.u32 %s6722_s25, 5 }
 0x640   : > { %s278_s23 = scalar_lea.vmem %s6720_s7, %s3791_s27 }
 0x6a1   : > { %v3420_v30 = vpop.permute.xlu0 %3419 }
 0x6a2   : > { %v3461_v2 = vmax.f32 %v3393_v5, %v3420_v30 }
 0x6a4   : > { %4047 = vmatprep.mubr.msk.f32.mxu0 %vm3505_vm4, %v3461_v2 }
 0x6a5   : > { %v3426_v1 = vpop.permute.xlu0 %3425  ;;  %v4176_v17 = vpop.permute.xlu1 %4175 }
 0x6a6   : > { %v3464_v57 = vmax.f32 %v3396_v20, %v3426_v1  ;;  %v4178_v49 = vunpack.i.h.bf16 %v4176_v17  ;;  %v4177_v10 = vunpack.i.l.bf16 %v4176_v17 }
 0x6a8   : > { %4048 = vmatmul.mubr.msk.f32.vlgmr.msra.gmra.mxu0 %vm3505_vm4, %v3464_v57  ;;  %v3439_v42 = vsel %vm2829_vm2, %v4178_v49, %v4177_v10  ;;  %v3440_v24 = vsel %vm2829_vm2, %v4177_v10, %v3420_v30 }
 0x6a9   : > { %v3432_v27 = vpop.permute.xlu0 %3431  ;;  %v3459_v13 = vmax.f32 %v3391_v55, %v3439_v42  ;;  %v4181_v23 = vpop.permute.xlu1 %4180  ;;  %v3460_v50 = vmax.f32 %v3392_v14, %v3440_v24 }
 0x6aa   : > { %v3467_v40 = vmax.f32 %v3399_v4, %v3432_v27  ;;  %v4183_v35 = vunpack.i.h.bf16 %v4181_v23  ;;  %v4182_v21 = vunpack.i.l.bf16 %v4181_v23 }
 0x6ab   : > { %3585 = vmatprep.mubr.f32.mxu1 %v3460_v50 }
 0x6ac   : > { %4050 = vmatprep.mubr.msk.f32.mxu0 %vm3505_vm4, %v3467_v40  ;;  %3586 = vmatmul.mubr.f32.vlgmr.msra.gmra.mxu1 %v3459_v13  ;;  %v3442_v3 = vsel %vm2829_vm2, %v4182_v21, %v3426_v1  ;;  %v3441_v53 = vsel %vm2829_vm2, %v4183_v35, %v4182_v21 }
 0x6ad   : > { %v3438_v36 = vpop.permute.xlu0 %3437  ;;  %v4186_v39 = vpop.permute.xlu1 %4185  ;;  %v3463_v22 = vmax.f32 %v3395_v0, %v3442_v3  ;;  %v3462_v11 = vmax.f32 %v3394_v37, %v3441_v53 }
 0x6ae   : > { %v3470_v63 = vmax.f32 %v3402_v44, %v3438_v36  ;;  %v4188_v41 = vunpack.i.h.bf16 %v4186_v39  ;;  %v4187_v58 = vunpack.i.l.bf16 %v4186_v39 }
 0x6af   : > { %3590 = vmatprep.mubr.f32.mxu1 %v3463_v22 }
 0x6b0   : > { %4051 = vmatmul.mubr.msk.f32.gmra.mxu0 %vm3505_vm4, %v3470_v63  ;;  %3591 = vmatmul.mubr.f32.gmra.mxu1 %v3462_v11  ;;  %v3444_v54 = vsel %vm2829_vm2, %v4187_v58, %v3432_v27  ;;  %v3443_v34 = vsel %vm2829_vm2, %v4188_v41, %v4187_v58 }
 0x6b1   : > { %v4191_v38 = vpop.permute.xlu1 %4190  ;;  %v3466_v5 = vmax.f32 %v3398_v56, %v3444_v54  ;;  %v3465_v62 = vmax.f32 %v3397_v19, %v3443_v34 }
 0x6b2   : > { %v4193_v61 = vunpack.i.h.bf16 %v4191_v38  ;;  %v4192_v55 = vunpack.i.l.bf16 %v4191_v38 }
 0x6b3   : > { %3595 = vmatprep.mubr.f32.mxu1 %v3466_v5 }
 0x6b4   : > { %3596 = vmatmul.mubr.f32.gmra.mxu1 %v3465_v62  ;;  %v3446_v14 = vsel %vm2829_vm2, %v4192_v55, %v3438_v36  ;;  %v3445_v9 = vsel %vm2829_vm2, %v4193_v61, %v4192_v55 }
 0x6b5   : > { %v3469_v32 = vmax.f32 %v3401_v52, %v3446_v14  ;;  %v3468_v48 = vmax.f32 %v3400_v51, %v3445_v9 }
 0x6b7   : > { %3600 = vmatprep.mubr.f32.mxu1 %v3469_v32 }
 0x6b8   : > { %3601 = vmatmul.mubr.f32.gmra.mxu1 %v3468_v48 }
 0x768   : > { %v4049_v28 = vpop.f32.mrf.mxu0 }
 0x76a   : > { %v3672_v8 = vpop.f32.mrf.mxu0 }
 0x76c   : > { %v3993_v20 = vpop.f32.mrf.mxu1 }
 0x76e   : > { %v3994_v45 = vpop.f32.mrf.mxu1 }
 0x76f   : > { %v3995_v6 = vadd.f32 %v3994_v45, %v3993_v20 }
 0x770   : > { %v3996_v37 = vpop.f32.mrf.mxu1  ;;  %v4052_v15 = vpop.f32.mrf.mxu0 }
 0x771   : > { %v3673_v0 = vadd.f32 %v3995_v6, %v3672_v8 }
 0x772   : > { %v3997_v18 = vpop.f32.mrf.mxu1  ;;  %v3682_v60 = vpop.f32.mrf.mxu0 }
 0x773   : > { %3692 = vst.msk [vmem:[%s278_s23] sm:$0xff] %vm3691_vm5, %v3673_v0  ;;  %v3998_v16 = vadd.f32 %v3997_v18, %v3996_v37 }
 0x774   : > { %v3999_v59 = vpop.f32.mrf.mxu1 }
 0x775   : > { %v3678_v4 = vadd.f32 %v4049_v28, %v3998_v16 }
 0x776   : > { %v4000_v33 = vpop.f32.mrf.mxu1 }
 0x777   : > { %3693 = vst.msk [vmem:[%s278_s23 + $0x8] sm:$0xff] %vm3691_vm5, %v3678_v4  ;;  %v4001_v26 = vadd.f32 %v4000_v33, %v3999_v59 }
 0x778   : > { %v4002_v19 = vpop.f32.mrf.mxu1 }
 0x779   : > { %v3683_v56 = vadd.f32 %v4001_v26, %v3682_v60 }
 0x77a   : > { %v4003_v29 = vpop.f32.mrf.mxu1 }
 0x77b   : > { %3694 = vst.msk [vmem:[%s278_s23 + $0x10] sm:$0xff] %vm3691_vm5, %v3683_v56  ;;  %v4004_v47 = vadd.f32 %v4003_v29, %v4002_v19 }
 0x77d   : > { %v3688_v25 = vadd.f32 %v4052_v15, %v4004_v47 }
 0x77f   : > { %3695 = vst.msk [vmem:[%s278_s23 + $0x18] sm:$0xff] %vm3691_vm5, %v3688_v25 }
 0x780 PF: > { %s17_s24 = sadd.s32 1, %s4200_s24  }
 0x781   : > { %p14_p4 = scmp.ge.s32.totalorder %s17_s24, 4  }
 0x783   :  { %16 = sbr.rel (!%p14_p4) target bundleno = 1 (0x1), region = 78 }

</bundles_post_ra>
